<compile_context>
chip_gen: v5e
topology: v5e:2x2
jax: 0.10.0
libtpu: 0.0.40
codegen_flags: <defaults>
</compile_context>

<pallas_src>
import functools

import jax
import jax.numpy as jnp
from jax.experimental import pallas as pl
from jax.experimental.pallas import tpu as pltpu


def _round_up(x: int, m: int) -> int:
    return (x + m - 1) // m * m


def _mac(w_ref, row, vs):
    """sum_k w[row, k] * vs[k]  (SMEM scalar weights x dense (8, TL) slabs)."""
    acc = w_ref[row, 0] * vs[0]
    for k in range(1, len(vs)):
        acc = acc + w_ref[row, k] * vs[k]
    return acc


def _mlp_softmax_body(x_ref, w1_ref, w2_ref, w3_ref, o_ref):
    # x_ref: (d_in, 8, TL) VMEM   w*_ref: SMEM   o_ref: (out_dim, 8, TL) VMEM
    d_in = x_ref.shape[0]
    xs = [x_ref[k] for k in range(d_in)]                       # (8, TL) each
    h1 = [jnp.maximum(_mac(w1_ref, f, xs), 0.0)
          for f in range(w1_ref.shape[0])]                     # fc1 + ReLU
    h2 = [jnp.maximum(_mac(w2_ref, g, h1), 0.0)
          for g in range(w2_ref.shape[0])]                     # fc2 + ReLU
    if w3_ref is not None:
        h = [_mac(w3_ref, g, h2) for g in range(w3_ref.shape[0])]   # fc3
    else:
        h = h2

    # Softmax over the (unrolled) feature axis: lane-local VPU/EUP only.
    # Junk lanes of a ragged tail block may go inf/nan; harmless (lane-local,
    # out-of-bounds stores are clipped by Pallas).
    m = functools.reduce(jnp.maximum, h)
    e = [jnp.exp(v - m) for v in h]
    den = functools.reduce(lambda a, b: a + b, e)
    inv = pl.reciprocal(den, approx=True)          # EUP (otherwise idle slot)
    inv = inv * (2.0 - den * inv)                  # Newton step -> f32 accuracy
    for g, eg in enumerate(e):
        o_ref[g] = (eg * inv).astype(o_ref.dtype)


def _make_kernel(use_fc3: bool):
    if use_fc3:
        def kernel(x_ref, w1_ref, w2_ref, w3_ref, o_ref):
            _mlp_softmax_body(x_ref, w1_ref, w2_ref, w3_ref, o_ref)
    else:
        def kernel(x_ref, w1_ref, w2_ref, o_ref):
            _mlp_softmax_body(x_ref, w1_ref, w2_ref, None, o_ref)
    return kernel


@functools.partial(jax.jit, static_argnames=("use_fc3", "tl_max"))
def _forward_fmajor_impl(xT, weights, *, use_fc3: bool, tl_max: int):
    d_in, B = xT.shape
    out_dim = weights[-1].shape[0]
    dt = xT.dtype

    # Pad the batch to a multiple of 8 so it maps onto (8 sublanes, L lanes).
    B_pad = _round_up(max(B, 8), 8)
    if B_pad != B:
        xT = jnp.pad(xT, ((0, 0), (0, B_pad - B)))   # zero rows: softmax is finite
    L = B_pad // 8
    x3 = xT.reshape(d_in, 8, L)                      # contiguous => free reshape

    tl_max = max(_round_up(tl_max, 128), 1024)
    if L <= 1024:
        tl = L                   # single block; full-extent last dim is legal
    else:
        # ~8 grid steps (pipelining + v7x megacore), blocks >= 8192 rows.
        tl = min(tl_max, max(1024, _round_up(pl.cdiv(L, 8), 128)))
    grid = (pl.cdiv(L, tl),)

    flops = sum(2 * o * i for (o, i) in (w.shape for w in weights)) * B_pad
    cost = pl.CostEstimate(flops=flops,
                           transcendentals=(out_dim + 1) * B_pad,
                           bytes_accessed=(d_in + out_dim) * 4 * B_pad)

    in_specs = [pl.BlockSpec((d_in, 8, tl), lambda i: (0, 0, i))]
    in_specs += [pl.BlockSpec(memory_space=pltpu.MemorySpace.SMEM)
                 for _ in weights]                   # tiny weights -> SMEM scalars

    o3 = pl.pallas_call(
        _make_kernel(use_fc3),
        out_shape=jax.ShapeDtypeStruct((out_dim, 8, L), dt),
        grid=grid,
        in_specs=in_specs,
        out_specs=pl.BlockSpec((out_dim, 8, tl), lambda i: (0, 0, i)),
        compiler_params=pltpu.CompilerParams(
            dimension_semantics=("parallel",),
            vmem_limit_bytes=48 * 1024 * 1024),
        cost_estimate=cost,
    )(x3, *weights)

    out = o3.reshape(out_dim, B_pad)                 # contiguous => free reshape
    return out[:, :B] if B_pad != B else out


def reducer_forward_fmajor(xT, w1, w2, w3=None, *, use_fc3=True, tl_max=8192):
    """Fast path: xT is (in_features, B); returns softmax probs (4, B).

    No wrapper transposes; this is the layout-recommended entry point.
    """
    if use_fc3:
        if w3 is None:
            raise ValueError("w3 is required when use_fc3=True")
        weights = (w1, w2, w3)
    else:
        weights = (w1, w2)           # w3 never shipped / read
    return _forward_fmajor_impl(xT, weights, use_fc3=use_fc3, tl_max=tl_max)


def reducer_module_forward(x, w1, w2, w3=None, *, use_fc3=True, tl_max=8192,
                           min_pallas_batch=2048):
    """PyTorch-layout drop-in: x (B, 2) -> softmax probs (B, 4).

    NOTE: this path pays two HBM layout conversions (x.T in, out.T back).
    Prefer reducer_forward_fmajor if the caller can adopt (features, B).
    Tiny batches use plain XLA (kernel + transpose launch overhead dominates).
    """
    B = x.shape[0]
    if B < min_pallas_batch:
        return _reference_jit(x, w1, w2, w3 if use_fc3 else None,
                              use_fc3=use_fc3)
    outT = reducer_forward_fmajor(x.T, w1, w2, w3, use_fc3=use_fc3,
                                  tl_max=tl_max)
    return outT.T


def _reference(x, w1, w2, w3, use_fc3=True):
    h = jnp.maximum(x @ w1.T, 0.0)
    h = jnp.maximum(h @ w2.T, 0.0)
    if use_fc3:
        h = h @ w3.T
    return jax.nn.softmax(h, axis=1)


_reference_jit = jax.jit(_reference, static_argnames=("use_fc3",))


def _init_params(key):
    # Deterministic synthetic init (PyTorch-like uniform(-1/sqrt(fan_in), +)).
    k1, k2, k3 = jax.random.split(key, 3)

    def u(k, shape, fan_in):
        bound = 1.0 / jnp.sqrt(fan_in)
        return jax.random.uniform(k, shape, jnp.float32, -bound, bound)

    w1 = u(k1, (10, 2), 2.0)    # fc1: Linear(2, 10, bias=False)
    w2 = u(k2, (4, 10), 10.0)   # fc2: Linear(10, 4, bias=False)
    w3 = u(k3, (4, 4), 4.0)     # fc3: Linear(4, 4, bias=False)
    return w1, w2, w3


if __name__ == "__main__":
    key = jax.random.PRNGKey(0)
    kp, kx1, kx2, kx3 = jax.random.split(key, 4)
    w1, w2, w3 = _init_params(kp)

    # 1) Feature-major fast path (no transposes): multi-block grid + ragged
    #    tail block.  B=9216 -> L=1152 lanes -> 2 blocks of 1024 lanes.
    B = 9216
    xT = jax.random.normal(kx1, (2, B), jnp.float32)
    out_t = jax.block_until_ready(reducer_forward_fmajor(xT, w1, w2, w3))
    ref_t = _reference(xT.T, w1, w2, w3, True).T
    assert out_t.shape == (4, B)
    assert jnp.allclose(out_t, ref_t, atol=1e-4, rtol=1e-4)
    assert jnp.allclose(jnp.sum(out_t, axis=0), 1.0, atol=1e-4)

    #    use_fc3=False path (w3 never shipped).
    out_t2 = jax.block_until_ready(
        reducer_forward_fmajor(xT, w1, w2, use_fc3=False))
    ref_t2 = _reference(xT.T, w1, w2, None, False).T
    assert jnp.allclose(out_t2, ref_t2, atol=1e-4, rtol=1e-4)

    # 2) PyTorch-layout drop-in (Pallas path incl. documented x.T/out.T).
    B2 = 4096
    x2 = jax.random.normal(kx2, (B2, 2), jnp.float32)
    out2 = jax.block_until_ready(reducer_module_forward(x2, w1, w2, w3))
    ref2 = _reference(x2, w1, w2, w3, True)
    assert out2.shape == (B2, 4)
    assert jnp.allclose(out2, ref2, atol=1e-4, rtol=1e-4)

    # 3) Batch not a multiple of 8 -> zero-pad path through the drop-in.
    B3 = 3001
    x3 = jax.random.normal(kx3, (B3, 2), jnp.float32)
    out3 = jax.block_until_ready(reducer_module_forward(x3, w1, w2, w3))
    ref3 = _reference(x3, w1, w2, w3, True)
    assert out3.shape == (B3, 4)
    assert jnp.allclose(out3, ref3, atol=1e-4, rtol=1e-4)

    # 4) Tiny batch -> pure-XLA fallback (pallas + transposes not worth it).
    x4 = jax.random.normal(kx1, (8, 2), jnp.float32)
    out4 = jax.block_until_ready(reducer_module_forward(x4, w1, w2, w3))
    assert out4.shape == (8, 4)
    assert jnp.allclose(jnp.sum(out4, axis=1), 1.0, atol=1e-4)

    print("KERNEL_OK")
</pallas_src>

<mosaic_0001>
module attributes {stable_mosaic.version = 11 : i64} {
  func.func @kernel(%arg0: i32, %arg1: memref<2x8x1024xf32, #tpu.memory_space<vmem>>, %arg2: memref<10x2xf32, #tpu.memory_space<smem>>, %arg3: memref<4x10xf32, #tpu.memory_space<smem>>, %arg4: memref<4x4xf32, #tpu.memory_space<smem>>, %arg5: memref<4x8x1024xf32, #tpu.memory_space<vmem>>) attributes {dimension_semantics = [#tpu.dimension_semantics<parallel>], iteration_bounds = array<i64: 2>, scalar_prefetch = 0 : i64, scratch_operands = 0 : i64, tpu.core_type = #tpu.core_type<tc>, window_params = [{transform_indices = @transform_0, window_bounds = array<i64: 2, 8, 1024>}, {transform_indices = @transform_1, window_bounds = array<i64: 10, 2>}, {transform_indices = @transform_2, window_bounds = array<i64: 4, 10>}, {transform_indices = @transform_3, window_bounds = array<i64: 4, 4>}, {transform_indices = @transform_4, window_bounds = array<i64: 4, 8, 1024>}]} {
    %c0 = arith.constant 0 : index
    %c0_0 = arith.constant 0 : index
    %c0_1 = arith.constant 0 : index
    %0 = vector.load %arg1[%c0, %c0_0, %c0_1] : memref<2x8x1024xf32, #tpu.memory_space<vmem>>, vector<1x8x1024xf32>
    %1 = vector.shape_cast %0 : vector<1x8x1024xf32> to vector<8x1024xf32>
    %c1 = arith.constant 1 : index
    %c0_2 = arith.constant 0 : index
    %c0_3 = arith.constant 0 : index
    %2 = vector.load %arg1[%c1, %c0_2, %c0_3] : memref<2x8x1024xf32, #tpu.memory_space<vmem>>, vector<1x8x1024xf32>
    %3 = vector.shape_cast %2 : vector<1x8x1024xf32> to vector<8x1024xf32>
    %c0_4 = arith.constant 0 : index
    %c0_5 = arith.constant 0 : index
    %4 = memref.load %arg2[%c0_4, %c0_5] : memref<10x2xf32, #tpu.memory_space<smem>>
    %5 = vector.broadcast %4 : f32 to vector<8x1024xf32>
    %6 = arith.mulf %5, %1 : vector<8x1024xf32>
    %c0_6 = arith.constant 0 : index
    %c1_7 = arith.constant 1 : index
    %7 = memref.load %arg2[%c0_6, %c1_7] : memref<10x2xf32, #tpu.memory_space<smem>>
    %8 = vector.broadcast %7 : f32 to vector<8x1024xf32>
    %9 = arith.mulf %8, %3 : vector<8x1024xf32>
    %10 = arith.addf %6, %9 : vector<8x1024xf32>
    %cst = arith.constant 0.000000e+00 : f32
    %11 = vector.broadcast %cst : f32 to vector<8x1024xf32>
    %12 = arith.maximumf %10, %11 : vector<8x1024xf32>
    %c1_8 = arith.constant 1 : index
    %c0_9 = arith.constant 0 : index
    %13 = memref.load %arg2[%c1_8, %c0_9] : memref<10x2xf32, #tpu.memory_space<smem>>
    %14 = vector.broadcast %13 : f32 to vector<8x1024xf32>
    %15 = arith.mulf %14, %1 : vector<8x1024xf32>
    %c1_10 = arith.constant 1 : index
    %c1_11 = arith.constant 1 : index
    %16 = memref.load %arg2[%c1_10, %c1_11] : memref<10x2xf32, #tpu.memory_space<smem>>
    %17 = vector.broadcast %16 : f32 to vector<8x1024xf32>
    %18 = arith.mulf %17, %3 : vector<8x1024xf32>
    %19 = arith.addf %15, %18 : vector<8x1024xf32>
    %cst_12 = arith.constant 0.000000e+00 : f32
    %20 = vector.broadcast %cst_12 : f32 to vector<8x1024xf32>
    %21 = arith.maximumf %19, %20 : vector<8x1024xf32>
    %c2 = arith.constant 2 : index
    %c0_13 = arith.constant 0 : index
    %22 = memref.load %arg2[%c2, %c0_13] : memref<10x2xf32, #tpu.memory_space<smem>>
    %23 = vector.broadcast %22 : f32 to vector<8x1024xf32>
    %24 = arith.mulf %23, %1 : vector<8x1024xf32>
    %c2_14 = arith.constant 2 : index
    %c1_15 = arith.constant 1 : index
    %25 = memref.load %arg2[%c2_14, %c1_15] : memref<10x2xf32, #tpu.memory_space<smem>>
    %26 = vector.broadcast %25 : f32 to vector<8x1024xf32>
    %27 = arith.mulf %26, %3 : vector<8x1024xf32>
    %28 = arith.addf %24, %27 : vector<8x1024xf32>
    %cst_16 = arith.constant 0.000000e+00 : f32
    %29 = vector.broadcast %cst_16 : f32 to vector<8x1024xf32>
    %30 = arith.maximumf %28, %29 : vector<8x1024xf32>
    %c3 = arith.constant 3 : index
    %c0_17 = arith.constant 0 : index
    %31 = memref.load %arg2[%c3, %c0_17] : memref<10x2xf32, #tpu.memory_space<smem>>
    %32 = vector.broadcast %31 : f32 to vector<8x1024xf32>
    %33 = arith.mulf %32, %1 : vector<8x1024xf32>
    %c3_18 = arith.constant 3 : index
    %c1_19 = arith.constant 1 : index
    %34 = memref.load %arg2[%c3_18, %c1_19] : memref<10x2xf32, #tpu.memory_space<smem>>
    %35 = vector.broadcast %34 : f32 to vector<8x1024xf32>
    %36 = arith.mulf %35, %3 : vector<8x1024xf32>
    %37 = arith.addf %33, %36 : vector<8x1024xf32>
    %cst_20 = arith.constant 0.000000e+00 : f32
    %38 = vector.broadcast %cst_20 : f32 to vector<8x1024xf32>
    %39 = arith.maximumf %37, %38 : vector<8x1024xf32>
    %c4 = arith.constant 4 : index
    %c0_21 = arith.constant 0 : index
    %40 = memref.load %arg2[%c4, %c0_21] : memref<10x2xf32, #tpu.memory_space<smem>>
    %41 = vector.broadcast %40 : f32 to vector<8x1024xf32>
    %42 = arith.mulf %41, %1 : vector<8x1024xf32>
    %c4_22 = arith.constant 4 : index
    %c1_23 = arith.constant 1 : index
    %43 = memref.load %arg2[%c4_22, %c1_23] : memref<10x2xf32, #tpu.memory_space<smem>>
    %44 = vector.broadcast %43 : f32 to vector<8x1024xf32>
    %45 = arith.mulf %44, %3 : vector<8x1024xf32>
    %46 = arith.addf %42, %45 : vector<8x1024xf32>
    %cst_24 = arith.constant 0.000000e+00 : f32
    %47 = vector.broadcast %cst_24 : f32 to vector<8x1024xf32>
    %48 = arith.maximumf %46, %47 : vector<8x1024xf32>
    %c5 = arith.constant 5 : index
    %c0_25 = arith.constant 0 : index
    %49 = memref.load %arg2[%c5, %c0_25] : memref<10x2xf32, #tpu.memory_space<smem>>
    %50 = vector.broadcast %49 : f32 to vector<8x1024xf32>
    %51 = arith.mulf %50, %1 : vector<8x1024xf32>
    %c5_26 = arith.constant 5 : index
    %c1_27 = arith.constant 1 : index
    %52 = memref.load %arg2[%c5_26, %c1_27] : memref<10x2xf32, #tpu.memory_space<smem>>
    %53 = vector.broadcast %52 : f32 to vector<8x1024xf32>
    %54 = arith.mulf %53, %3 : vector<8x1024xf32>
    %55 = arith.addf %51, %54 : vector<8x1024xf32>
    %cst_28 = arith.constant 0.000000e+00 : f32
    %56 = vector.broadcast %cst_28 : f32 to vector<8x1024xf32>
    %57 = arith.maximumf %55, %56 : vector<8x1024xf32>
    %c6 = arith.constant 6 : index
    %c0_29 = arith.constant 0 : index
    %58 = memref.load %arg2[%c6, %c0_29] : memref<10x2xf32, #tpu.memory_space<smem>>
    %59 = vector.broadcast %58 : f32 to vector<8x1024xf32>
    %60 = arith.mulf %59, %1 : vector<8x1024xf32>
    %c6_30 = arith.constant 6 : index
    %c1_31 = arith.constant 1 : index
    %61 = memref.load %arg2[%c6_30, %c1_31] : memref<10x2xf32, #tpu.memory_space<smem>>
    %62 = vector.broadcast %61 : f32 to vector<8x1024xf32>
    %63 = arith.mulf %62, %3 : vector<8x1024xf32>
    %64 = arith.addf %60, %63 : vector<8x1024xf32>
    %cst_32 = arith.constant 0.000000e+00 : f32
    %65 = vector.broadcast %cst_32 : f32 to vector<8x1024xf32>
    %66 = arith.maximumf %64, %65 : vector<8x1024xf32>
    %c7 = arith.constant 7 : index
    %c0_33 = arith.constant 0 : index
    %67 = memref.load %arg2[%c7, %c0_33] : memref<10x2xf32, #tpu.memory_space<smem>>
    %68 = vector.broadcast %67 : f32 to vector<8x1024xf32>
    %69 = arith.mulf %68, %1 : vector<8x1024xf32>
    %c7_34 = arith.constant 7 : index
    %c1_35 = arith.constant 1 : index
    %70 = memref.load %arg2[%c7_34, %c1_35] : memref<10x2xf32, #tpu.memory_space<smem>>
    %71 = vector.broadcast %70 : f32 to vector<8x1024xf32>
    %72 = arith.mulf %71, %3 : vector<8x1024xf32>
    %73 = arith.addf %69, %72 : vector<8x1024xf32>
    %cst_36 = arith.constant 0.000000e+00 : f32
    %74 = vector.broadcast %cst_36 : f32 to vector<8x1024xf32>
    %75 = arith.maximumf %73, %74 : vector<8x1024xf32>
    %c8 = arith.constant 8 : index
    %c0_37 = arith.constant 0 : index
    %76 = memref.load %arg2[%c8, %c0_37] : memref<10x2xf32, #tpu.memory_space<smem>>
    %77 = vector.broadcast %76 : f32 to vector<8x1024xf32>
    %78 = arith.mulf %77, %1 : vector<8x1024xf32>
    %c8_38 = arith.constant 8 : index
    %c1_39 = arith.constant 1 : index
    %79 = memref.load %arg2[%c8_38, %c1_39] : memref<10x2xf32, #tpu.memory_space<smem>>
    %80 = vector.broadcast %79 : f32 to vector<8x1024xf32>
    %81 = arith.mulf %80, %3 : vector<8x1024xf32>
    %82 = arith.addf %78, %81 : vector<8x1024xf32>
    %cst_40 = arith.constant 0.000000e+00 : f32
    %83 = vector.broadcast %cst_40 : f32 to vector<8x1024xf32>
    %84 = arith.maximumf %82, %83 : vector<8x1024xf32>
    %c9 = arith.constant 9 : index
    %c0_41 = arith.constant 0 : index
    %85 = memref.load %arg2[%c9, %c0_41] : memref<10x2xf32, #tpu.memory_space<smem>>
    %86 = vector.broadcast %85 : f32 to vector<8x1024xf32>
    %87 = arith.mulf %86, %1 : vector<8x1024xf32>
    %c9_42 = arith.constant 9 : index
    %c1_43 = arith.constant 1 : index
    %88 = memref.load %arg2[%c9_42, %c1_43] : memref<10x2xf32, #tpu.memory_space<smem>>
    %89 = vector.broadcast %88 : f32 to vector<8x1024xf32>
    %90 = arith.mulf %89, %3 : vector<8x1024xf32>
    %91 = arith.addf %87, %90 : vector<8x1024xf32>
    %cst_44 = arith.constant 0.000000e+00 : f32
    %92 = vector.broadcast %cst_44 : f32 to vector<8x1024xf32>
    %93 = arith.maximumf %91, %92 : vector<8x1024xf32>
    %c0_45 = arith.constant 0 : index
    %c0_46 = arith.constant 0 : index
    %94 = memref.load %arg3[%c0_45, %c0_46] : memref<4x10xf32, #tpu.memory_space<smem>>
    %95 = vector.broadcast %94 : f32 to vector<8x1024xf32>
    %96 = arith.mulf %95, %12 : vector<8x1024xf32>
    %c0_47 = arith.constant 0 : index
    %c1_48 = arith.constant 1 : index
    %97 = memref.load %arg3[%c0_47, %c1_48] : memref<4x10xf32, #tpu.memory_space<smem>>
    %98 = vector.broadcast %97 : f32 to vector<8x1024xf32>
    %99 = arith.mulf %98, %21 : vector<8x1024xf32>
    %100 = arith.addf %96, %99 : vector<8x1024xf32>
    %c0_49 = arith.constant 0 : index
    %c2_50 = arith.constant 2 : index
    %101 = memref.load %arg3[%c0_49, %c2_50] : memref<4x10xf32, #tpu.memory_space<smem>>
    %102 = vector.broadcast %101 : f32 to vector<8x1024xf32>
    %103 = arith.mulf %102, %30 : vector<8x1024xf32>
    %104 = arith.addf %100, %103 : vector<8x1024xf32>
    %c0_51 = arith.constant 0 : index
    %c3_52 = arith.constant 3 : index
    %105 = memref.load %arg3[%c0_51, %c3_52] : memref<4x10xf32, #tpu.memory_space<smem>>
    %106 = vector.broadcast %105 : f32 to vector<8x1024xf32>
    %107 = arith.mulf %106, %39 : vector<8x1024xf32>
    %108 = arith.addf %104, %107 : vector<8x1024xf32>
    %c0_53 = arith.constant 0 : index
    %c4_54 = arith.constant 4 : index
    %109 = memref.load %arg3[%c0_53, %c4_54] : memref<4x10xf32, #tpu.memory_space<smem>>
    %110 = vector.broadcast %109 : f32 to vector<8x1024xf32>
    %111 = arith.mulf %110, %48 : vector<8x1024xf32>
    %112 = arith.addf %108, %111 : vector<8x1024xf32>
    %c0_55 = arith.constant 0 : index
    %c5_56 = arith.constant 5 : index
    %113 = memref.load %arg3[%c0_55, %c5_56] : memref<4x10xf32, #tpu.memory_space<smem>>
    %114 = vector.broadcast %113 : f32 to vector<8x1024xf32>
    %115 = arith.mulf %114, %57 : vector<8x1024xf32>
    %116 = arith.addf %112, %115 : vector<8x1024xf32>
    %c0_57 = arith.constant 0 : index
    %c6_58 = arith.constant 6 : index
    %117 = memref.load %arg3[%c0_57, %c6_58] : memref<4x10xf32, #tpu.memory_space<smem>>
    %118 = vector.broadcast %117 : f32 to vector<8x1024xf32>
    %119 = arith.mulf %118, %66 : vector<8x1024xf32>
    %120 = arith.addf %116, %119 : vector<8x1024xf32>
    %c0_59 = arith.constant 0 : index
    %c7_60 = arith.constant 7 : index
    %121 = memref.load %arg3[%c0_59, %c7_60] : memref<4x10xf32, #tpu.memory_space<smem>>
    %122 = vector.broadcast %121 : f32 to vector<8x1024xf32>
    %123 = arith.mulf %122, %75 : vector<8x1024xf32>
    %124 = arith.addf %120, %123 : vector<8x1024xf32>
    %c0_61 = arith.constant 0 : index
    %c8_62 = arith.constant 8 : index
    %125 = memref.load %arg3[%c0_61, %c8_62] : memref<4x10xf32, #tpu.memory_space<smem>>
    %126 = vector.broadcast %125 : f32 to vector<8x1024xf32>
    %127 = arith.mulf %126, %84 : vector<8x1024xf32>
    %128 = arith.addf %124, %127 : vector<8x1024xf32>
    %c0_63 = arith.constant 0 : index
    %c9_64 = arith.constant 9 : index
    %129 = memref.load %arg3[%c0_63, %c9_64] : memref<4x10xf32, #tpu.memory_space<smem>>
    %130 = vector.broadcast %129 : f32 to vector<8x1024xf32>
    %131 = arith.mulf %130, %93 : vector<8x1024xf32>
    %132 = arith.addf %128, %131 : vector<8x1024xf32>
    %cst_65 = arith.constant 0.000000e+00 : f32
    %133 = vector.broadcast %cst_65 : f32 to vector<8x1024xf32>
    %134 = arith.maximumf %132, %133 : vector<8x1024xf32>
    %c1_66 = arith.constant 1 : index
    %c0_67 = arith.constant 0 : index
    %135 = memref.load %arg3[%c1_66, %c0_67] : memref<4x10xf32, #tpu.memory_space<smem>>
    %136 = vector.broadcast %135 : f32 to vector<8x1024xf32>
    %137 = arith.mulf %136, %12 : vector<8x1024xf32>
    %c1_68 = arith.constant 1 : index
    %c1_69 = arith.constant 1 : index
    %138 = memref.load %arg3[%c1_68, %c1_69] : memref<4x10xf32, #tpu.memory_space<smem>>
    %139 = vector.broadcast %138 : f32 to vector<8x1024xf32>
    %140 = arith.mulf %139, %21 : vector<8x1024xf32>
    %141 = arith.addf %137, %140 : vector<8x1024xf32>
    %c1_70 = arith.constant 1 : index
    %c2_71 = arith.constant 2 : index
    %142 = memref.load %arg3[%c1_70, %c2_71] : memref<4x10xf32, #tpu.memory_space<smem>>
    %143 = vector.broadcast %142 : f32 to vector<8x1024xf32>
    %144 = arith.mulf %143, %30 : vector<8x1024xf32>
    %145 = arith.addf %141, %144 : vector<8x1024xf32>
    %c1_72 = arith.constant 1 : index
    %c3_73 = arith.constant 3 : index
    %146 = memref.load %arg3[%c1_72, %c3_73] : memref<4x10xf32, #tpu.memory_space<smem>>
    %147 = vector.broadcast %146 : f32 to vector<8x1024xf32>
    %148 = arith.mulf %147, %39 : vector<8x1024xf32>
    %149 = arith.addf %145, %148 : vector<8x1024xf32>
    %c1_74 = arith.constant 1 : index
    %c4_75 = arith.constant 4 : index
    %150 = memref.load %arg3[%c1_74, %c4_75] : memref<4x10xf32, #tpu.memory_space<smem>>
    %151 = vector.broadcast %150 : f32 to vector<8x1024xf32>
    %152 = arith.mulf %151, %48 : vector<8x1024xf32>
    %153 = arith.addf %149, %152 : vector<8x1024xf32>
    %c1_76 = arith.constant 1 : index
    %c5_77 = arith.constant 5 : index
    %154 = memref.load %arg3[%c1_76, %c5_77] : memref<4x10xf32, #tpu.memory_space<smem>>
    %155 = vector.broadcast %154 : f32 to vector<8x1024xf32>
    %156 = arith.mulf %155, %57 : vector<8x1024xf32>
    %157 = arith.addf %153, %156 : vector<8x1024xf32>
    %c1_78 = arith.constant 1 : index
    %c6_79 = arith.constant 6 : index
    %158 = memref.load %arg3[%c1_78, %c6_79] : memref<4x10xf32, #tpu.memory_space<smem>>
    %159 = vector.broadcast %158 : f32 to vector<8x1024xf32>
    %160 = arith.mulf %159, %66 : vector<8x1024xf32>
    %161 = arith.addf %157, %160 : vector<8x1024xf32>
    %c1_80 = arith.constant 1 : index
    %c7_81 = arith.constant 7 : index
    %162 = memref.load %arg3[%c1_80, %c7_81] : memref<4x10xf32, #tpu.memory_space<smem>>
    %163 = vector.broadcast %162 : f32 to vector<8x1024xf32>
    %164 = arith.mulf %163, %75 : vector<8x1024xf32>
    %165 = arith.addf %161, %164 : vector<8x1024xf32>
    %c1_82 = arith.constant 1 : index
    %c8_83 = arith.constant 8 : index
    %166 = memref.load %arg3[%c1_82, %c8_83] : memref<4x10xf32, #tpu.memory_space<smem>>
    %167 = vector.broadcast %166 : f32 to vector<8x1024xf32>
    %168 = arith.mulf %167, %84 : vector<8x1024xf32>
    %169 = arith.addf %165, %168 : vector<8x1024xf32>
    %c1_84 = arith.constant 1 : index
    %c9_85 = arith.constant 9 : index
    %170 = memref.load %arg3[%c1_84, %c9_85] : memref<4x10xf32, #tpu.memory_space<smem>>
    %171 = vector.broadcast %170 : f32 to vector<8x1024xf32>
    %172 = arith.mulf %171, %93 : vector<8x1024xf32>
    %173 = arith.addf %169, %172 : vector<8x1024xf32>
    %cst_86 = arith.constant 0.000000e+00 : f32
    %174 = vector.broadcast %cst_86 : f32 to vector<8x1024xf32>
    %175 = arith.maximumf %173, %174 : vector<8x1024xf32>
    %c2_87 = arith.constant 2 : index
    %c0_88 = arith.constant 0 : index
    %176 = memref.load %arg3[%c2_87, %c0_88] : memref<4x10xf32, #tpu.memory_space<smem>>
    %177 = vector.broadcast %176 : f32 to vector<8x1024xf32>
    %178 = arith.mulf %177, %12 : vector<8x1024xf32>
    %c2_89 = arith.constant 2 : index
    %c1_90 = arith.constant 1 : index
    %179 = memref.load %arg3[%c2_89, %c1_90] : memref<4x10xf32, #tpu.memory_space<smem>>
    %180 = vector.broadcast %179 : f32 to vector<8x1024xf32>
    %181 = arith.mulf %180, %21 : vector<8x1024xf32>
    %182 = arith.addf %178, %181 : vector<8x1024xf32>
    %c2_91 = arith.constant 2 : index
    %c2_92 = arith.constant 2 : index
    %183 = memref.load %arg3[%c2_91, %c2_92] : memref<4x10xf32, #tpu.memory_space<smem>>
    %184 = vector.broadcast %183 : f32 to vector<8x1024xf32>
    %185 = arith.mulf %184, %30 : vector<8x1024xf32>
    %186 = arith.addf %182, %185 : vector<8x1024xf32>
    %c2_93 = arith.constant 2 : index
    %c3_94 = arith.constant 3 : index
    %187 = memref.load %arg3[%c2_93, %c3_94] : memref<4x10xf32, #tpu.memory_space<smem>>
    %188 = vector.broadcast %187 : f32 to vector<8x1024xf32>
    %189 = arith.mulf %188, %39 : vector<8x1024xf32>
    %190 = arith.addf %186, %189 : vector<8x1024xf32>
    %c2_95 = arith.constant 2 : index
    %c4_96 = arith.constant 4 : index
    %191 = memref.load %arg3[%c2_95, %c4_96] : memref<4x10xf32, #tpu.memory_space<smem>>
    %192 = vector.broadcast %191 : f32 to vector<8x1024xf32>
    %193 = arith.mulf %192, %48 : vector<8x1024xf32>
    %194 = arith.addf %190, %193 : vector<8x1024xf32>
    %c2_97 = arith.constant 2 : index
    %c5_98 = arith.constant 5 : index
    %195 = memref.load %arg3[%c2_97, %c5_98] : memref<4x10xf32, #tpu.memory_space<smem>>
    %196 = vector.broadcast %195 : f32 to vector<8x1024xf32>
    %197 = arith.mulf %196, %57 : vector<8x1024xf32>
    %198 = arith.addf %194, %197 : vector<8x1024xf32>
    %c2_99 = arith.constant 2 : index
    %c6_100 = arith.constant 6 : index
    %199 = memref.load %arg3[%c2_99, %c6_100] : memref<4x10xf32, #tpu.memory_space<smem>>
    %200 = vector.broadcast %199 : f32 to vector<8x1024xf32>
    %201 = arith.mulf %200, %66 : vector<8x1024xf32>
    %202 = arith.addf %198, %201 : vector<8x1024xf32>
    %c2_101 = arith.constant 2 : index
    %c7_102 = arith.constant 7 : index
    %203 = memref.load %arg3[%c2_101, %c7_102] : memref<4x10xf32, #tpu.memory_space<smem>>
    %204 = vector.broadcast %203 : f32 to vector<8x1024xf32>
    %205 = arith.mulf %204, %75 : vector<8x1024xf32>
    %206 = arith.addf %202, %205 : vector<8x1024xf32>
    %c2_103 = arith.constant 2 : index
    %c8_104 = arith.constant 8 : index
    %207 = memref.load %arg3[%c2_103, %c8_104] : memref<4x10xf32, #tpu.memory_space<smem>>
    %208 = vector.broadcast %207 : f32 to vector<8x1024xf32>
    %209 = arith.mulf %208, %84 : vector<8x1024xf32>
    %210 = arith.addf %206, %209 : vector<8x1024xf32>
    %c2_105 = arith.constant 2 : index
    %c9_106 = arith.constant 9 : index
    %211 = memref.load %arg3[%c2_105, %c9_106] : memref<4x10xf32, #tpu.memory_space<smem>>
    %212 = vector.broadcast %211 : f32 to vector<8x1024xf32>
    %213 = arith.mulf %212, %93 : vector<8x1024xf32>
    %214 = arith.addf %210, %213 : vector<8x1024xf32>
    %cst_107 = arith.constant 0.000000e+00 : f32
    %215 = vector.broadcast %cst_107 : f32 to vector<8x1024xf32>
    %216 = arith.maximumf %214, %215 : vector<8x1024xf32>
    %c3_108 = arith.constant 3 : index
    %c0_109 = arith.constant 0 : index
    %217 = memref.load %arg3[%c3_108, %c0_109] : memref<4x10xf32, #tpu.memory_space<smem>>
    %218 = vector.broadcast %217 : f32 to vector<8x1024xf32>
    %219 = arith.mulf %218, %12 : vector<8x1024xf32>
    %c3_110 = arith.constant 3 : index
    %c1_111 = arith.constant 1 : index
    %220 = memref.load %arg3[%c3_110, %c1_111] : memref<4x10xf32, #tpu.memory_space<smem>>
    %221 = vector.broadcast %220 : f32 to vector<8x1024xf32>
    %222 = arith.mulf %221, %21 : vector<8x1024xf32>
    %223 = arith.addf %219, %222 : vector<8x1024xf32>
    %c3_112 = arith.constant 3 : index
    %c2_113 = arith.constant 2 : index
    %224 = memref.load %arg3[%c3_112, %c2_113] : memref<4x10xf32, #tpu.memory_space<smem>>
    %225 = vector.broadcast %224 : f32 to vector<8x1024xf32>
    %226 = arith.mulf %225, %30 : vector<8x1024xf32>
    %227 = arith.addf %223, %226 : vector<8x1024xf32>
    %c3_114 = arith.constant 3 : index
    %c3_115 = arith.constant 3 : index
    %228 = memref.load %arg3[%c3_114, %c3_115] : memref<4x10xf32, #tpu.memory_space<smem>>
    %229 = vector.broadcast %228 : f32 to vector<8x1024xf32>
    %230 = arith.mulf %229, %39 : vector<8x1024xf32>
    %231 = arith.addf %227, %230 : vector<8x1024xf32>
    %c3_116 = arith.constant 3 : index
    %c4_117 = arith.constant 4 : index
    %232 = memref.load %arg3[%c3_116, %c4_117] : memref<4x10xf32, #tpu.memory_space<smem>>
    %233 = vector.broadcast %232 : f32 to vector<8x1024xf32>
    %234 = arith.mulf %233, %48 : vector<8x1024xf32>
    %235 = arith.addf %231, %234 : vector<8x1024xf32>
    %c3_118 = arith.constant 3 : index
    %c5_119 = arith.constant 5 : index
    %236 = memref.load %arg3[%c3_118, %c5_119] : memref<4x10xf32, #tpu.memory_space<smem>>
    %237 = vector.broadcast %236 : f32 to vector<8x1024xf32>
    %238 = arith.mulf %237, %57 : vector<8x1024xf32>
    %239 = arith.addf %235, %238 : vector<8x1024xf32>
    %c3_120 = arith.constant 3 : index
    %c6_121 = arith.constant 6 : index
    %240 = memref.load %arg3[%c3_120, %c6_121] : memref<4x10xf32, #tpu.memory_space<smem>>
    %241 = vector.broadcast %240 : f32 to vector<8x1024xf32>
    %242 = arith.mulf %241, %66 : vector<8x1024xf32>
    %243 = arith.addf %239, %242 : vector<8x1024xf32>
    %c3_122 = arith.constant 3 : index
    %c7_123 = arith.constant 7 : index
    %244 = memref.load %arg3[%c3_122, %c7_123] : memref<4x10xf32, #tpu.memory_space<smem>>
    %245 = vector.broadcast %244 : f32 to vector<8x1024xf32>
    %246 = arith.mulf %245, %75 : vector<8x1024xf32>
    %247 = arith.addf %243, %246 : vector<8x1024xf32>
    %c3_124 = arith.constant 3 : index
    %c8_125 = arith.constant 8 : index
    %248 = memref.load %arg3[%c3_124, %c8_125] : memref<4x10xf32, #tpu.memory_space<smem>>
    %249 = vector.broadcast %248 : f32 to vector<8x1024xf32>
    %250 = arith.mulf %249, %84 : vector<8x1024xf32>
    %251 = arith.addf %247, %250 : vector<8x1024xf32>
    %c3_126 = arith.constant 3 : index
    %c9_127 = arith.constant 9 : index
    %252 = memref.load %arg3[%c3_126, %c9_127] : memref<4x10xf32, #tpu.memory_space<smem>>
    %253 = vector.broadcast %252 : f32 to vector<8x1024xf32>
    %254 = arith.mulf %253, %93 : vector<8x1024xf32>
    %255 = arith.addf %251, %254 : vector<8x1024xf32>
    %cst_128 = arith.constant 0.000000e+00 : f32
    %256 = vector.broadcast %cst_128 : f32 to vector<8x1024xf32>
    %257 = arith.maximumf %255, %256 : vector<8x1024xf32>
    %c0_129 = arith.constant 0 : index
    %c0_130 = arith.constant 0 : index
    %258 = memref.load %arg4[%c0_129, %c0_130] : memref<4x4xf32, #tpu.memory_space<smem>>
    %259 = vector.broadcast %258 : f32 to vector<8x1024xf32>
    %260 = arith.mulf %259, %134 : vector<8x1024xf32>
    %c0_131 = arith.constant 0 : index
    %c1_132 = arith.constant 1 : index
    %261 = memref.load %arg4[%c0_131, %c1_132] : memref<4x4xf32, #tpu.memory_space<smem>>
    %262 = vector.broadcast %261 : f32 to vector<8x1024xf32>
    %263 = arith.mulf %262, %175 : vector<8x1024xf32>
    %264 = arith.addf %260, %263 : vector<8x1024xf32>
    %c0_133 = arith.constant 0 : index
    %c2_134 = arith.constant 2 : index
    %265 = memref.load %arg4[%c0_133, %c2_134] : memref<4x4xf32, #tpu.memory_space<smem>>
    %266 = vector.broadcast %265 : f32 to vector<8x1024xf32>
    %267 = arith.mulf %266, %216 : vector<8x1024xf32>
    %268 = arith.addf %264, %267 : vector<8x1024xf32>
    %c0_135 = arith.constant 0 : index
    %c3_136 = arith.constant 3 : index
    %269 = memref.load %arg4[%c0_135, %c3_136] : memref<4x4xf32, #tpu.memory_space<smem>>
    %270 = vector.broadcast %269 : f32 to vector<8x1024xf32>
    %271 = arith.mulf %270, %257 : vector<8x1024xf32>
    %272 = arith.addf %268, %271 : vector<8x1024xf32>
    %c1_137 = arith.constant 1 : index
    %c0_138 = arith.constant 0 : index
    %273 = memref.load %arg4[%c1_137, %c0_138] : memref<4x4xf32, #tpu.memory_space<smem>>
    %274 = vector.broadcast %273 : f32 to vector<8x1024xf32>
    %275 = arith.mulf %274, %134 : vector<8x1024xf32>
    %c1_139 = arith.constant 1 : index
    %c1_140 = arith.constant 1 : index
    %276 = memref.load %arg4[%c1_139, %c1_140] : memref<4x4xf32, #tpu.memory_space<smem>>
    %277 = vector.broadcast %276 : f32 to vector<8x1024xf32>
    %278 = arith.mulf %277, %175 : vector<8x1024xf32>
    %279 = arith.addf %275, %278 : vector<8x1024xf32>
    %c1_141 = arith.constant 1 : index
    %c2_142 = arith.constant 2 : index
    %280 = memref.load %arg4[%c1_141, %c2_142] : memref<4x4xf32, #tpu.memory_space<smem>>
    %281 = vector.broadcast %280 : f32 to vector<8x1024xf32>
    %282 = arith.mulf %281, %216 : vector<8x1024xf32>
    %283 = arith.addf %279, %282 : vector<8x1024xf32>
    %c1_143 = arith.constant 1 : index
    %c3_144 = arith.constant 3 : index
    %284 = memref.load %arg4[%c1_143, %c3_144] : memref<4x4xf32, #tpu.memory_space<smem>>
    %285 = vector.broadcast %284 : f32 to vector<8x1024xf32>
    %286 = arith.mulf %285, %257 : vector<8x1024xf32>
    %287 = arith.addf %283, %286 : vector<8x1024xf32>
    %c2_145 = arith.constant 2 : index
    %c0_146 = arith.constant 0 : index
    %288 = memref.load %arg4[%c2_145, %c0_146] : memref<4x4xf32, #tpu.memory_space<smem>>
    %289 = vector.broadcast %288 : f32 to vector<8x1024xf32>
    %290 = arith.mulf %289, %134 : vector<8x1024xf32>
    %c2_147 = arith.constant 2 : index
    %c1_148 = arith.constant 1 : index
    %291 = memref.load %arg4[%c2_147, %c1_148] : memref<4x4xf32, #tpu.memory_space<smem>>
    %292 = vector.broadcast %291 : f32 to vector<8x1024xf32>
    %293 = arith.mulf %292, %175 : vector<8x1024xf32>
    %294 = arith.addf %290, %293 : vector<8x1024xf32>
    %c2_149 = arith.constant 2 : index
    %c2_150 = arith.constant 2 : index
    %295 = memref.load %arg4[%c2_149, %c2_150] : memref<4x4xf32, #tpu.memory_space<smem>>
    %296 = vector.broadcast %295 : f32 to vector<8x1024xf32>
    %297 = arith.mulf %296, %216 : vector<8x1024xf32>
    %298 = arith.addf %294, %297 : vector<8x1024xf32>
    %c2_151 = arith.constant 2 : index
    %c3_152 = arith.constant 3 : index
    %299 = memref.load %arg4[%c2_151, %c3_152] : memref<4x4xf32, #tpu.memory_space<smem>>
    %300 = vector.broadcast %299 : f32 to vector<8x1024xf32>
    %301 = arith.mulf %300, %257 : vector<8x1024xf32>
    %302 = arith.addf %298, %301 : vector<8x1024xf32>
    %c3_153 = arith.constant 3 : index
    %c0_154 = arith.constant 0 : index
    %303 = memref.load %arg4[%c3_153, %c0_154] : memref<4x4xf32, #tpu.memory_space<smem>>
    %304 = vector.broadcast %303 : f32 to vector<8x1024xf32>
    %305 = arith.mulf %304, %134 : vector<8x1024xf32>
    %c3_155 = arith.constant 3 : index
    %c1_156 = arith.constant 1 : index
    %306 = memref.load %arg4[%c3_155, %c1_156] : memref<4x4xf32, #tpu.memory_space<smem>>
    %307 = vector.broadcast %306 : f32 to vector<8x1024xf32>
    %308 = arith.mulf %307, %175 : vector<8x1024xf32>
    %309 = arith.addf %305, %308 : vector<8x1024xf32>
    %c3_157 = arith.constant 3 : index
    %c2_158 = arith.constant 2 : index
    %310 = memref.load %arg4[%c3_157, %c2_158] : memref<4x4xf32, #tpu.memory_space<smem>>
    %311 = vector.broadcast %310 : f32 to vector<8x1024xf32>
    %312 = arith.mulf %311, %216 : vector<8x1024xf32>
    %313 = arith.addf %309, %312 : vector<8x1024xf32>
    %c3_159 = arith.constant 3 : index
    %c3_160 = arith.constant 3 : index
    %314 = memref.load %arg4[%c3_159, %c3_160] : memref<4x4xf32, #tpu.memory_space<smem>>
    %315 = vector.broadcast %314 : f32 to vector<8x1024xf32>
    %316 = arith.mulf %315, %257 : vector<8x1024xf32>
    %317 = arith.addf %313, %316 : vector<8x1024xf32>
    %318 = arith.maximumf %272, %287 : vector<8x1024xf32>
    %319 = arith.maximumf %318, %302 : vector<8x1024xf32>
    %320 = arith.maximumf %319, %317 : vector<8x1024xf32>
    %321 = arith.subf %272, %320 : vector<8x1024xf32>
    %322 = math.exp %321 : vector<8x1024xf32>
    %323 = arith.subf %287, %320 : vector<8x1024xf32>
    %324 = math.exp %323 : vector<8x1024xf32>
    %325 = arith.subf %302, %320 : vector<8x1024xf32>
    %326 = math.exp %325 : vector<8x1024xf32>
    %327 = arith.subf %317, %320 : vector<8x1024xf32>
    %328 = math.exp %327 : vector<8x1024xf32>
    %329 = arith.addf %322, %324 : vector<8x1024xf32>
    %330 = arith.addf %329, %326 : vector<8x1024xf32>
    %331 = arith.addf %330, %328 : vector<8x1024xf32>
    %332 = tpu.reciprocal %331 {approx = true} : vector<8x1024xf32> -> vector<8x1024xf32>
    %333 = arith.mulf %331, %332 : vector<8x1024xf32>
    %cst_161 = arith.constant 2.000000e+00 : f32
    %334 = vector.broadcast %cst_161 : f32 to vector<8x1024xf32>
    %335 = arith.subf %334, %333 : vector<8x1024xf32>
    %336 = arith.mulf %332, %335 : vector<8x1024xf32>
    %337 = arith.mulf %322, %336 : vector<8x1024xf32>
    %c0_162 = arith.constant 0 : index
    %c0_163 = arith.constant 0 : index
    %c0_164 = arith.constant 0 : index
    %338 = vector.load %arg5[%c0_162, %c0_163, %c0_164] : memref<4x8x1024xf32, #tpu.memory_space<vmem>>, vector<1x8x1024xf32>
    %339 = vector.shape_cast %338 : vector<1x8x1024xf32> to vector<8x1024xf32>
    %340 = vector.shape_cast %337 : vector<8x1024xf32> to vector<1x8x1024xf32>
    tpu.vector_store %arg5[%c0_162, %c0_163, %c0_164], %340 {strides = array<i32>} : memref<4x8x1024xf32, #tpu.memory_space<vmem>>, vector<1x8x1024xf32>,
    %341 = arith.mulf %324, %336 : vector<8x1024xf32>
    %c1_165 = arith.constant 1 : index
    %c0_166 = arith.constant 0 : index
    %c0_167 = arith.constant 0 : index
    %342 = vector.load %arg5[%c1_165, %c0_166, %c0_167] : memref<4x8x1024xf32, #tpu.memory_space<vmem>>, vector<1x8x1024xf32>
    %343 = vector.shape_cast %342 : vector<1x8x1024xf32> to vector<8x1024xf32>
    %344 = vector.shape_cast %341 : vector<8x1024xf32> to vector<1x8x1024xf32>
    tpu.vector_store %arg5[%c1_165, %c0_166, %c0_167], %344 {strides = array<i32>} : memref<4x8x1024xf32, #tpu.memory_space<vmem>>, vector<1x8x1024xf32>,
    %345 = arith.mulf %326, %336 : vector<8x1024xf32>
    %c2_168 = arith.constant 2 : index
    %c0_169 = arith.constant 0 : index
    %c0_170 = arith.constant 0 : index
    %346 = vector.load %arg5[%c2_168, %c0_169, %c0_170] : memref<4x8x1024xf32, #tpu.memory_space<vmem>>, vector<1x8x1024xf32>
    %347 = vector.shape_cast %346 : vector<1x8x1024xf32> to vector<8x1024xf32>
    %348 = vector.shape_cast %345 : vector<8x1024xf32> to vector<1x8x1024xf32>
    tpu.vector_store %arg5[%c2_168, %c0_169, %c0_170], %348 {strides = array<i32>} : memref<4x8x1024xf32, #tpu.memory_space<vmem>>, vector<1x8x1024xf32>,
    %349 = arith.mulf %328, %336 : vector<8x1024xf32>
    %c3_171 = arith.constant 3 : index
    %c0_172 = arith.constant 0 : index
    %c0_173 = arith.constant 0 : index
    %350 = vector.load %arg5[%c3_171, %c0_172, %c0_173] : memref<4x8x1024xf32, #tpu.memory_space<vmem>>, vector<1x8x1024xf32>
    %351 = vector.shape_cast %350 : vector<1x8x1024xf32> to vector<8x1024xf32>
    %352 = vector.shape_cast %349 : vector<8x1024xf32> to vector<1x8x1024xf32>
    tpu.vector_store %arg5[%c3_171, %c0_172, %c0_173], %352 {strides = array<i32>} : memref<4x8x1024xf32, #tpu.memory_space<vmem>>, vector<1x8x1024xf32>,
    return
  }
  func.func @transform_0(%arg0: i32) -> (i32, i32, i32) {
    %c0_i32 = arith.constant 0 : i32
    %c0_i32_0 = arith.constant 0 : i32
    %c0_i32_1 = arith.constant 0 : i32
    return %c0_i32, %c0_i32_0, %arg0 : i32, i32, i32
  }
  func.func @transform_1(%arg0: i32) -> (i32, i32) {
    %c0_i32 = arith.constant 0 : i32
    %c0_i32_0 = arith.constant 0 : i32
    %c0_i32_1 = arith.constant 0 : i32
    return %c0_i32, %c0_i32_0 : i32, i32
  }
  func.func @transform_2(%arg0: i32) -> (i32, i32) {
    %c0_i32 = arith.constant 0 : i32
    %c0_i32_0 = arith.constant 0 : i32
    %c0_i32_1 = arith.constant 0 : i32
    return %c0_i32, %c0_i32_0 : i32, i32
  }
  func.func @transform_3(%arg0: i32) -> (i32, i32) {
    %c0_i32 = arith.constant 0 : i32
    %c0_i32_0 = arith.constant 0 : i32
    %c0_i32_1 = arith.constant 0 : i32
    return %c0_i32, %c0_i32_0 : i32, i32
  }
  func.func @transform_4(%arg0: i32) -> (i32, i32, i32) {
    %c0_i32 = arith.constant 0 : i32
    %c0_i32_0 = arith.constant 0 : i32
    %c0_i32_1 = arith.constant 0 : i32
    return %c0_i32, %c0_i32_0, %arg0 : i32, i32, i32
  }
}

</mosaic_0001>

<bundles_post_ra>
// kernel: _forward_fmajor_impl.1
= control target key start
LH: loop header
LB: loop body
LE: loop exit
PB: predicated region body
PF: predicated region fallthrough
CT: control target
= control target key end

     0   :  { %9 = vsyncpa [#allocation4], 0  ;;  %s5995_s0 = inlined_call_operand.vmem [shape: f32[2,8,1152], index: 0, kind: input, shape index: {}]   ;;  %s5996_s1 = inlined_call_operand.vmem [shape: f32[10,2], index: 1, kind: input, shape index: {}]   ;;  %s5997_s2 = inlined_call_operand.vmem [shape: f32[4,10], index: 2, kind: input, shape index: {}]   ;;  %s5998_s3 = inlined_call_operand.vmem [shape: f32[4,4], index: 3, kind: input, shape index: {}]   ;;  %s5999_s4 = inlined_call_operand.vmem [shape: f32[4,8,1152], index: 4, kind: output, shape index: {}]  }
   0x1   :  { %10 = vsyncpa [#allocation6], 0  ;;  %s3631_s15 = smov 0   ;;  %s3633_s16 = smov 0  }
   0x2   :  { %s3635_s17 = smov 0  }
   0x3 LB: > { %s3647_s18 = sadd.s32 4294967295, %s3467_s17   ;;  %s3650_s19 = sadd.s32 1, %s3467_s17   ;;  %s3467_s17 = sphi %s3635_s17, %s6632_s17   ;;  %s3463_s16 = sphi %s3633_s16, %s6631_s16   ;;  %s3459_s15 = sphi %s3631_s15, %s6630_s15  }
   0x4   : > { %s20_s20 = ssub.s32 %s3467_s17, %s3650_s19  ;;  %s23_s21 = sadd.s32 1, %s3463_s16 }
   0x5   : > { %p21_p0 = scmp.eq.s32.totalorder %s20_s20, 0  ;;  %p30_p1 = scmp.ne.s32.totalorder %s3463_s16, %s3459_s15 }
   0x6   : > { %p31_p2 = scmp.eq.s32.totalorder %s3467_s17, 0  ;;  %p123_p3 = scmp.eq.s32.totalorder %s3647_s18, 1 }
   0x7   : > { %s3660_s22 = scalar_select %p21_p0, %s3463_s16, %s23_s21  }
   0x8   : > { %p3662_p4 = por %p31_p2, %p30_p1  ;;  %p3666_p5 = por %p123_p3, %p30_p1 }
   0x9   : > { %p2681_p6 = scmp.ge.s32.totalorder %s3467_s17, 1  ;;  %p136_p7 = scmp.lt.s32.totalorder %s3467_s17, 3 }
   0xa   : > { %p2889_p8 = scmp.eq.s32.totalorder %s3647_s18, 0  ;;  %s160_s28 = sshll.u32 %s5997_s2, 4  ;;  %s161_s28 = int_to_ptr.vmem [resolvable:$true] %s160_s28 }
   0xb   : > { %p3673_p9 = pnand %p2681_p6, %p136_p7  ;;  %s147_s5 = sshll.u32 %s5996_s1, 4  ;;  %s148_s5 = int_to_ptr.vmem [resolvable:$true] %s147_s5 }
   0xc   : > { %s170_s8 = sshll.u32 %s5998_s3, 4  ;;  %s3597_s9 = smov [#allocation5]   ;;  %s171_s8 = int_to_ptr.vmem [resolvable:$true] %s170_s8 }
   0xd   : > { %p2879_p10 = pneg %p3673_p9  ;;  %s3598_s10 = smov [#allocation3]  }
   0xe   : > { %s3599_s11 = smov 128   ;;  %s3600_s12 = smov 8  }
   0xf   : > { %p2880_p11 = pnand %p2889_p8, %p2879_p10  ;;  %s3601_s13 = smov [#allocation7]  }
  0x10   : > { %p2685_p12 = scmp.ge.s32.totalorder %s3467_s17, 2 }
  0x11   : > { %2885 = dma.vmem_to_smem (!%p2880_p11), %s161_s28, 64, %s3597_s9, [#allocation6]  }
  0x12   : > { %2882 = dma.vmem_to_smem (!%p2880_p11), %s148_s5, 256, %s3598_s10, [#allocation4], %s3599_s11, %s3599_s11, %s3600_s12  }
  0x13   : > { %2888 = dma.vmem_to_smem (!%p2880_p11), %s171_s8, 64, %s3601_s13, [#allocation6]  }
  0x14   : > { %177 = sbr.rel (%p2685_p12) target bundleno = 164 (0xa4), region = 28 }
  0x19   : > { %180 = sbr.rel (!%p3662_p4) target bundleno = 164 (0xa4), region = 32  ;;  %s182_s14 = sand.u32 (%p3662_p4), 1, %s3463_s16  }
  0x1a   : > { %s2687_s20 = sshll.u32 (%p3662_p4), %s3467_s17, 3  ;;  %s2686_s21 = sshll.u32 (%p3662_p4), %s182_s14, 7 }
  0x1b   : > { %s186_s26 = ssub.s32 (%p3662_p4), 9, %s2687_s20  ;;  %s2857_s27 = sshll.u32 (%p3662_p4), %s3467_s17, 6 }
  0x1c   : > { %p187_p13 = scmp.lt.s32.totalorder (%p3662_p4), %s186_s26, 8  ;;  %s3699_s30 = scalar_lea.vmem (%p3662_p4), %s5995_s0, %s2857_s27  }
  0x1d   : > { %s3703_s23 = scalar_lea.vmem (%p3662_p4), [#allocation2], %s2686_s21  }
  0x1e   : > { %s6634_s26 = smov (!%p187_p13, %s186_s26), 8 }
  0x1f   : > { %s2688_s5 = sshll.u32 %s6634_s26, 4  ;;  %s3701_s6 = sshll.u32 %s6634_s26, 3 }
  0x20   : > { %p2692_p0 = scmp.eq.s32.totalorder %s2688_s5, 0 }
  0x21   : > { %p197_p1 = scmp.lt.u32.totalorder (!%p2692_p0), %s3701_s6, 8 }
  0x22   : > { %196 = sbr.rel (%p2692_p0) target bundleno = 164 (0xa4), region = 36 }
  0x27   : > { %200 = sbr.rel (%p197_p1) target bundleno = 154 (0x9a), region = 40  ;;  %s3707_s7 = sand.u32 (!%p197_p1), 7, %s3701_s6  }
  0x28   : > { %p219_p2 = scmp.eq.s32.totalorder (!%p197_p1), %s3707_s7, 0  ;;  %p2693_p3 = scmp.ne.s32.totalorder (!%p197_p1), %s3707_s7, 0 }
  0x2c   : > { %222 = sbr.rel (%p2693_p3) target bundleno = 96 (0x60), region = 55  ;;  %s223_s17 = sshrl.u32 (!%p2693_p3), %s3701_s6, 3 }
  0x2d   : > { %s3714_s8 = sshrl.u32 (!%p2693_p3), %s223_s17, 4 }
  0x2e   : > { %p2694_p4 = scmp.le.s32.totalorder (!%p2693_p3), %s3714_s8, 0 }
  0x31   : > { %2525 = sbr.rel (%p2694_p4) target bundleno = 79 (0x4f), region = 250  ;;  %s6171_s9 = smov (!%p2694_p4), %s3703_s23 }
  0x32   : > { %s6172_s10 = smov (!%p2694_p4), %s3699_s30  ;;  %s3723_s11 = smov (!%p2694_p4), 0  }
  0x33   : > { %s3725_s12 = smov (!%p2694_p4), 0  }
  0x36 LB: >> { %v252_v0 = vld [vmem:[%s3475_s10 + $0x48] sm:$0xff]  ;;  %v254_v1 = vld [vmem:[%s3475_s10 + $0x50] sm:$0xff]  ;;  %v234_v2 = vld [vmem:[%s3475_s10] sm:$0xff]  ;;  %s298_s13 = sadd.s32 1, %s3479_s11  ;;  %s228_s12 = sadd.s32 1, %s3483_s12   ;;  %s3483_s12 = sphi %s3725_s12, %s228_s12   ;;  %s3479_s11 = sphi %s3723_s11, %s6175_s11   ;;  %s3475_s10 = sphi %s6172_s10, %s6174_s10   ;;  %s3471_s9 = sphi %s6171_s9, %s6173_s9  }
  0x37   : >> { %267 = vst [vmem:[%s3471_s9 + $0x40] sm:$0xff] %v252_v0  ;;  %v236_v3 = vld [vmem:[%s3475_s10 + $0x8] sm:$0xff]  ;;  %v238_v4 = vld [vmem:[%s3475_s10 + $0x10] sm:$0xff]  ;;  %v240_v5 = vld [vmem:[%s3475_s10 + $0x18] sm:$0xff]  ;;  %p299_p6 = scmp.ge.s32.totalorder %s298_s13, %s3714_s8  ;;  %p227_p7 = scmp.ge.s32.totalorder %s228_s12, %s3714_s8 }
  0x38   : >> { %269 = vst [vmem:[%s3471_s9 + $0x48] sm:$0xff] %v254_v1  ;;  %v242_v6 = vld [vmem:[%s3475_s10 + $0x20] sm:$0xff]  ;;  %v244_v7 = vld [vmem:[%s3475_s10 + $0x28] sm:$0xff]  ;;  %v246_v8 = vld [vmem:[%s3475_s10 + $0x30] sm:$0xff] }
  0x39   : >> { %235 = vst [vmem:[%s3471_s9] sm:$0xff] %v234_v2  ;;  %s6636_s13 = smov (%p299_p6, %s298_s13), 0  ;;  %v248_v9 = vld [vmem:[%s3475_s10 + $0x38] sm:$0xff]  ;;  %v258_v11 = vld [vmem:[%s3475_s10 + $0x60] sm:$0xff]  ;;  %v260_v12 = vld [vmem:[%s3475_s10 + $0x68] sm:$0xff] }
  0x3a   : >> { %237 = vst [vmem:[%s3471_s9 + $0x8] sm:$0xff] %v236_v3  ;;  %s2695_s14 = sshll.u32 %s6636_s13, 7  ;;  %v256_v10 = vld [vmem:[%s3475_s10 + $0x58] sm:$0xff]  ;;  %v262_v13 = vld [vmem:[%s3475_s10 + $0x70] sm:$0xff]  ;;  %v280_v15 = vld [vmem:[%s3475_s10 + $0x80] sm:$0xff]  ;;  %s6175_s11 = smov %s6636_s13 }
  0x3b   : >> { %239 = vst [vmem:[%s3471_s9 + $0x10] sm:$0xff] %v238_v4  ;;  %s3761_s20 = scalar_lea.vmem %s3699_s30, %s2695_s14   ;;  %s3764_s21 = scalar_lea.vmem %s3703_s23, %s2695_s14 [#allocation2]   ;;  %v264_v14 = vld [vmem:[%s3475_s10 + $0x78] sm:$0xff]  ;;  %v282_v16 = vld [vmem:[%s3475_s10 + $0x88] sm:$0xff]  ;;  %v284_v17 = vld [vmem:[%s3475_s10 + $0x90] sm:$0xff] }
  0x3c   : >> { %241 = vst [vmem:[%s3471_s9 + $0x18] sm:$0xff] %v240_v5  ;;  %v286_v18 = vld [vmem:[%s3475_s10 + $0x98] sm:$0xff]  ;;  %v288_v19 = vld [vmem:[%s3475_s10 + $0xa0] sm:$0xff]  ;;  %v290_v20 = vld [vmem:[%s3475_s10 + $0xa8] sm:$0xff] }
  0x3d   : >> { %243 = vst [vmem:[%s3471_s9 + $0x20] sm:$0xff] %v242_v6  ;;  %v292_v21 = vld [vmem:[%s3475_s10 + $0xb0] sm:$0xff]  ;;  %v294_v22 = vld [vmem:[%s3475_s10 + $0xb8] sm:$0xff]  ;;  %v296_v23 = vld [vmem:[%s3475_s10 + $0xc0] sm:$0xff]  ;;  %s6174_s10 = smov %s3761_s20 }
  0x3e   : >> { %245 = vst [vmem:[%s3471_s9 + $0x28] sm:$0xff] %v244_v7 }
  0x3f   : >> { %247 = vst [vmem:[%s3471_s9 + $0x30] sm:$0xff] %v246_v8 }
  0x40   : >> { %249 = vst [vmem:[%s3471_s9 + $0x38] sm:$0xff] %v248_v9 }
  0x41   : >> { %271 = vst [vmem:[%s3471_s9 + $0x50] sm:$0xff] %v256_v10 }
  0x42   : >> { %273 = vst [vmem:[%s3471_s9 + $0x58] sm:$0xff] %v258_v11 }
  0x43   : >> { %275 = vst [vmem:[%s3471_s9 + $0x60] sm:$0xff] %v260_v12 }
  0x44   : >> { %277 = vst [vmem:[%s3471_s9 + $0x68] sm:$0xff] %v262_v13 }
  0x45   : >> { %279 = vst [vmem:[%s3471_s9 + $0x70] sm:$0xff] %v264_v14 }
  0x46   : >> { %281 = vst [vmem:[%s3471_s9 + $0x78] sm:$0xff] %v280_v15 }
  0x47   : >> { %283 = vst [vmem:[%s3471_s9 + $0x80] sm:$0xff] %v282_v16 }
  0x48   : >> { %285 = vst [vmem:[%s3471_s9 + $0x88] sm:$0xff] %v284_v17 }
  0x49   : >> { %287 = vst [vmem:[%s3471_s9 + $0x90] sm:$0xff] %v286_v18 }
  0x4a   : >> { %289 = vst [vmem:[%s3471_s9 + $0x98] sm:$0xff] %v288_v19  ;;  %230 = sbr.rel (!%p227_p7) target bundleno = 54 (0x36), region = 256 }
  0x4b   : >> { %291 = vst [vmem:[%s3471_s9 + $0xa0] sm:$0xff] %v290_v20 }
  0x4c   : >> { %293 = vst [vmem:[%s3471_s9 + $0xa8] sm:$0xff] %v292_v21 }
  0x4d   : >> { %295 = vst [vmem:[%s3471_s9 + $0xb0] sm:$0xff] %v294_v22 }
  0x4e   : >> { %297 = vst [vmem:[%s3471_s9 + $0xb8] sm:$0xff] %v296_v23  ;;  %s6173_s9 = smov %s3764_s21 }
  0x4f PF: > { %s3810_s26 = sand.u32 15, %s223_s17   ;;  %s2858_s27 = sshll.u32 %s3714_s8, 7 }
  0x50   : > { %s3814_s28 = scalar_lea.vmem %s3699_s30, %s2858_s27   ;;  %s311_s29 = scalar_lea.vmem %s3703_s23, %s2858_s27 [#allocation2]  }
  0x51   : > { %p2700_p10 = scmp.le.s32.totalorder %s3810_s26, 0 }
  0x52   : > { %s3485_s5 = smov (!%p2700_p10), %s311_s29   ;;  %s3489_s13 = smov (!%p2700_p10), %s3814_s28  }
  0x53   : > { %2539 = sbr.rel (%p2700_p10) target bundleno = 96 (0x60), region = 261  ;;  %s3493_s12 = smov (!%p2700_p10), 0  }
  0x54   : > { %s3497_s14 = smov (!%p2700_p10), 0  }
  0x58 LB: >> { %v321_v24 = vld [vmem:[%s3491_s13] sm:$0xff]  ;;  %v323_v25 = vld [vmem:[%s3491_s13 + $0x48] sm:$0xff]  ;;  %s325_s17 = sadd.s32 1, %s3495_s12  ;;  %s315_s14 = sadd.s32 1, %s3499_s14   ;;  %s3499_s14 = sphi %s3497_s14, %s315_s14   ;;  %s3495_s12 = sphi %s3493_s12, %s3494_s12   ;;  %s3491_s13 = sphi %s3489_s13, %s330_s13   ;;  %s3487_s5 = sphi %s3485_s5, %s331_s5  }
  0x59   : >> { %322 = vst [vmem:[%s3487_s5] sm:$0xff] %v321_v24  ;;  %p326_p11 = scmp.ge.s32.totalorder %s325_s17, %s3810_s26  ;;  %p314_p12 = scmp.ge.s32.totalorder %s315_s14, %s3810_s26 }
  0x5a   : >> { %324 = vst [vmem:[%s3487_s5 + $0x40] sm:$0xff] %v323_v25 }
  0x5b   : >> { %s6638_s17 = smov (%p326_p11, %s325_s17), 0  ;;  %317 = sbr.rel (!%p314_p12) target bundleno = 88 (0x58), region = 267 }
  0x5c   : >> { %s2701_s8 = sshll.u32 %s6638_s17, 3  ;;  %s3494_s12 = smov %s6638_s17  }
  0x5d   : >> { %s330_s13 = scalar_lea.vmem %s3814_s28, %s2701_s8   ;;  %s331_s5 = scalar_lea.vmem %s311_s29, %s2701_s8 [#allocation2]  }
  0x60 PF: > { %334 = sbr.rel (%p219_p2) target bundleno = 154 (0x9a), region = 73  ;;  %s336_s9 = ssub.s32 (!%p219_p2), %s3701_s6, %s3707_s7 }
  0x61   : > { %s340_s10 = sshrl.u32 (!%p219_p2), %s3701_s6, 3  ;;  %s3828_s11 = scalar_lea.vmem (!%p219_p2), %s3699_s30, %s336_s9 }
  0x62   : > { %s3831_s20 = scalar_lea.vmem (!%p219_p2), %s3703_s23, %s336_s9 [#allocation2]  ;;  %s3835_s21 = sshrl.u32 (!%p219_p2), %s340_s10, 4 }
  0x63   : > { %p2703_p13 = scmp.le.s32.totalorder (!%p219_p2), %s3835_s21, 0 }
  0x65   : > { %2553 = sbr.rel (%p2703_p13) target bundleno = 131 (0x83), region = 272  ;;  %s6176_s26 = smov (!%p2703_p13), %s3703_s23 }
  0x66   : > { %s6177_s27 = smov (!%p2703_p13), %s3699_s30  ;;  %s3844_s28 = smov (!%p2703_p13), 0  }
  0x67   : > { %s3846_s29 = smov (!%p2703_p13), 0  }
  0x6a LB: >> { %v369_v26 = vld [vmem:[%s3507_s27 + $0x48] sm:$0xff]  ;;  %v371_v27 = vld [vmem:[%s3507_s27 + $0x50] sm:$0xff]  ;;  %v351_v28 = vld [vmem:[%s3507_s27] sm:$0xff]  ;;  %s415_s5 = sadd.s32 1, %s3511_s28  ;;  %s345_s29 = sadd.s32 1, %s3515_s29   ;;  %s3515_s29 = sphi %s3846_s29, %s345_s29   ;;  %s3511_s28 = sphi %s3844_s28, %s6180_s28   ;;  %s3507_s27 = sphi %s6177_s27, %s6179_s27   ;;  %s3503_s26 = sphi %s6176_s26, %s6178_s26  }
  0x6b   : >> { %384 = vst [vmem:[%s3503_s26 + $0x40] sm:$0xff] %v369_v26  ;;  %v353_v29 = vld [vmem:[%s3507_s27 + $0x8] sm:$0xff]  ;;  %v355_v30 = vld [vmem:[%s3507_s27 + $0x10] sm:$0xff]  ;;  %v357_v31 = vld [vmem:[%s3507_s27 + $0x18] sm:$0xff]  ;;  %p416_p0 = scmp.ge.s32.totalorder %s415_s5, %s3835_s21  ;;  %p344_p1 = scmp.ge.s32.totalorder %s345_s29, %s3835_s21 }
  0x6c   : >> { %386 = vst [vmem:[%s3503_s26 + $0x48] sm:$0xff] %v371_v27  ;;  %v359_v32 = vld [vmem:[%s3507_s27 + $0x20] sm:$0xff]  ;;  %v361_v33 = vld [vmem:[%s3507_s27 + $0x28] sm:$0xff]  ;;  %v363_v34 = vld [vmem:[%s3507_s27 + $0x30] sm:$0xff] }
  0x6d   : >> { %352 = vst [vmem:[%s3503_s26] sm:$0xff] %v351_v28  ;;  %s6640_s5 = smov (%p416_p0, %s415_s5), 0  ;;  %v365_v35 = vld [vmem:[%s3507_s27 + $0x38] sm:$0xff]  ;;  %v375_v37 = vld [vmem:[%s3507_s27 + $0x60] sm:$0xff]  ;;  %v377_v38 = vld [vmem:[%s3507_s27 + $0x68] sm:$0xff] }
  0x6e   : >> { %354 = vst [vmem:[%s3503_s26 + $0x8] sm:$0xff] %v353_v29  ;;  %s2704_s13 = sshll.u32 %s6640_s5, 7  ;;  %v373_v36 = vld [vmem:[%s3507_s27 + $0x58] sm:$0xff]  ;;  %v379_v39 = vld [vmem:[%s3507_s27 + $0x70] sm:$0xff]  ;;  %v397_v41 = vld [vmem:[%s3507_s27 + $0x80] sm:$0xff]  ;;  %s6180_s28 = smov %s6640_s5 }
  0x6f   : >> { %356 = vst [vmem:[%s3503_s26 + $0x10] sm:$0xff] %v355_v30  ;;  %s3882_s12 = scalar_lea.vmem %s3699_s30, %s2704_s13   ;;  %s3885_s14 = scalar_lea.vmem %s3703_s23, %s2704_s13 [#allocation2]   ;;  %v381_v40 = vld [vmem:[%s3507_s27 + $0x78] sm:$0xff]  ;;  %v399_v42 = vld [vmem:[%s3507_s27 + $0x88] sm:$0xff]  ;;  %v401_v43 = vld [vmem:[%s3507_s27 + $0x90] sm:$0xff] }
  0x70   : >> { %358 = vst [vmem:[%s3503_s26 + $0x18] sm:$0xff] %v357_v31  ;;  %v403_v44 = vld [vmem:[%s3507_s27 + $0x98] sm:$0xff]  ;;  %v405_v45 = vld [vmem:[%s3507_s27 + $0xa0] sm:$0xff]  ;;  %v407_v46 = vld [vmem:[%s3507_s27 + $0xa8] sm:$0xff] }
  0x71   : >> { %360 = vst [vmem:[%s3503_s26 + $0x20] sm:$0xff] %v359_v32  ;;  %v409_v47 = vld [vmem:[%s3507_s27 + $0xb0] sm:$0xff]  ;;  %v411_v48 = vld [vmem:[%s3507_s27 + $0xb8] sm:$0xff]  ;;  %v413_v49 = vld [vmem:[%s3507_s27 + $0xc0] sm:$0xff]  ;;  %s6179_s27 = smov %s3882_s12 }
  0x72   : >> { %362 = vst [vmem:[%s3503_s26 + $0x28] sm:$0xff] %v361_v33 }
  0x73   : >> { %364 = vst [vmem:[%s3503_s26 + $0x30] sm:$0xff] %v363_v34 }
  0x74   : >> { %366 = vst [vmem:[%s3503_s26 + $0x38] sm:$0xff] %v365_v35 }
  0x75   : >> { %388 = vst [vmem:[%s3503_s26 + $0x50] sm:$0xff] %v373_v36 }
  0x76   : >> { %390 = vst [vmem:[%s3503_s26 + $0x58] sm:$0xff] %v375_v37 }
  0x77   : >> { %392 = vst [vmem:[%s3503_s26 + $0x60] sm:$0xff] %v377_v38 }
  0x78   : >> { %394 = vst [vmem:[%s3503_s26 + $0x68] sm:$0xff] %v379_v39 }
  0x79   : >> { %396 = vst [vmem:[%s3503_s26 + $0x70] sm:$0xff] %v381_v40 }
  0x7a   : >> { %398 = vst [vmem:[%s3503_s26 + $0x78] sm:$0xff] %v397_v41 }
  0x7b   : >> { %400 = vst [vmem:[%s3503_s26 + $0x80] sm:$0xff] %v399_v42 }
  0x7c   : >> { %402 = vst [vmem:[%s3503_s26 + $0x88] sm:$0xff] %v401_v43 }
  0x7d   : >> { %404 = vst [vmem:[%s3503_s26 + $0x90] sm:$0xff] %v403_v44 }
  0x7e   : >> { %406 = vst [vmem:[%s3503_s26 + $0x98] sm:$0xff] %v405_v45  ;;  %347 = sbr.rel (!%p344_p1) target bundleno = 106 (0x6a), region = 278 }
  0x7f   : >> { %408 = vst [vmem:[%s3503_s26 + $0xa0] sm:$0xff] %v407_v46 }
  0x80   : >> { %410 = vst [vmem:[%s3503_s26 + $0xa8] sm:$0xff] %v409_v47 }
  0x81   : >> { %412 = vst [vmem:[%s3503_s26 + $0xb0] sm:$0xff] %v411_v48 }
  0x82   : >> { %414 = vst [vmem:[%s3503_s26 + $0xb8] sm:$0xff] %v413_v49  ;;  %s6178_s26 = smov %s3885_s14 }
  0x83 PF: > { %s3931_s17 = sand.u32 15, %s340_s10   ;;  %s2860_s8 = sshll.u32 %s3835_s21, 7 }
  0x84   : > { %s3935_s9 = scalar_lea.vmem %s3699_s30, %s2860_s8   ;;  %s428_s13 = scalar_lea.vmem %s3703_s23, %s2860_s8 [#allocation2]  }
  0x85   : > { %p2709_p2 = scmp.le.s32.totalorder %s3931_s17, 0 }
  0x86   : > { %s3517_s12 = smov (!%p2709_p2), %s428_s13   ;;  %s3521_s5 = smov (!%p2709_p2), %s3935_s9  }
  0x87   : > { %2567 = sbr.rel (%p2709_p2) target bundleno = 148 (0x94), region = 283  ;;  %s3525_s29 = smov (!%p2709_p2), 0  }
  0x88   : > { %s3529_s14 = smov (!%p2709_p2), 0  }
  0x8c LB: >> { %v438_v50 = vld [vmem:[%s3523_s5] sm:$0xff]  ;;  %v440_v51 = vld [vmem:[%s3523_s5 + $0x48] sm:$0xff]  ;;  %s442_s10 = sadd.s32 1, %s3527_s29  ;;  %s432_s14 = sadd.s32 1, %s3531_s14   ;;  %s3531_s14 = sphi %s3529_s14, %s432_s14   ;;  %s3527_s29 = sphi %s3525_s29, %s3526_s29   ;;  %s3523_s5 = sphi %s3521_s5, %s447_s5   ;;  %s3519_s12 = sphi %s3517_s12, %s448_s12  }
  0x8d   : >> { %439 = vst [vmem:[%s3519_s12] sm:$0xff] %v438_v50  ;;  %p443_p3 = scmp.ge.s32.totalorder %s442_s10, %s3931_s17  ;;  %p431_p4 = scmp.ge.s32.totalorder %s432_s14, %s3931_s17 }
  0x8e   : >> { %441 = vst [vmem:[%s3519_s12 + $0x40] sm:$0xff] %v440_v51 }
  0x8f   : >> { %s6642_s10 = smov (%p443_p3, %s442_s10), 0  ;;  %434 = sbr.rel (!%p431_p4) target bundleno = 140 (0x8c), region = 289 }
  0x90   : >> { %s2710_s21 = sshll.u32 %s6642_s10, 3  ;;  %s3526_s29 = smov %s6642_s10  }
  0x91   : >> { %s447_s5 = scalar_lea.vmem %s3935_s9, %s2710_s21   ;;  %s448_s12 = scalar_lea.vmem %s428_s13, %s2710_s21 [#allocation2]  }
  0x94 PF: > { %s3602_s26 = smov 1  }
  0x95   : > { %s449_s27 = sshll.u32 %s3602_s26, %s3707_s7 }
  0x96   : > { %s2712_s28 = sadd.s32 4294967295, %s449_s27 }
  0x97   : > { %v459_v52 = vld [vmem:[%s3828_s11] sm:%s2712_s28]  ;;  %v461_v53 = vld [vmem:[%s3828_s11 + $0x48] sm:%s2712_s28] }
  0x98   : > { %460 = vst [vmem:[%s3831_s20] sm:%s2712_s28] %v459_v52 }
  0x99   : > { %462 = vst [vmem:[%s3831_s20 + $0x40] sm:%s2712_s28] %v461_v53 }
  0x9a PF: > { %p2713_p6 = scmp.ge.u32.totalorder %s3701_s6, 8 }
  0x9b   : > { %s3603_s8 = smov (!%p2713_p6), 1  }
  0x9c   : > { %203 = sbr.rel (%p2713_p6) target bundleno = 164 (0xa4), region = 44  ;;  %s204_s17 = sshll.u32 (!%p2713_p6), %s3603_s8, %s3701_s6 }
  0x9d   : > { %s2714_s9 = sadd.s32 (!%p2713_p6), 4294967295, %s204_s17 }
  0xa1   : > { %v214_v54 = vld [vmem:[%s3699_s30] sm:%s2714_s9]  ;;  %v216_v55 = vld [vmem:[%s3699_s30 + $0x48] sm:%s2714_s9] }
  0xa2   : > { %215 = vst [vmem:[%s3703_s23] sm:%s2714_s9] %v214_v54 }
  0xa3   : > { %217 = vst [vmem:[%s3703_s23 + $0x40] sm:%s2714_s9] %v216_v55 }
  0xa4 PF: > { %469 = sbr.rel (%p3673_p9) target bundleno = 747 (0x2eb), region = 98 }
  0xa9   : > { %s472_s7 = sand.u32 1, %s3459_s15  }
  0xaa   : > { %s2716_s11 = sshll.u32 %s472_s7, 7 }
  0xab   : > { %s3959_s20 = scalar_lea.vmem [#allocation2], %s2716_s11 }
  0xac   : > { %3450 = dma.done.wait (%p2889_p8), [#allocation4], 256  }
  0xad   : > { %3452 = vsyncadd (%p2889_p8), [#allocation4], 4294967040 }
  0xae   : > { %3454 = dma.done.wait (%p2889_p8), [#allocation6], 128  }
  0xaf   : > { %3456 = vsyncadd (%p2889_p8), [#allocation6], 4294967168 }
  0xb0   : > { %493 = sfence }
  0xb1   : > { %s539_s25 = sld [smem:[#allocation3]]  ;;  %v3970_v56 = vld [vmem:[%s3959_s20] sm:$0xff]  ;;  %v4030_v24 = vld [vmem:[%s3959_s20 + $0x8] sm:$0xff] }
  0xb2   : > { %s2729_s30 = sld [smem:[#allocation3 + $0x1]]  ;;  %v3973_v57 = vld [vmem:[%s3959_s20 + $0x40] sm:$0xff]  ;;  %v4033_v25 = vld [vmem:[%s3959_s20 + $0x48] sm:$0xff] }
  0xb3   : > { %s2730_s6 = sld [smem:[#allocation3 + $0x80]] }
  0xb4   : > { %s2731_s23 = sld [smem:[#allocation3 + $0x81]] }
  0xb5   : > { %s2732_s13 = sld [smem:[#allocation3 + $0x100]] }
  0xb6   : > { %s2733_s12 = sld [smem:[#allocation3 + $0x101]] }
  0xb7   : > { %v3975_v58 = vstv %s539_s25  ;;  %s2734_s5 = sld [smem:[#allocation3 + $0x180]] }
  0xb8   : > { %6181 = vst [vmem:[#allocation11_spill] sm:$0xff] %v3975_v58  ;;  %v3977_v59 = vstv %s2729_s30  ;;  %s2735_s29 = sld [smem:[#allocation3 + $0x181]]  ;;  %v541_v60 = vmul.f32 %v3975_v58, %v3970_v56  ;;  %v542_v32 = vmul.f32 %v3975_v58, %v4030_v24 }
  0xb9   : > { %6182 = vst [vmem:[#allocation12_spill] sm:$0xff] %v3977_v59  ;;  %v551_v61 = vmul.f32 %v3973_v57, %v3977_v59  ;;  %v3983_v62 = vstv %s2730_s6  ;;  %s2736_s14 = sld [smem:[#allocation3 + $0x200]]  ;;  %v552_v33 = vmul.f32 %v4033_v25, %v3977_v59 }
  0xba   : > { %6183 = vst [vmem:[#allocation13_spill] sm:$0xff] %v3983_v62  ;;  %v577_v63 = vmul.f32 %v3983_v62, %v3970_v56  ;;  %v3987_v0 = vstv %s2731_s23  ;;  %s2737_s10 = sld [smem:[#allocation3 + $0x201]]  ;;  %v578_v41 = vmul.f32 %v3983_v62, %v4030_v24 }
  0xbb   : > { %6184 = vst [vmem:[#allocation14_spill] sm:$0xff] %v3987_v0  ;;  %v587_v1 = vmul.f32 %v3973_v57, %v3987_v0  ;;  %v3991_v2 = vstv %s2732_s13  ;;  %s2738_s21 = sld [smem:[#allocation3 + $0x280]]  ;;  %v559_v5 = vadd.f32 %v551_v61, %v541_v60  ;;  %v560_v40 = vadd.f32 %v552_v33, %v542_v32 }
  0xbc   : > { %6185 = vst [vmem:[#allocation15_spill] sm:$0xff] %v3991_v2  ;;  %v613_v3 = vmul.f32 %v3991_v2, %v3970_v56  ;;  %v3995_v4 = vstv %s2733_s12  ;;  %s2739_s26 = sld [smem:[#allocation3 + $0x281]]  ;;  %v588_v49 = vmul.f32 %v4033_v25, %v3987_v0  ;;  %v614_v61 = vmul.f32 %v3991_v2, %v4030_v24 }
  0xbd   : > { %6186 = vst [vmem:[#allocation16_spill] sm:$0xff] %v3995_v4  ;;  %v623_v6 = vmul.f32 %v3973_v57, %v3995_v4  ;;  %v3999_v7 = vstv %s2734_s5  ;;  %s2740_s27 = sld [smem:[#allocation3 + $0x300]]  ;;  %v595_v8 = vadd.f32 %v587_v1, %v577_v63  ;;  %v4013_v16 = vmax.f32 %v559_v5, 0.0 }
  0xbe   : > { %6187 = vst [vmem:[#allocation17_spill] sm:$0xff] %v3999_v7  ;;  %v649_v9 = vmul.f32 %v3999_v7, %v3970_v56  ;;  %v4003_v10 = vstv %s2735_s29  ;;  %s2741_s28 = sld [smem:[#allocation3 + $0x301]]  ;;  %v4072_v48 = vmax.f32 %v560_v40, 0.0  ;;  %v596_v60 = vadd.f32 %v588_v49, %v578_v41 }
  0xbf   : > { %6188 = vst [vmem:[#allocation18_spill] sm:$0xff] %v4003_v10  ;;  %v631_v11 = vadd.f32 %v623_v6, %v613_v3  ;;  %v659_v12 = vmul.f32 %v3973_v57, %v4003_v10  ;;  %v4007_v13 = vstv %s2736_s14  ;;  %s2742_s8 = sld [smem:[#allocation3 + $0x380]]  ;;  %v4021_v20 = vmax.f32 %v595_v8, 0.0 }
  0xc0   : > { %6189 = vst [vmem:[#allocation19_spill] sm:$0xff] %v4007_v13  ;;  %v685_v14 = vmul.f32 %v4007_v13, %v3970_v56  ;;  %v4011_v15 = vstv %s2737_s10  ;;  %s2743_s17 = sld [smem:[#allocation3 + $0x381]]  ;;  %v4098_v8 = vmax.f32 %v596_v60, 0.0  ;;  %v660_v40 = vmul.f32 %v4033_v25, %v4003_v10 }
  0xc1   : > { %6190 = vst [vmem:[#allocation20_spill] sm:$0xff] %v4011_v15  ;;  %v667_v17 = vadd.f32 %v659_v12, %v649_v9  ;;  %v695_v18 = vmul.f32 %v3973_v57, %v4011_v15  ;;  %v4017_v19 = vstv %s2738_s21  ;;  %s4019_s9 = sld [smem:[#allocation3 + $0x400]]  ;;  %v4023_v21 = vmax.f32 %v631_v11, 0.0 }
  0xc2   : > { %6191 = vst [vmem:[#allocation21_spill] sm:$0xff] %v4017_v19  ;;  %v721_v22 = vmul.f32 %v4017_v19, %v3970_v56  ;;  %v4027_v23 = vstv %s2739_s26  ;;  %s2745_s11 = sld [smem:[#allocation3 + $0x401]]  ;;  %v624_v9 = vmul.f32 %v4033_v25, %v3995_v4 }
  0xc3   : > { %6192 = vst [vmem:[#allocation22_spill] sm:$0xff] %v4027_v23  ;;  %v4035_v26 = vmax.f32 %v667_v17, 0.0  ;;  %v703_v27 = vadd.f32 %v695_v18, %v685_v14  ;;  %v731_v28 = vmul.f32 %v3973_v57, %v4027_v23  ;;  %v4039_v29 = vstv %s2740_s27  ;;  %s2746_s25 = sld [smem:[#allocation3 + $0x480]] }
  0xc4   : > { %6193 = vst [vmem:[#allocation23_spill] sm:$0xff] %v4039_v29  ;;  %v757_v30 = vmul.f32 %v4039_v29, %v3970_v56  ;;  %v4043_v31 = vstv %s2741_s28  ;;  %s2747_s30 = sld [smem:[#allocation3 + $0x481]] }
  0xc5   : > { %6194 = vst [vmem:[#allocation24_spill] sm:$0xff] %v4043_v31  ;;  %v4049_v34 = vmax.f32 %v703_v27, 0.0  ;;  %v739_v35 = vadd.f32 %v731_v28, %v721_v22  ;;  %v767_v36 = vmul.f32 %v3973_v57, %v4043_v31  ;;  %v4053_v37 = vstv %s2742_s8  ;;  %s899_s6 = sld [smem:[#allocation5]] }
  0xc6   : > { %6195 = vst [vmem:[#allocation25_spill] sm:$0xff] %v4053_v37  ;;  %v793_v38 = vmul.f32 %v4053_v37, %v3970_v56  ;;  %v4057_v39 = vstv %s2743_s17  ;;  %s2748_s23 = sld [smem:[#allocation5 + $0x1]]  ;;  %v632_v22 = vadd.f32 %v624_v9, %v614_v61  ;;  %v650_v27 = vmul.f32 %v3999_v7, %v4030_v24 }
  0xc7   : > { %6196 = vst [vmem:[#allocation26_spill] sm:$0xff] %v4057_v39  ;;  %v4061_v42 = vmax.f32 %v739_v35, 0.0  ;;  %v775_v43 = vadd.f32 %v767_v36, %v757_v30  ;;  %v803_v44 = vmul.f32 %v3973_v57, %v4057_v39  ;;  %v4066_v45 = vstv %s4019_s9  ;;  %s2749_s13 = sld [smem:[#allocation5 + $0x2]] }
  0xc8   : > { %6197 = vst [vmem:[#allocation27_spill] sm:$0xff] %v4066_v45  ;;  %v829_v46 = vmul.f32 %v4066_v45, %v3970_v56  ;;  %v4070_v47 = vstv %s2745_s11  ;;  %s2750_s12 = sld [smem:[#allocation5 + $0x3]] }
  0xc9   : > { %6198 = vst [vmem:[#allocation28_spill] sm:$0xff] %v4070_v47  ;;  %v4076_v50 = vmax.f32 %v775_v43, 0.0  ;;  %v811_v51 = vadd.f32 %v803_v44, %v793_v38  ;;  %v839_v52 = vmul.f32 %v3973_v57, %v4070_v47  ;;  %v4080_v53 = vstv %s2746_s25  ;;  %s2751_s5 = sld [smem:[#allocation5 + $0x4]] }
  0xca   : > { %6199 = vst [vmem:[#allocation29_spill] sm:$0xff] %v4080_v53  ;;  %v865_v54 = vmul.f32 %v4080_v53, %v3970_v56  ;;  %v4084_v55 = vstv %s2747_s30  ;;  %s2752_s29 = sld [smem:[#allocation5 + $0x5]]  ;;  %v4124_v38 = vmax.f32 %v632_v22, 0.0  ;;  %v866_v59 = vmul.f32 %v4080_v53, %v4030_v24 }
  0xcb   : > { %6200 = vst [vmem:[#allocation30_spill] sm:$0xff] %v4084_v55  ;;  %v4088_v63 = vmax.f32 %v811_v51, 0.0  ;;  %v847_v1 = vadd.f32 %v839_v52, %v829_v46  ;;  %v875_v3 = vmul.f32 %v3973_v57, %v4084_v55  ;;  %v4092_v5 = vstv %s899_s6  ;;  %s2753_s14 = sld [smem:[#allocation5 + $0x6]] }
  0xcc   : > { %6201 = vst [vmem:[#allocation31_spill] sm:$0xff] %v4092_v5  ;;  %v901_v6 = vmul.f32 %v4092_v5, %v4013_v16  ;;  %v4096_v56 = vstv %s2748_s23  ;;  %s2754_s10 = sld [smem:[#allocation5 + $0x7]]  ;;  %v686_v46 = vmul.f32 %v4007_v13, %v4030_v24  ;;  %v668_v52 = vadd.f32 %v660_v40, %v650_v27 }
  0xcd   : > { %6202 = vst [vmem:[#allocation32_spill] sm:$0xff] %v4096_v56  ;;  %v4102_v11 = vmax.f32 %v847_v1, 0.0  ;;  %v883_v12 = vadd.f32 %v875_v3, %v865_v54  ;;  %v911_v57 = vmul.f32 %v4096_v56, %v4021_v20  ;;  %v4106_v14 = vstv %s2749_s13  ;;  %s2755_s21 = sld [smem:[#allocation5 + $0x8]] }
  0xce   : > { %6203 = vst [vmem:[#allocation33_spill] sm:$0xff] %v4106_v14  ;;  %v929_v17 = vmul.f32 %v4106_v14, %v4023_v21  ;;  %v4110_v18 = vstv %s2750_s12  ;;  %s2756_s26 = sld [smem:[#allocation5 + $0x9]]  ;;  %v696_v54 = vmul.f32 %v4033_v25, %v4011_v15  ;;  %v722_v3 = vmul.f32 %v4017_v19, %v4030_v24 }
  0xcf   : > { %6204 = vst [vmem:[#allocation34_spill] sm:$0xff] %v4110_v18  ;;  %v4114_v28 = vmax.f32 %v883_v12, 0.0  ;;  %v919_v30 = vadd.f32 %v911_v57, %v901_v6  ;;  %v947_v32 = vmul.f32 %v4110_v18, %v4035_v26  ;;  %v4118_v33 = vstv %s2751_s5  ;;  %s2757_s27 = sld [smem:[#allocation5 + $0x80]] }
  0xd0   : > { %6205 = vst [vmem:[#allocation35_spill] sm:$0xff] %v4118_v33  ;;  %v965_v35 = vmul.f32 %v4118_v33, %v4049_v34  ;;  %v4122_v36 = vstv %s2752_s29  ;;  %s2758_s28 = sld [smem:[#allocation5 + $0x81]]  ;;  %v4150_v12 = vmax.f32 %v668_v52, 0.0  ;;  %v704_v57 = vadd.f32 %v696_v54, %v686_v46 }
  0xd1   : > { %6206 = vst [vmem:[#allocation36_spill] sm:$0xff] %v4122_v36  ;;  %v937_v41 = vadd.f32 %v929_v17, %v919_v30  ;;  %v983_v43 = vmul.f32 %v4122_v36, %v4061_v42  ;;  %v4130_v44 = vstv %s2753_s14  ;;  %s2759_s8 = sld [smem:[#allocation5 + $0x82]]  ;;  %v732_v30 = vmul.f32 %v4033_v25, %v4027_v23 }
  0xd2   : > { %6207 = vst [vmem:[#allocation37_spill] sm:$0xff] %v4130_v44  ;;  %v1001_v49 = vmul.f32 %v4130_v44, %v4076_v50  ;;  %v4136_v51 = vstv %s2754_s10  ;;  %s2760_s17 = sld [smem:[#allocation5 + $0x83]] }
  0xd3   : > { %6208 = vst [vmem:[#allocation38_spill] sm:$0xff] %v4136_v51  ;;  %v955_v60 = vadd.f32 %v947_v32, %v937_v41  ;;  %v1019_v61 = vmul.f32 %v4136_v51, %v4088_v63  ;;  %v4142_v1 = vstv %s2755_s21  ;;  %s2761_s9 = sld [smem:[#allocation5 + $0x84]]  ;;  %v4162_v41 = vmax.f32 %v704_v57, 0.0 }
  0xd4   : > { %6209 = vst [vmem:[#allocation39_spill] sm:$0xff] %v4142_v1  ;;  %v1037_v6 = vmul.f32 %v4142_v1, %v4102_v11  ;;  %v4148_v9 = vstv %s2756_s26  ;;  %s2762_s11 = sld [smem:[#allocation5 + $0x85]]  ;;  %v768_v57 = vmul.f32 %v4033_v25, %v4043_v31 }
  0xd5   : > { %6210 = vst [vmem:[#allocation40_spill] sm:$0xff] %v4148_v9  ;;  %v973_v17 = vadd.f32 %v965_v35, %v955_v60  ;;  %v1055_v22 = vmul.f32 %v4148_v9, %v4114_v28  ;;  %v4154_v27 = vstv %s2757_s27  ;;  %s2763_s25 = sld [smem:[#allocation5 + $0x86]]  ;;  %v758_v35 = vmul.f32 %v4039_v29, %v4030_v24 }
  0xd6   : > { %6211 = vst [vmem:[#allocation41_spill] sm:$0xff] %v4154_v27  ;;  %v1081_v32 = vmul.f32 %v4154_v27, %v4013_v16  ;;  %v4160_v40 = vstv %s2758_s28  ;;  %s2764_s30 = sld [smem:[#allocation5 + $0x87]]  ;;  %v740_v60 = vadd.f32 %v732_v30, %v722_v3  ;;  %v794_v29 = vmul.f32 %v4053_v37, %v4030_v24 }
  0xd7   : > { %6212 = vst [vmem:[#allocation42_spill] sm:$0xff] %v4160_v40  ;;  %v991_v46 = vadd.f32 %v983_v43, %v973_v17  ;;  %v1091_v52 = vmul.f32 %v4160_v40, %v4021_v20  ;;  %v4168_v54 = vstv %s2759_s8  ;;  %s2765_s6 = sld [smem:[#allocation5 + $0x88]]  ;;  %v776_v31 = vadd.f32 %v768_v57, %v758_v35 }
  0xd8   : > { %6213 = vst [vmem:[#allocation43_spill] sm:$0xff] %v4168_v54  ;;  %v1109_v23 = vmul.f32 %v4168_v54, %v4023_v21  ;;  %v4172_v19 = vstv %s2760_s17  ;;  %s2766_s23 = sld [smem:[#allocation5 + $0x89]]  ;;  %v4186_v10 = vmax.f32 %v740_v60, 0.0  ;;  %v804_v60 = vmul.f32 %v4033_v25, %v4057_v39 }
  0xd9   : > { %6214 = vst [vmem:[#allocation44_spill] sm:$0xff] %v4172_v19  ;;  %v1009_v43 = vadd.f32 %v1001_v49, %v991_v46  ;;  %v1099_v17 = vadd.f32 %v1091_v52, %v1081_v32  ;;  %v1127_v15 = vmul.f32 %v4172_v19, %v4035_v26  ;;  %v4180_v13 = vstv %s2761_s9  ;;  %s2767_s13 = sld [smem:[#allocation5 + $0x100]] }
  0xda   : > { %6215 = vst [vmem:[#allocation45_spill] sm:$0xff] %v4180_v13  ;;  %v1145_v3 = vmul.f32 %v4180_v13, %v4049_v34  ;;  %v4184_v30 = vstv %s2762_s11  ;;  %s2768_s12 = sld [smem:[#allocation5 + $0x101]]  ;;  %v4196_v37 = vmax.f32 %v776_v31, 0.0  ;;  %v812_v2 = vadd.f32 %v804_v60, %v794_v29 }
  0xdb   : > { %6216 = vst [vmem:[#allocation46_spill] sm:$0xff] %v4184_v30  ;;  %v1027_v7 = vadd.f32 %v1019_v61, %v1009_v43  ;;  %v1117_v4 = vadd.f32 %v1109_v23, %v1099_v17  ;;  %v1163_v49 = vmul.f32 %v4184_v30, %v4061_v42  ;;  %v4190_v32 = vstv %s2763_s25  ;;  %s2769_s5 = sld [smem:[#allocation5 + $0x102]] }
  0xdc   : > { %6217 = vst [vmem:[#allocation47_spill] sm:$0xff] %v4190_v32  ;;  %v1181_v46 = vmul.f32 %v4190_v32, %v4076_v50  ;;  %v4194_v52 = vstv %s2764_s30  ;;  %s2770_s29 = sld [smem:[#allocation5 + $0x103]]  ;;  %v830_v31 = vmul.f32 %v4066_v45, %v4030_v24  ;;  %v4218_v62 = vmax.f32 %v812_v2, 0.0 }
  0xdd   : > { %6218 = vst [vmem:[#allocation48_spill] sm:$0xff] %v4194_v52  ;;  %v1045_v35 = vadd.f32 %v1037_v6, %v1027_v7  ;;  %v1135_v61 = vadd.f32 %v1127_v15, %v1117_v4  ;;  %v1199_v23 = vmul.f32 %v4194_v52, %v4088_v63  ;;  %v4202_v57 = vstv %s2765_s6  ;;  %s2771_s14 = sld [smem:[#allocation5 + $0x104]] }
  0xde   : > { %6219 = vst [vmem:[#allocation49_spill] sm:$0xff] %v4202_v57  ;;  %v1217_v43 = vmul.f32 %v4202_v57, %v4102_v11  ;;  %v4206_v17 = vstv %s2766_s23  ;;  %s2772_s10 = sld [smem:[#allocation5 + $0x105]]  ;;  %v840_v29 = vmul.f32 %v4033_v25, %v4070_v47 }
  0xdf   : > { %6220 = vst [vmem:[#allocation50_spill] sm:$0xff] %v4206_v17  ;;  %v1063_v0 = vadd.f32 %v1055_v22, %v1045_v35  ;;  %v1153_v39 = vadd.f32 %v1145_v3, %v1135_v61  ;;  %v1235_v4 = vmul.f32 %v4206_v17, %v4114_v28  ;;  %v4212_v7 = vstv %s2767_s13  ;;  %s2773_s21 = sld [smem:[#allocation5 + $0x106]] }
  0xe0   : > { %6221 = vst [vmem:[#allocation51_spill] sm:$0xff] %v4212_v7  ;;  %v1261_v15 = vmul.f32 %v4212_v7, %v4013_v16  ;;  %v4216_v6 = vstv %s2768_s12  ;;  %s2774_s26 = sld [smem:[#allocation5 + $0x107]]  ;;  %v848_v2 = vadd.f32 %v840_v29, %v830_v31  ;;  %v876_v31 = vmul.f32 %v4033_v25, %v4084_v55 }
  0xe1   : > { %6222 = vst [vmem:[#allocation52_spill] sm:$0xff] %v4216_v6  ;;  %v4222_v60 = vmax.f32 %v1063_v0, 0.0  ;;  %v1171_v22 = vadd.f32 %v1163_v49, %v1153_v39  ;;  %v1271_v3 = vmul.f32 %v4216_v6, %v4021_v20  ;;  %v4226_v35 = vstv %s2769_s5  ;;  %s2775_s27 = sld [smem:[#allocation5 + $0x108]] }
  0xe2   : > { %6223 = vst [vmem:[#allocation53_spill] sm:$0xff] %v4226_v35  ;;  %v1289_v61 = vmul.f32 %v4226_v35, %v4023_v21  ;;  %v4230_v45 = vstv %s2770_s29  ;;  %s2776_s28 = sld [smem:[#allocation5 + $0x109]]  ;;  %v4242_v35 = vmax.f32 %v848_v2, 0.0  ;;  %v884_v53 = vadd.f32 %v876_v31, %v866_v59 }
  0xe3   : > { %6224 = vst [vmem:[#allocation54_spill] sm:$0xff] %v4230_v45  ;;  %v1189_v47 = vadd.f32 %v1181_v46, %v1171_v22  ;;  %v1279_v0 = vadd.f32 %v1271_v3, %v1261_v15  ;;  %v1307_v39 = vmul.f32 %v4230_v45, %v4035_v26  ;;  %v4236_v49 = vstv %s2771_s14  ;;  %s2777_s8 = sld [smem:[#allocation5 + $0x180]] }
  0xe4   : > { %6225 = vst [vmem:[#allocation55_spill] sm:$0xff] %v4236_v49  ;;  %v1325_v58 = vmul.f32 %v4236_v49, %v4049_v34  ;;  %v4240_v6 = vstv %s2772_s10  ;;  %s2778_s17 = sld [smem:[#allocation5 + $0x181]]  ;;  %v902_v2 = vmul.f32 %v4092_v5, %v4072_v48  ;;  %v4264_v55 = vmax.f32 %v884_v53, 0.0 }
  0xe5   : > { %6226 = vst [vmem:[#allocation56_spill] sm:$0xff] %v4240_v6  ;;  %v1207_v24 = vadd.f32 %v1199_v23, %v1189_v47  ;;  %v1297_v46 = vadd.f32 %v1289_v61, %v1279_v0  ;;  %v1343_v15 = vmul.f32 %v4240_v6, %v4061_v42  ;;  %v4248_v29 = vstv %s2773_s21  ;;  %s2779_s9 = sld [smem:[#allocation5 + $0x182]] }
  0xe6   : > { %6227 = vst [vmem:[#allocation57_spill] sm:$0xff] %v4248_v29  ;;  %v1361_v22 = vmul.f32 %v4248_v29, %v4076_v50  ;;  %v4252_v3 = vstv %s2774_s26  ;;  %s2780_s11 = sld [smem:[#allocation5 + $0x183]]  ;;  %v912_v59 = vmul.f32 %v4096_v56, %v4098_v8  ;;  %v930_v53 = vmul.f32 %v4106_v14, %v4124_v38 }
  0xe7   : > { %6228 = vst [vmem:[#allocation58_spill] sm:$0xff] %v4252_v3  ;;  %v1225_v49 = vadd.f32 %v1217_v43, %v1207_v24  ;;  %v1315_v25 = vadd.f32 %v1307_v39, %v1297_v46  ;;  %v1379_v47 = vmul.f32 %v4252_v3, %v4088_v63  ;;  %v4258_v23 = vstv %s2775_s27  ;;  %s2781_s25 = sld [smem:[#allocation5 + $0x184]] }
  0xe8   : > { %6229 = vst [vmem:[#allocation59_spill] sm:$0xff] %v4258_v23  ;;  %v1397_v61 = vmul.f32 %v4258_v23, %v4102_v11  ;;  %v4262_v0 = vstv %s2776_s28  ;;  %s2782_s30 = sld [smem:[#allocation5 + $0x185]]  ;;  %v920_v23 = vadd.f32 %v912_v59, %v902_v2  ;;  %v948_v2 = vmul.f32 %v4110_v18, %v4150_v12 }
  0xe9   : > { %6230 = vst [vmem:[#allocation60_spill] sm:$0xff] %v4262_v0  ;;  %v1243_v31 = vadd.f32 %v1235_v4, %v1225_v49  ;;  %v1333_v43 = vadd.f32 %v1325_v58, %v1315_v25  ;;  %v1415_v39 = vmul.f32 %v4262_v0, %v4114_v28  ;;  %v4270_v24 = vstv %s2777_s8  ;;  %s2783_s6 = sld [smem:[#allocation5 + $0x186]] }
  0xea   : > { %6231 = vst [vmem:[#allocation61_spill] sm:$0xff] %v4270_v24  ;;  %v1441_v46 = vmul.f32 %v4270_v24, %v4013_v16  ;;  %v4274_v5 = vstv %s2778_s17  ;;  %s2784_s23 = sld [smem:[#allocation5 + $0x187]]  ;;  %v938_v56 = vadd.f32 %v930_v53, %v920_v23  ;;  %v966_v23 = vmul.f32 %v4118_v33, %v4162_v41 }
  0xeb   : > { %6232 = vst [vmem:[#allocation62_spill] sm:$0xff] %v4274_v5  ;;  %v4278_v3 = vmax.f32 %v1243_v31, 0.0  ;;  %v1351_v4 = vadd.f32 %v1343_v15, %v1333_v43  ;;  %v1451_v58 = vmul.f32 %v4274_v5, %v4021_v20  ;;  %v4282_v49 = vstv %s2779_s9  ;;  %s2785_s13 = sld [smem:[#allocation5 + $0x188]] }
  0xec   : > { %6233 = vst [vmem:[#allocation63_spill] sm:$0xff] %v4282_v49  ;;  %v1469_v25 = vmul.f32 %v4282_v49, %v4023_v21  ;;  %v4286_v16 = vstv %s2780_s11  ;;  %s2786_s12 = sld [smem:[#allocation5 + $0x189]]  ;;  %v956_v21 = vadd.f32 %v948_v2, %v938_v56  ;;  %v984_v56 = vmul.f32 %v4122_v36, %v4186_v10 }
  0xed   : > { %6234 = vst [vmem:[#allocation64_spill] sm:$0xff] %v4286_v16  ;;  %v1369_v59 = vadd.f32 %v1361_v22, %v1351_v4  ;;  %v1459_v31 = vadd.f32 %v1451_v58, %v1441_v46  ;;  %v1487_v15 = vmul.f32 %v4286_v16, %v4035_v26  ;;  %v4292_v43 = vstv %s2781_s25  ;;  %s1619_s5 = sld [smem:[#allocation7]] }
  0xee   : > { %6235 = vst [vmem:[#allocation65_spill] sm:$0xff] %v4292_v43  ;;  %v1505_v20 = vmul.f32 %v4292_v43, %v4049_v34  ;;  %v4296_v14 = vstv %s2782_s30  ;;  %s2787_s29 = sld [smem:[#allocation7 + $0x1]]  ;;  %v974_v34 = vadd.f32 %v966_v23, %v956_v21 }
  0xef   : > { %v1387_v53 = vadd.f32 %v1379_v47, %v1369_v59  ;;  %v1477_v18 = vadd.f32 %v1469_v25, %v1459_v31  ;;  %v1523_v22 = vmul.f32 %v4296_v14, %v4061_v42  ;;  %v4302_v46 = vstv %s2783_s6  ;;  %s2788_s14 = sld [smem:[#allocation7 + $0x2]] }
  0xf0   : > { %v1541_v26 = vmul.f32 %v4302_v46, %v4076_v50  ;;  %v4306_v4 = vstv %s2784_s23  ;;  %s2789_s10 = sld [smem:[#allocation7 + $0x3]]  ;;  %v992_v50 = vadd.f32 %v984_v56, %v974_v34  ;;  %v1002_v31 = vmul.f32 %v4130_v44, %v4196_v37 }
  0xf1   : > { %v1405_v58 = vadd.f32 %v1397_v61, %v1387_v53  ;;  %v1495_v2 = vadd.f32 %v1487_v15, %v1477_v18  ;;  %v1559_v47 = vmul.f32 %v4306_v4, %v4088_v63  ;;  %v4312_v25 = vstv %s2785_s13  ;;  %s2790_s21 = sld [smem:[#allocation7 + $0x80]]  ;;  %s2720_s13 = sshll.u32 %s472_s7, 8 }
  0xf2   : > { %v1577_v42 = vmul.f32 %v4312_v25, %v4102_v11  ;;  %v4316_v59 = vstv %s2786_s12  ;;  %s2791_s26 = sld [smem:[#allocation7 + $0x81]]  ;;  %v1010_v11 = vadd.f32 %v1002_v31, %v992_v50  ;;  %v1020_v53 = vmul.f32 %v4136_v51, %v4218_v62  ;;  %s4579_s15 = scalar_lea.vmem [#allocation8], %s2720_s13  }
  0xf3   : > { %v1423_v21 = vadd.f32 %v1415_v39, %v1405_v58  ;;  %v1513_v23 = vadd.f32 %v1505_v20, %v1495_v2  ;;  %v1595_v18 = vmul.f32 %v4316_v59, %v4114_v28  ;;  %v4322_v61 = vstv %s1619_s5  ;;  %s2792_s27 = sld [smem:[#allocation7 + $0x82]]  ;;  %s2827_s7 = sshll.u32 (%p3666_p5), %s3647_s18, 3 }
  0xf4   : > { %v1621_v63 = vmul.f32 %v4322_v61, %v4222_v60  ;;  %v4326_v15 = vstv %s2787_s29  ;;  %s2793_s28 = sld [smem:[#allocation7 + $0x83]]  ;;  %v1028_v58 = vadd.f32 %v1020_v53, %v1010_v11  ;;  %v1038_v2 = vmul.f32 %v4142_v1, %v4242_v35  ;;  %s2126_s12 = ssub.s32 (%p3666_p5), 9, %s2827_s7 }
  0xf5   : > { %6236 = vst [vmem:[#allocation66_spill] sm:$0xff] %v4326_v15  ;;  %v4330_v34 = vmax.f32 %v1423_v21, 0.0  ;;  %v1531_v39 = vadd.f32 %v1523_v22, %v1513_v23  ;;  %v1631_v20 = vmul.f32 %v4326_v15, %v4278_v3  ;;  %v4334_v28 = vstv %s2788_s14  ;;  %s2794_s8 = sld [smem:[#allocation7 + $0x100]]  ;;  %p2127_p8 = scmp.lt.s32.totalorder (%p3666_p5), %s2126_s12, 8 }
  0xf6   : > { %6237 = vst [vmem:[#allocation67_spill] sm:$0xff] %v4334_v28  ;;  %v4336_v56 = vstv %s2789_s10  ;;  %s2795_s17 = sld [smem:[#allocation7 + $0x101]]  ;;  %v1056_v50 = vmul.f32 %v4148_v9, %v4264_v55  ;;  %v1046_v11 = vadd.f32 %v1038_v2, %v1028_v58  ;;  %v1082_v53 = vmul.f32 %v4154_v27, %v4072_v48 }
  0xf7   : > { %6238 = vst [vmem:[#allocation68_spill] sm:$0xff] %v4336_v56  ;;  %v1549_v31 = vadd.f32 %v1541_v26, %v1531_v39  ;;  %v1639_v21 = vadd.f32 %v1631_v20, %v1621_v63  ;;  %v1649_v22 = vmul.f32 %v4334_v28, %v4330_v34  ;;  %v4344_v23 = vstv %s2790_s21  ;;  %s2796_s9 = sld [smem:[#allocation7 + $0x102]] }
  0xf8   : > { %v1685_v51 = vmul.f32 %v4344_v23, %v4222_v60  ;;  %v4348_v44 = vstv %s2791_s26  ;;  %s2797_s11 = sld [smem:[#allocation7 + $0x103]]  ;;  %v1064_v36 = vadd.f32 %v1056_v50, %v1046_v11  ;;  %v1092_v58 = vmul.f32 %v4160_v40, %v4098_v8 }
  0xf9   : > { %6239 = vst [vmem:[#allocation69_spill] sm:$0xff] %v4348_v44  ;;  %v1567_v1 = vadd.f32 %v1559_v47, %v1549_v31  ;;  %v1657_v9 = vadd.f32 %v1649_v22, %v1639_v21  ;;  %v1695_v26 = vmul.f32 %v4348_v44, %v4278_v3  ;;  %v4354_v63 = vstv %s2792_s27  ;;  %s2798_s25 = sld [smem:[#allocation7 + $0x180]] }
  0xfa   : > { %6240 = vst [vmem:[#allocation70_spill] sm:$0xff] %v4354_v63  ;;  %v1713_v39 = vmul.f32 %v4354_v63, %v4330_v34  ;;  %v4358_v20 = vstv %s2793_s28  ;;  %s2799_s30 = sld [smem:[#allocation7 + $0x181]]  ;;  %v1110_v31 = vmul.f32 %v4168_v54, %v4124_v38  ;;  %v4370_v33 = vmax.f32 %v1064_v36, 0.0 }
  0xfb   : > { %6241 = vst [vmem:[#allocation71_spill] sm:$0xff] %v4358_v20  ;;  %v1585_v2 = vadd.f32 %v1577_v42, %v1567_v1  ;;  %v1703_v27 = vadd.f32 %v1695_v26, %v1685_v51  ;;  %v4362_v47 = vstv %s2794_s8  ;;  %s2800_s6 = sld [smem:[#allocation7 + $0x182]]  ;;  %v1100_v50 = vadd.f32 %v1092_v58, %v1082_v53 }
  0xfc   : > { %6242 = vst [vmem:[#allocation72_spill] sm:$0xff] %v4362_v47  ;;  %v1749_v21 = vmul.f32 %v4362_v47, %v4222_v60  ;;  %v4368_v22 = vstv %s2795_s17  ;;  %s2801_s23 = sld [smem:[#allocation7 + $0x183]]  ;;  %v1128_v40 = vmul.f32 %v4172_v19, %v4150_v12  ;;  %v1164_v58 = vmul.f32 %v4184_v30, %v4186_v10 }
  0xfd   : > { %6243 = vst [vmem:[#allocation73_spill] sm:$0xff] %v4368_v22  ;;  %v1603_v11 = vadd.f32 %v1595_v18, %v1585_v2  ;;  %v1721_v63 = vadd.f32 %v1713_v39, %v1703_v27  ;;  %v1759_v51 = vmul.f32 %v4368_v22, %v4278_v3  ;;  %v4374_v1 = vstv %s2796_s9 }
  0xfe   : > { %6244 = vst [vmem:[#allocation74_spill] sm:$0xff] %v4374_v1  ;;  %v1777_v42 = vmul.f32 %v4374_v1, %v4330_v34  ;;  %v4378_v26 = vstv %s2797_s11  ;;  %v1118_v54 = vadd.f32 %v1110_v31, %v1100_v50  ;;  %v1146_v27 = vmul.f32 %v4180_v13, %v4162_v41 }
  0xff   : > { %6245 = vst [vmem:[#allocation75_spill] sm:$0xff] %v4378_v26  ;;  %v1611_v28 = vmax.f32 %v1603_v11, 0.0  ;;  %v1767_v36 = vadd.f32 %v1759_v51, %v1749_v21  ;;  %v4382_v47 = vstv %s2798_s25 }
 0x100   : > { %v1813_v18 = vmul.f32 %v4382_v47, %v4222_v60  ;;  %v4388_v53 = vstv %s2799_s30  ;;  %v1136_v39 = vadd.f32 %v1128_v40, %v1118_v54 }
 0x101   : > { %6246 = vst [vmem:[#allocation76_spill] sm:$0xff] %v4388_v53  ;;  %v1667_v2 = vmul.f32 %v4336_v56, %v1611_v28  ;;  %v1731_v31 = vmul.f32 %v4358_v20, %v1611_v28  ;;  %v1785_v50 = vadd.f32 %v1777_v42, %v1767_v36  ;;  %v1795_v21 = vmul.f32 %v4378_v26, %v1611_v28 }
 0x102   : > { %v1823_v11 = vmul.f32 %v4388_v53, %v4278_v3  ;;  %v4397_v51 = vstv %s2800_s6  ;;  %v4399_v13 = vstv %s2801_s23  ;;  %v1154_v60 = vadd.f32 %v1146_v27, %v1136_v39 }
 0x103   : > { %6247 = vst [vmem:[#allocation77_spill] sm:$0xff] %v4397_v51  ;;  %v1675_v19 = vadd.f32 %v1667_v2, %v1657_v9  ;;  %v1739_v40 = vadd.f32 %v1731_v31, %v1721_v63  ;;  %v1803_v54 = vadd.f32 %v1795_v21, %v1785_v50  ;;  %v1841_v30 = vmul.f32 %v4397_v51, %v4330_v34  ;;  %v6250_v2 = vld [vmem:[#allocation53_spill] sm:$0xff]  ;;  %v6251_v21 = vld [vmem:[#allocation55_spill] sm:$0xff] }
 0x104   : > { %6248 = vst [vmem:[#allocation78_spill] sm:$0xff] %v4399_v13  ;;  %v1831_v56 = vadd.f32 %v1823_v11, %v1813_v18  ;;  %v1859_v20 = vmul.f32 %v4399_v13, %v1611_v28  ;;  %v1172_v42 = vadd.f32 %v1164_v58, %v1154_v60  ;;  %v1182_v36 = vmul.f32 %v4190_v32, %v4196_v37  ;;  %v6249_v28 = vld [vmem:[#allocation52_spill] sm:$0xff] }
 0x105   : > { %v1875_v26 = vmax.f32 %v1675_v19, %v1739_v40  ;;  %v1200_v3 = vmul.f32 %v4194_v52, %v4218_v62  ;;  %v1218_v27 = vmul.f32 %v4202_v57, %v4242_v35  ;;  %v1236_v9 = vmul.f32 %v4206_v17, %v4264_v55 }
 0x106   : > { %v1849_v63 = vadd.f32 %v1841_v30, %v1831_v56  ;;  %v1190_v39 = vadd.f32 %v1182_v36, %v1172_v42  ;;  %v1262_v34 = vmul.f32 %v4212_v7, %v4072_v48  ;;  %v1272_v18 = vmul.f32 %v6249_v28, %v4098_v8 }
 0x107   : > { %v1883_v58 = vmax.f32 %v1875_v26, %v1803_v54  ;;  %v1290_v31 = vmul.f32 %v6250_v2, %v4124_v38  ;;  %v1308_v50 = vmul.f32 %v4230_v45, %v4150_v12  ;;  %v1326_v11 = vmul.f32 %v6251_v21, %v4162_v41  ;;  %v6252_v26 = vld [vmem:[#allocation58_spill] sm:$0xff]  ;;  %v6253_v2 = vld [vmem:[#allocation59_spill] sm:$0xff] }
 0x108   : > { %v1867_v60 = vadd.f32 %v1859_v20, %v1849_v63  ;;  %v1208_v17 = vadd.f32 %v1200_v3, %v1190_v39  ;;  %v1280_v30 = vadd.f32 %v1272_v18, %v1262_v34  ;;  %v1344_v56 = vmul.f32 %v4240_v6, %v4186_v10 }
 0x109   : > { %v1362_v42 = vmul.f32 %v4248_v29, %v4196_v37  ;;  %v1380_v36 = vmul.f32 %v6252_v26, %v4218_v62  ;;  %v1398_v28 = vmul.f32 %v6253_v2, %v4242_v35  ;;  %v4432_v45 = vmul.f32 %v4262_v0, %v4264_v55 }
 0x10a   : > { %v1891_v21 = vmax.f32 %v1883_v58, %v1867_v60  ;;  %v1226_v20 = vadd.f32 %v1218_v27, %v1208_v17  ;;  %v1298_v3 = vadd.f32 %v1290_v31, %v1280_v30  ;;  %v1442_v63 = vmul.f32 %v4270_v24, %v4072_v48 }
 0x10b   : > { %v1452_v39 = vmul.f32 %v4274_v5, %v4098_v8  ;;  %v1470_v34 = vmul.f32 %v4282_v49, %v4124_v38  ;;  %v1488_v18 = vmul.f32 %v4286_v16, %v4150_v12  ;;  %v1506_v2 = vmul.f32 %v4292_v43, %v4162_v41 }
 0x10c   : > { %v1899_v0 = vsub.f32 %v1675_v19, %v1891_v21  ;;  %v1923_v26 = vsub.f32 %v1739_v40, %v1891_v21  ;;  %v1947_v58 = vsub.f32 %v1803_v54, %v1891_v21  ;;  %v1971_v17 = vsub.f32 %v1867_v60, %v1891_v21 }
 0x10d   : > { %v1244_v27 = vadd.f32 %v1236_v9, %v1226_v20  ;;  %v1316_v31 = vadd.f32 %v1308_v50, %v1298_v3  ;;  %v1460_v30 = vadd.f32 %v1452_v39, %v1442_v63  ;;  %v1524_v48 = vmul.f32 %v4296_v14, %v4186_v10 }
 0x10e   : > { %v1907_v8 = vmul.f32 1.442695, %v1899_v0  ;;  %v1931_v5 = vmul.f32 1.442695, %v1923_v26  ;;  %v1955_v24 = vmul.f32 1.442695, %v1947_v58  ;;  %v1542_v38 = vmul.f32 %v4302_v46, %v4196_v37 }
 0x10f   : > { %v1979_v12 = vmul.f32 1.442695, %v1971_v17  ;;  %v1252_v16 = vmax.f32 %v1244_v27, 0.0  ;;  %v1334_v41 = vadd.f32 %v1326_v11, %v1316_v31  ;;  %v1478_v19 = vadd.f32 %v1470_v34, %v1460_v30  ;;  %v4461_v11 = vld [vmem:[%s3959_s20 + $0x10] sm:$0xff]  ;;  %v6256_v17 = vld [vmem:[#allocation12_spill] sm:$0xff] }
 0x110   : > { %3184 = vpow2.f32 %v1907_v8  ;;  %v1560_v40 = vmul.f32 %v4306_v4, %v4218_v62  ;;  %v1578_v54 = vmul.f32 %v4312_v25, %v4242_v35  ;;  %v1596_v10 = vmul.f32 %v4316_v59, %v4264_v55  ;;  %v6254_v55 = vld [vmem:[#allocation72_spill] sm:$0xff]  ;;  %v6257_v31 = vld [vmem:[#allocation13_spill] sm:$0xff]  ;;  %v6258_v8 = vld [vmem:[#allocation14_spill] sm:$0xff] }
 0x111   : > { %3186 = vpow2.f32 %v1931_v5  ;;  %v1352_v0 = vadd.f32 %v1344_v56, %v1334_v41  ;;  %v1496_v9 = vadd.f32 %v1488_v18, %v1478_v19  ;;  %v1622_v37 = vmul.f32 %v4322_v61, %v4370_v33  ;;  %v4466_v56 = vld [vmem:[%s3959_s20 + $0x50] sm:$0xff]  ;;  %v6255_v18 = vld [vmem:[#allocation11_spill] sm:$0xff] }
 0x112   : > { %3188 = vpow2.f32 %v1955_v24  ;;  %v1632_v50 = vmul.f32 %v4326_v15, %v1252_v16  ;;  %v1686_v21 = vmul.f32 %v4344_v23, %v4370_v33  ;;  %v1696_v62 = vmul.f32 %v4348_v44, %v1252_v16  ;;  %v6260_v41 = vld [vmem:[#allocation15_spill] sm:$0xff] }
 0x113   : > { %3190 = vpow2.f32 %v1979_v12  ;;  %v1370_v35 = vadd.f32 %v1362_v42, %v1352_v0  ;;  %v1514_v60 = vadd.f32 %v1506_v2, %v1496_v9  ;;  %v1750_v5 = vmul.f32 %v6254_v55, %v4370_v33 }
 0x114   : > { %v1640_v26 = vadd.f32 %v1632_v50, %v1622_v37  ;;  %v1704_v20 = vadd.f32 %v1696_v62, %v1686_v21  ;;  %v1760_v24 = vmul.f32 %v4368_v22, %v1252_v16  ;;  %v1814_v3 = vmul.f32 %v4382_v47, %v4370_v33  ;;  %v6262_v21 = vld [vmem:[#allocation16_spill] sm:$0xff] }
 0x115   : > { %v1388_v63 = vadd.f32 %v1380_v36, %v1370_v35  ;;  %v1532_v39 = vadd.f32 %v1524_v48, %v1514_v60  ;;  %v1824_v34 = vmul.f32 %v4388_v53, %v1252_v16  ;;  %v543_v42 = vmul.f32 %v6255_v18, %v4461_v11 }
 0x116   : > { %v4474_v2 = vpop.eup %3184  ;;  %v1768_v58 = vadd.f32 %v1760_v24, %v1750_v5  ;;  %v553_v27 = vmul.f32 %v4466_v56, %v6256_v17  ;;  %v579_v30 = vmul.f32 %v6257_v31, %v4461_v11  ;;  %v589_v12 = vmul.f32 %v4466_v56, %v6258_v8  ;;  %v6265_v24 = vld [vmem:[#allocation18_spill] sm:$0xff] }
 0x117   : > { %v4482_v33 = vpop.eup %3186  ;;  %v1406_v36 = vadd.f32 %v1398_v28, %v1388_v63  ;;  %v1550_v48 = vadd.f32 %v1542_v38, %v1532_v39  ;;  %v1832_v16 = vadd.f32 %v1824_v34, %v1814_v3  ;;  %v615_v19 = vmul.f32 %v6260_v41, %v4461_v11  ;;  %v6264_v38 = vld [vmem:[#allocation17_spill] sm:$0xff] }
 0x118   : > { %6259 = vst [vmem:[#allocation72_spill] sm:$0xff] %v4482_v33  ;;  %v4486_v0 = vpop.eup %3188  ;;  %v1995_v9 = vadd.f32 %v4482_v33, %v4474_v2  ;;  %v561_v37 = vadd.f32 %v553_v27, %v543_v42  ;;  %v597_v50 = vadd.f32 %v589_v12, %v579_v30  ;;  %v625_v62 = vmul.f32 %v4466_v56, %v6262_v21  ;;  %v6266_v33 = vld [vmem:[#allocation19_spill] sm:$0xff] }
 0x119   : > { %6261 = vst [vmem:[#allocation11_spill] sm:$0xff] %v4486_v0  ;;  %v4492_v35 = vpop.eup %3190  ;;  %v1424_v60 = vadd.f32 %v4432_v45, %v1406_v36  ;;  %v1568_v28 = vadd.f32 %v1560_v40, %v1550_v48  ;;  %v651_v5 = vmul.f32 %v6264_v38, %v4461_v11  ;;  %v661_v3 = vmul.f32 %v4466_v56, %v6265_v24  ;;  %v6267_v48 = vld [vmem:[#allocation20_spill] sm:$0xff] }
 0x11a   : > { %6263 = vst [vmem:[#allocation12_spill] sm:$0xff] %v4492_v35  ;;  %v2003_v63 = vadd.f32 %v4486_v0, %v1995_v9  ;;  %v4500_v39 = vmax.f32 %v561_v37, 0.0  ;;  %v4502_v34 = vmax.f32 %v597_v50, 0.0  ;;  %v633_v42 = vadd.f32 %v625_v62, %v615_v19  ;;  %v6268_v9 = vld [vmem:[#allocation21_spill] sm:$0xff]  ;;  %v6269_v50 = vld [vmem:[#allocation67_spill] sm:$0xff]  ;;  %v6270_v19 = vld [vmem:[#allocation70_spill] sm:$0xff] }
 0x11b   : > { %v1432_v27 = vmax.f32 %v1424_v60, 0.0  ;;  %v1586_v30 = vadd.f32 %v1578_v54, %v1568_v28  ;;  %v669_v12 = vadd.f32 %v661_v3, %v651_v5  ;;  %v687_v45 = vmul.f32 %v6266_v33, %v4461_v11 }
 0x11c   : > { %v2011_v40 = vadd.f32 %v4492_v35, %v2003_v63  ;;  %v4507_v36 = vmax.f32 %v633_v42, 0.0  ;;  %v697_v53 = vmul.f32 %v4466_v56, %v6267_v48  ;;  %v723_v37 = vmul.f32 %v6268_v9, %v4461_v11  ;;  %v6272_v9 = vld [vmem:[#allocation23_spill] sm:$0xff] }
 0x11d   : > { %v1604_v0 = vadd.f32 %v1596_v10, %v1586_v30  ;;  %v1650_v22 = vmul.f32 %v6269_v50, %v1432_v27  ;;  %v1714_v62 = vmul.f32 %v6270_v19, %v1432_v27  ;;  %v1778_v54 = vmul.f32 %v4374_v1, %v1432_v27  ;;  %v6271_v10 = vld [vmem:[#allocation22_spill] sm:$0xff]  ;;  %v6273_v1 = vld [vmem:[#allocation68_spill] sm:$0xff]  ;;  %v6274_v48 = vld [vmem:[#allocation71_spill] sm:$0xff] }
 0x11e   : > { %3192 = vrcp.f32 %v2011_v40  ;;  %v1842_v60 = vmul.f32 %v4397_v51, %v1432_v27  ;;  %v4517_v28 = vmax.f32 %v669_v12, 0.0  ;;  %v705_v5 = vadd.f32 %v697_v53, %v687_v45  ;;  %v6275_v12 = vld [vmem:[#allocation75_spill] sm:$0xff] }
 0x11f   : > { %v1612_v3 = vmax.f32 %v1604_v0, 0.0  ;;  %v1658_v63 = vadd.f32 %v1650_v22, %v1640_v26  ;;  %v1722_v42 = vadd.f32 %v1714_v62, %v1704_v20  ;;  %v1786_v35 = vadd.f32 %v1778_v54, %v1768_v58  ;;  %v6276_v26 = vld [vmem:[#allocation24_spill] sm:$0xff]  ;;  %v6277_v58 = vld [vmem:[#allocation25_spill] sm:$0xff]  ;;  %v6278_v0 = vld [vmem:[#allocation26_spill] sm:$0xff] }
 0x120   : > { %v1850_v44 = vadd.f32 %v1842_v60, %v1832_v16  ;;  %v4519_v15 = vmax.f32 %v705_v5, 0.0  ;;  %v733_v30 = vmul.f32 %v4466_v56, %v6271_v10  ;;  %v759_v19 = vmul.f32 %v6272_v9, %v4461_v11 }
 0x121   : > { %v1668_v50 = vmul.f32 %v6273_v1, %v1612_v3  ;;  %v1732_v27 = vmul.f32 %v6274_v48, %v1612_v3  ;;  %v1796_v51 = vmul.f32 %v6275_v12, %v1612_v3  ;;  %v1860_v53 = vmul.f32 %v4399_v13, %v1612_v3  ;;  %v6280_v48 = vld [vmem:[#allocation28_spill] sm:$0xff] }
 0x122   : > { %v741_v22 = vadd.f32 %v733_v30, %v723_v37  ;;  %v769_v20 = vmul.f32 %v4466_v56, %v6276_v26  ;;  %v795_v16 = vmul.f32 %v6277_v58, %v4461_v11  ;;  %v805_v45 = vmul.f32 %v4466_v56, %v6278_v0  ;;  %v6279_v37 = vld [vmem:[#allocation27_spill] sm:$0xff]  ;;  %v6281_v0 = vld [vmem:[#allocation29_spill] sm:$0xff] }
 0x123   : > { %v1676_v62 = vadd.f32 %v1668_v50, %v1658_v63  ;;  %v1740_v54 = vadd.f32 %v1732_v27, %v1722_v42  ;;  %v1804_v60 = vadd.f32 %v1796_v51, %v1786_v35  ;;  %v1868_v5 = vadd.f32 %v1860_v53, %v1850_v44  ;;  %v6282_v44 = vld [vmem:[#allocation30_spill] sm:$0xff] }
 0x124   : > { %v3193_v9 = vpop.eup %3192  ;;  %v4535_v10 = vmax.f32 %v741_v22, 0.0  ;;  %v777_v12 = vadd.f32 %v769_v20, %v759_v19  ;;  %v813_v3 = vadd.f32 %v805_v45, %v795_v16  ;;  %v831_v30 = vmul.f32 %v6279_v37, %v4461_v11  ;;  %v6283_v19 = vld [vmem:[#allocation31_spill] sm:$0xff]  ;;  %v6284_v22 = vld [vmem:[#allocation32_spill] sm:$0xff]  ;;  %v6286_v45 = vld [vmem:[#allocation34_spill] sm:$0xff] }
 0x125   : > { %v2027_v26 = vmul.f32 %v3193_v9, %v2011_v40  ;;  %v1876_v13 = vmax.f32 %v1676_v62, %v1740_v54  ;;  %v841_v58 = vmul.f32 %v4466_v56, %v6280_v48  ;;  %v867_v50 = vmul.f32 %v6281_v0, %v4461_v11  ;;  %v6285_v11 = vld [vmem:[#allocation33_spill] sm:$0xff] }
 0x126   : > { %v4543_v63 = vmax.f32 %v777_v12, 0.0  ;;  %v4545_v51 = vmax.f32 %v813_v3, 0.0  ;;  %v877_v35 = vmul.f32 %v4466_v56, %v6282_v44  ;;  %v903_v42 = vmul.f32 %v6283_v19, %v4500_v39  ;;  %v6287_v56 = vld [vmem:[#allocation35_spill] sm:$0xff] }
 0x127   : > { %v2035_v40 = vsub.f32 2.0, %v2027_v26  ;;  %v1884_v27 = vmax.f32 %v1876_v13, %v1804_v60  ;;  %v849_v53 = vadd.f32 %v841_v58, %v831_v30  ;;  %v913_v20 = vmul.f32 %v6284_v22, %v4502_v34  ;;  %v6289_v58 = vld [vmem:[#allocation36_spill] sm:$0xff] }
 0x128   : > { %v885_v16 = vadd.f32 %v877_v35, %v867_v50  ;;  %v931_v12 = vmul.f32 %v6285_v11, %v4507_v36  ;;  %v949_v3 = vmul.f32 %v6286_v45, %v4517_v28  ;;  %v967_v44 = vmul.f32 %v6287_v56, %v4519_v15  ;;  %v6290_v50 = vld [vmem:[#allocation37_spill] sm:$0xff]  ;;  %v6291_v11 = vld [vmem:[#allocation38_spill] sm:$0xff] }
 0x129   : > { %v4561_v0 = vmul.f32 %v3193_v9, %v2035_v40  ;;  %v1892_v19 = vmax.f32 %v1884_v27, %v1868_v5  ;;  %v4563_v48 = vmax.f32 %v849_v53, 0.0  ;;  %v921_v13 = vadd.f32 %v913_v20, %v903_v42  ;;  %v6292_v42 = vld [vmem:[#allocation39_spill] sm:$0xff] }
 0x12a   : > { %v4565_v26 = vmax.f32 %v885_v16, 0.0  ;;  %v985_v30 = vmul.f32 %v6289_v58, %v4535_v10  ;;  %v1003_v35 = vmul.f32 %v6290_v50, %v4543_v63  ;;  %v1021_v45 = vmul.f32 %v6291_v11, %v4545_v51  ;;  %v6293_v16 = vld [vmem:[#allocation40_spill] sm:$0xff] }
 0x12b   : > { %6288 = vst [vmem:[#allocation13_spill] sm:$0xff] %v4561_v0  ;;  %v2051_v56 = vmul.f32 %v4474_v2, %v4561_v0  ;;  %v1900_v9 = vsub.f32 %v1676_v62, %v1892_v19  ;;  %v1924_v40 = vsub.f32 %v1740_v54, %v1892_v19  ;;  %v1948_v27 = vsub.f32 %v1804_v60, %v1892_v19  ;;  %v6294_v2 = vld [vmem:[#allocation41_spill] sm:$0xff]  ;;  %v6297_v0 = vld [vmem:[#allocation44_spill] sm:$0xff] }
 0x12c   : > { %v1972_v53 = vsub.f32 %v1868_v5, %v1892_v19  ;;  %v939_v22 = vadd.f32 %v931_v12, %v921_v13  ;;  %v1039_v20 = vmul.f32 %v6292_v42, %v4563_v48  ;;  %v1057_v58 = vmul.f32 %v6293_v16, %v4565_v26  ;;  %v6295_v5 = vld [vmem:[#allocation42_spill] sm:$0xff]  ;;  %v6296_v12 = vld [vmem:[#allocation43_spill] sm:$0xff]  ;;  %v6312_v42 = vld [vmem:[#allocation64_spill] sm:$0xff] }
 0x12d   : > { %2059 = vst [vmem:[%s4579_s15] sm:$0xff] %v2051_v56  ;;  %v1909_v50 = vmul.f32 1.442695, %v1900_v9  ;;  %v1933_v11 = vmul.f32 1.442695, %v1924_v40  ;;  %v1957_v37 = vmul.f32 1.442695, %v1948_v27  ;;  %v1083_v62 = vmul.f32 %v6294_v2, %v4500_v39 }
 0x12e   : > { %v1981_v54 = vmul.f32 1.442695, %v1972_v53  ;;  %v957_v60 = vadd.f32 %v949_v3, %v939_v22  ;;  %v1093_v19 = vmul.f32 %v6295_v5, %v4502_v34  ;;  %v1111_v13 = vmul.f32 %v6296_v12, %v4507_v36  ;;  %v6298_v56 = vld [vmem:[#allocation45_spill] sm:$0xff]  ;;  %v6299_v40 = vld [vmem:[#allocation46_spill] sm:$0xff] }
 0x12f   : > { %3194 = vpow2.f32 %v1909_v50  ;;  %v1129_v16 = vmul.f32 %v6297_v0, %v4517_v28  ;;  %v1147_v9 = vmul.f32 %v6298_v56, %v4519_v15  ;;  %v1165_v27 = vmul.f32 %v6299_v40, %v4535_v10  ;;  %v6300_v0 = vld [vmem:[#allocation50_spill] sm:$0xff] }
 0x130   : > { %3196 = vpow2.f32 %v1933_v11  ;;  %v975_v2 = vadd.f32 %v967_v44, %v957_v60  ;;  %v1101_v53 = vadd.f32 %v1093_v19, %v1083_v62  ;;  %v1183_v22 = vmul.f32 %v4190_v32, %v4543_v63  ;;  %v6301_v11 = vld [vmem:[#allocation52_spill] sm:$0xff]  ;;  %v6303_v19 = vld [vmem:[#allocation54_spill] sm:$0xff] }
 0x131   : > { %3198 = vpow2.f32 %v1957_v37  ;;  %v1201_v3 = vmul.f32 %v4194_v52, %v4545_v51  ;;  %v1219_v50 = vmul.f32 %v4202_v57, %v4563_v48  ;;  %v4602_v12 = vmul.f32 %v6300_v0, %v4565_v26  ;;  %v6302_v37 = vld [vmem:[#allocation53_spill] sm:$0xff]  ;;  %v6304_v57 = vld [vmem:[#allocation55_spill] sm:$0xff] }
 0x132   : > { %3200 = vpow2.f32 %v1981_v54  ;;  %v993_v56 = vadd.f32 %v985_v30, %v975_v2  ;;  %v1119_v40 = vadd.f32 %v1111_v13, %v1101_v53  ;;  %v1263_v44 = vmul.f32 %v4212_v7, %v4500_v39  ;;  %v6305_v53 = vld [vmem:[#allocation58_spill] sm:$0xff]  ;;  %v6307_v7 = vld [vmem:[#allocation60_spill] sm:$0xff] }
 0x133   : > { %v1273_v62 = vmul.f32 %v6301_v11, %v4502_v34  ;;  %v1291_v60 = vmul.f32 %v6302_v37, %v4507_v36  ;;  %v1309_v52 = vmul.f32 %v6303_v19, %v4517_v28  ;;  %v1327_v32 = vmul.f32 %v6304_v57, %v4519_v15  ;;  %v6306_v11 = vld [vmem:[#allocation59_spill] sm:$0xff] }
 0x134   : > { %v1011_v0 = vadd.f32 %v1003_v35, %v993_v56  ;;  %v1137_v5 = vadd.f32 %v1129_v16, %v1119_v40  ;;  %v1345_v30 = vmul.f32 %v4240_v6, %v4535_v10  ;;  %v1363_v2 = vmul.f32 %v4248_v29, %v4543_v63  ;;  %v6309_v40 = vld [vmem:[#allocation61_spill] sm:$0xff]  ;;  %v6310_v6 = vld [vmem:[#allocation62_spill] sm:$0xff] }
 0x135   : > { %v4618_v54 = vpop.eup %3194  ;;  %v1281_v13 = vadd.f32 %v1273_v62, %v1263_v44  ;;  %v1381_v37 = vmul.f32 %v6305_v53, %v4545_v51  ;;  %v1399_v19 = vmul.f32 %v6306_v11, %v4563_v48  ;;  %v4626_v57 = vmul.f32 %v6307_v7, %v4565_v26 }
 0x136   : > { %v4628_v35 = vpop.eup %3196  ;;  %v1029_v16 = vadd.f32 %v1021_v45, %v1011_v0  ;;  %v1155_v56 = vadd.f32 %v1147_v9, %v1137_v5  ;;  %v1443_v29 = vmul.f32 %v6309_v40, %v4500_v39  ;;  %v1453_v44 = vmul.f32 %v6310_v6, %v4502_v34 }
 0x137   : > { %6308 = vst [vmem:[#allocation14_spill] sm:$0xff] %v4628_v35  ;;  %v4634_v62 = vpop.eup %3198  ;;  %v1996_v11 = vadd.f32 %v4628_v35, %v4618_v54  ;;  %v1299_v53 = vadd.f32 %v1291_v60, %v1281_v13  ;;  %v1471_v7 = vmul.f32 %v4282_v49, %v4507_v36  ;;  %v1489_v0 = vmul.f32 %v6312_v42, %v4517_v28  ;;  %v4652_v13 = vld [vmem:[%s3959_s20 + $0x18] sm:$0xff] }
 0x138   : > { %6311 = vst [vmem:[#allocation15_spill] sm:$0xff] %v4634_v62  ;;  %v4642_v45 = vpop.eup %3200  ;;  %v1047_v39 = vadd.f32 %v1039_v20, %v1029_v16  ;;  %v1173_v5 = vadd.f32 %v1165_v27, %v1155_v56  ;;  %v1461_v9 = vadd.f32 %v1453_v44, %v1443_v29  ;;  %v1507_v34 = vmul.f32 %v4292_v43, %v4519_v15  ;;  %v4657_v20 = vld [vmem:[%s3959_s20 + $0x58] sm:$0xff] }
 0x139   : > { %6313 = vst [vmem:[#allocation16_spill] sm:$0xff] %v4642_v45  ;;  %v2004_v6 = vadd.f32 %v4634_v62, %v1996_v11  ;;  %v1317_v40 = vadd.f32 %v1309_v52, %v1299_v53  ;;  %v1525_v60 = vmul.f32 %v4296_v14, %v4535_v10  ;;  %v1543_v36 = vmul.f32 %v4302_v46, %v4543_v63 }
 0x13a   : > { %v1065_v28 = vadd.f32 %v1057_v58, %v1047_v39  ;;  %v1191_v35 = vadd.f32 %v1183_v22, %v1173_v5  ;;  %v1479_v42 = vadd.f32 %v1471_v7, %v1461_v9  ;;  %v1561_v29 = vmul.f32 %v4306_v4, %v4545_v51 }
 0x13b   : > { %v2012_v15 = vadd.f32 %v4642_v45, %v2004_v6  ;;  %v1335_v27 = vadd.f32 %v1327_v32, %v1317_v40  ;;  %v1579_v52 = vmul.f32 %v4312_v25, %v4563_v48  ;;  %v1597_v10 = vmul.f32 %v4316_v59, %v4565_v26 }
 0x13c   : > { %v1073_v63 = vmax.f32 %v1065_v28, 0.0  ;;  %v1209_v11 = vadd.f32 %v1201_v3, %v1191_v35  ;;  %v1497_v53 = vadd.f32 %v1489_v0, %v1479_v42  ;;  %v544_v7 = vmul.f32 %v6255_v18, %v4652_v13 }
 0x13d   : > { %3202 = vrcp.f32 %v2012_v15  ;;  %v1353_v58 = vadd.f32 %v1345_v30, %v1335_v27  ;;  %v554_v51 = vmul.f32 %v4657_v20, %v6256_v17  ;;  %v580_v32 = vmul.f32 %v6257_v31, %v4652_v13 }
 0x13e   : > { %v1227_v6 = vadd.f32 %v1219_v50, %v1209_v11  ;;  %v1515_v22 = vadd.f32 %v1507_v34, %v1497_v53  ;;  %v1623_v48 = vmul.f32 %v4322_v61, %v1073_v63  ;;  %v1687_v26 = vmul.f32 %v4344_v23, %v1073_v63 }
 0x13f   : > { %v1371_v16 = vadd.f32 %v1363_v2, %v1353_v58  ;;  %v1751_v42 = vmul.f32 %v6254_v55, %v1073_v63  ;;  %v1815_v3 = vmul.f32 %v4382_v47, %v1073_v63  ;;  %v562_v35 = vadd.f32 %v554_v51, %v544_v7  ;;  %v6314_v63 = vld [vmem:[#allocation20_spill] sm:$0xff]  ;;  %v6315_v58 = vld [vmem:[#allocation66_spill] sm:$0xff] }
 0x140   : > { %v1245_v30 = vadd.f32 %v4602_v12, %v1227_v6  ;;  %v1533_v56 = vadd.f32 %v1525_v60, %v1515_v22  ;;  %v590_v40 = vmul.f32 %v4657_v20, %v6258_v8  ;;  %v616_v50 = vmul.f32 %v6260_v41, %v4652_v13  ;;  %v6316_v6 = vld [vmem:[#allocation69_spill] sm:$0xff] }
 0x141   : > { %v1389_v44 = vadd.f32 %v1381_v37, %v1371_v16  ;;  %v4679_v0 = vmax.f32 %v562_v35, 0.0  ;;  %v626_v2 = vmul.f32 %v4657_v20, %v6262_v21  ;;  %v652_v39 = vmul.f32 %v6264_v38, %v4652_v13  ;;  %v6318_v35 = vld [vmem:[#allocation76_spill] sm:$0xff] }
 0x142   : > { %v1253_v5 = vmax.f32 %v1245_v30, 0.0  ;;  %v1551_v9 = vadd.f32 %v1543_v36, %v1533_v56  ;;  %v598_v34 = vadd.f32 %v590_v40, %v580_v32  ;;  %v662_v12 = vmul.f32 %v4657_v20, %v6265_v24  ;;  %v6317_v32 = vld [vmem:[#allocation73_spill] sm:$0xff] }
 0x143   : > { %v3203_v60 = vpop.eup %3202  ;;  %v1407_v28 = vadd.f32 %v1399_v19, %v1389_v44  ;;  %v634_v27 = vadd.f32 %v626_v2, %v616_v50  ;;  %v688_v37 = vmul.f32 %v6266_v33, %v4652_v13  ;;  %v698_v11 = vmul.f32 %v4657_v20, %v6314_v63  ;;  %v6320_v63 = vld [vmem:[#allocation67_spill] sm:$0xff] }
 0x144   : > { %v2028_v53 = vmul.f32 %v3203_v60, %v2012_v15  ;;  %v1569_v7 = vadd.f32 %v1561_v29, %v1551_v9  ;;  %v1633_v51 = vmul.f32 %v6315_v58, %v1253_v5  ;;  %v1697_v22 = vmul.f32 %v6316_v6, %v1253_v5 }
 0x145   : > { %v1425_v36 = vadd.f32 %v4626_v57, %v1407_v28  ;;  %v1761_v16 = vmul.f32 %v6317_v32, %v1253_v5  ;;  %v1825_v30 = vmul.f32 %v6318_v35, %v1253_v5  ;;  %v4696_v19 = vmax.f32 %v598_v34, 0.0  ;;  %v6321_v5 = vld [vmem:[#allocation70_spill] sm:$0xff] }
 0x146   : > { %v2036_v56 = vsub.f32 2.0, %v2028_v53  ;;  %v1587_v40 = vadd.f32 %v1579_v52, %v1569_v7  ;;  %v1641_v50 = vadd.f32 %v1633_v51, %v1623_v48  ;;  %v1705_v44 = vadd.f32 %v1697_v22, %v1687_v26  ;;  %v6322_v35 = vld [vmem:[#allocation74_spill] sm:$0xff]  ;;  %v6323_v52 = vld [vmem:[#allocation77_spill] sm:$0xff]  ;;  %v6325_v51 = vld [vmem:[#allocation75_spill] sm:$0xff] }
 0x147   : > { %v1433_v2 = vmax.f32 %v1425_v36, 0.0  ;;  %v1769_v45 = vadd.f32 %v1761_v16, %v1751_v42  ;;  %v1833_v15 = vadd.f32 %v1825_v30, %v1815_v3  ;;  %v4698_v29 = vmax.f32 %v634_v27, 0.0  ;;  %v6326_v36 = vld [vmem:[#allocation78_spill] sm:$0xff] }
 0x148   : > { %v4700_v9 = vmul.f32 %v3203_v60, %v2036_v56  ;;  %v1605_v62 = vadd.f32 %v1597_v10, %v1587_v40  ;;  %v670_v57 = vadd.f32 %v662_v12, %v652_v39  ;;  %v706_v28 = vadd.f32 %v698_v11, %v688_v37  ;;  %v6324_v11 = vld [vmem:[#allocation71_spill] sm:$0xff]  ;;  %v6328_v30 = vld [vmem:[#allocation22_spill] sm:$0xff] }
 0x149   : > { %v1651_v33 = vmul.f32 %v6320_v63, %v1433_v2  ;;  %v1715_v34 = vmul.f32 %v6321_v5, %v1433_v2  ;;  %v1779_v53 = vmul.f32 %v6322_v35, %v1433_v2  ;;  %v1843_v48 = vmul.f32 %v6323_v52, %v1433_v2  ;;  %v6348_v52 = vld [vmem:[#allocation42_spill] sm:$0xff]  ;;  %v6366_v63 = vld [vmem:[#allocation60_spill] sm:$0xff] }
 0x14a   : > { %6319 = vst [vmem:[#allocation17_spill] sm:$0xff] %v4700_v9  ;;  %v2052_v26 = vmul.f32 %v4618_v54, %v4700_v9  ;;  %v1613_v42 = vmax.f32 %v1605_v62, 0.0  ;;  %v4708_v3 = vmax.f32 %v670_v57, 0.0  ;;  %v4710_v60 = vmax.f32 %v706_v28, 0.0  ;;  %v6327_v54 = vld [vmem:[#allocation21_spill] sm:$0xff] }
 0x14b   : > { %v1659_v27 = vadd.f32 %v1651_v33, %v1641_v50  ;;  %v1723_v10 = vadd.f32 %v1715_v34, %v1705_v44  ;;  %v1787_v39 = vadd.f32 %v1779_v53, %v1769_v45  ;;  %v1851_v12 = vadd.f32 %v1843_v48, %v1833_v15  ;;  %v6329_v33 = vld [vmem:[#allocation23_spill] sm:$0xff]  ;;  %v6330_v45 = vld [vmem:[#allocation24_spill] sm:$0xff]  ;;  %v6331_v53 = vld [vmem:[#allocation25_spill] sm:$0xff] }
 0x14c   : > { %2060 = vst [vmem:[%s4579_s15 + $0x8] sm:$0xff] %v2052_v26  ;;  %v1669_v37 = vmul.f32 %v6273_v1, %v1613_v42  ;;  %v1733_v7 = vmul.f32 %v6324_v11, %v1613_v42  ;;  %v1797_v22 = vmul.f32 %v6325_v51, %v1613_v42  ;;  %v1861_v16 = vmul.f32 %v6326_v36, %v1613_v42  ;;  %v6332_v26 = vld [vmem:[#allocation26_spill] sm:$0xff]  ;;  %v6333_v36 = vld [vmem:[#allocation27_spill] sm:$0xff] }
 0x14d   : > { %v724_v62 = vmul.f32 %v6327_v54, %v4652_v13  ;;  %v734_v56 = vmul.f32 %v4657_v20, %v6328_v30  ;;  %v760_v40 = vmul.f32 %v6329_v33, %v4652_v13  ;;  %v770_v50 = vmul.f32 %v4657_v20, %v6330_v45  ;;  %v6334_v33 = vld [vmem:[#allocation28_spill] sm:$0xff]  ;;  %v6347_v45 = vld [vmem:[#allocation41_spill] sm:$0xff] }
 0x14e   : > { %v1677_v44 = vadd.f32 %v1669_v37, %v1659_v27  ;;  %v1741_v2 = vadd.f32 %v1733_v7, %v1723_v10  ;;  %v1805_v15 = vadd.f32 %v1797_v22, %v1787_v39  ;;  %v1869_v57 = vadd.f32 %v1861_v16, %v1851_v12  ;;  %v6335_v27 = vld [vmem:[#allocation29_spill] sm:$0xff]  ;;  %v6336_v7 = vld [vmem:[#allocation30_spill] sm:$0xff]  ;;  %v6371_v54 = vld [vmem:[#allocation64_spill] sm:$0xff] }
 0x14f   : > { %v742_v28 = vadd.f32 %v734_v56, %v724_v62  ;;  %v778_v34 = vadd.f32 %v770_v50, %v760_v40  ;;  %v796_v48 = vmul.f32 %v6331_v53, %v4652_v13  ;;  %v806_v42 = vmul.f32 %v4657_v20, %v6332_v26  ;;  %v6337_v56 = vld [vmem:[#allocation31_spill] sm:$0xff]  ;;  %v6338_v50 = vld [vmem:[#allocation32_spill] sm:$0xff] }
 0x150   : > { %v1877_v9 = vmax.f32 %v1677_v44, %v1741_v2  ;;  %v832_v51 = vmul.f32 %v6333_v36, %v4652_v13  ;;  %v842_v11 = vmul.f32 %v4657_v20, %v6334_v33  ;;  %v868_v10 = vmul.f32 %v6335_v27, %v4652_v13  ;;  %v6339_v13 = vld [vmem:[#allocation33_spill] sm:$0xff] }
 0x151   : > { %v4735_v39 = vmax.f32 %v742_v28, 0.0  ;;  %v4737_v12 = vmax.f32 %v778_v34, 0.0  ;;  %v814_v37 = vadd.f32 %v806_v42, %v796_v48  ;;  %v878_v22 = vmul.f32 %v4657_v20, %v6336_v7  ;;  %v6340_v34 = vld [vmem:[#allocation34_spill] sm:$0xff] }
 0x152   : > { %v1885_v16 = vmax.f32 %v1877_v9, %v1805_v15  ;;  %v850_v62 = vadd.f32 %v842_v11, %v832_v51  ;;  %v904_v40 = vmul.f32 %v6337_v56, %v4679_v0  ;;  %v914_v36 = vmul.f32 %v6338_v50, %v4696_v19  ;;  %v6341_v9 = vld [vmem:[#allocation35_spill] sm:$0xff]  ;;  %v6342_v50 = vld [vmem:[#allocation36_spill] sm:$0xff] }
 0x153   : > { %v4745_v33 = vmax.f32 %v814_v37, 0.0  ;;  %v886_v26 = vadd.f32 %v878_v22, %v868_v10  ;;  %v932_v28 = vmul.f32 %v6339_v13, %v4698_v29  ;;  %v950_v48 = vmul.f32 %v6340_v34, %v4708_v3  ;;  %v6343_v10 = vld [vmem:[#allocation37_spill] sm:$0xff]  ;;  %v6344_v13 = vld [vmem:[#allocation38_spill] sm:$0xff] }
 0x154   : > { %v1893_v42 = vmax.f32 %v1885_v16, %v1869_v57  ;;  %v4751_v27 = vmax.f32 %v850_v62, 0.0  ;;  %v922_v20 = vadd.f32 %v914_v36, %v904_v40  ;;  %v968_v11 = vmul.f32 %v6341_v9, %v4710_v60  ;;  %v6345_v36 = vld [vmem:[#allocation39_spill] sm:$0xff] }
 0x155   : > { %v4755_v51 = vmax.f32 %v886_v26, 0.0  ;;  %v986_v37 = vmul.f32 %v6342_v50, %v4735_v39  ;;  %v1004_v22 = vmul.f32 %v6343_v10, %v4737_v12  ;;  %v1022_v56 = vmul.f32 %v6344_v13, %v4745_v33  ;;  %v6346_v26 = vld [vmem:[#allocation40_spill] sm:$0xff] }
 0x156   : > { %v1901_v7 = vsub.f32 %v1677_v44, %v1893_v42  ;;  %v1925_v34 = vsub.f32 %v1741_v2, %v1893_v42  ;;  %v1949_v16 = vsub.f32 %v1805_v15, %v1893_v42  ;;  %v1973_v62 = vsub.f32 %v1869_v57, %v1893_v42  ;;  %v6349_v15 = vld [vmem:[#allocation43_spill] sm:$0xff] }
 0x157   : > { %v940_v53 = vadd.f32 %v932_v28, %v922_v20  ;;  %v1040_v40 = vmul.f32 %v6345_v36, %v4751_v27  ;;  %v1058_v9 = vmul.f32 %v6346_v26, %v4755_v51  ;;  %v1084_v50 = vmul.f32 %v6347_v45, %v4679_v0  ;;  %v6350_v28 = vld [vmem:[#allocation44_spill] sm:$0xff]  ;;  %v6351_v26 = vld [vmem:[#allocation45_spill] sm:$0xff] }
 0x158   : > { %v1911_v1 = vmul.f32 1.442695, %v1901_v7  ;;  %v1935_v30 = vmul.f32 1.442695, %v1925_v34  ;;  %v1959_v10 = vmul.f32 1.442695, %v1949_v16  ;;  %v1094_v13 = vmul.f32 %v6348_v52, %v4696_v19 }
 0x159   : > { %v1983_v44 = vmul.f32 1.442695, %v1973_v62  ;;  %v958_v2 = vadd.f32 %v950_v48, %v940_v53  ;;  %v1112_v57 = vmul.f32 %v6349_v15, %v4698_v29  ;;  %v1130_v42 = vmul.f32 %v6350_v28, %v4708_v3  ;;  %v6352_v7 = vld [vmem:[#allocation46_spill] sm:$0xff]  ;;  %v6353_v52 = vld [vmem:[#allocation47_spill] sm:$0xff]  ;;  %v6354_v53 = vld [vmem:[#allocation48_spill] sm:$0xff] }
 0x15a   : > { %3204 = vpow2.f32 %v1911_v1  ;;  %v1102_v20 = vadd.f32 %v1094_v13, %v1084_v50  ;;  %v1148_v36 = vmul.f32 %v6351_v26, %v4710_v60  ;;  %v1166_v34 = vmul.f32 %v6352_v7, %v4735_v39  ;;  %v6355_v28 = vld [vmem:[#allocation49_spill] sm:$0xff]  ;;  %v6356_v50 = vld [vmem:[#allocation50_spill] sm:$0xff]  ;;  %v6357_v7 = vld [vmem:[#allocation51_spill] sm:$0xff] }
 0x15b   : > { %3206 = vpow2.f32 %v1935_v30  ;;  %v976_v16 = vadd.f32 %v968_v11, %v958_v2  ;;  %v1184_v62 = vmul.f32 %v6353_v52, %v4737_v12  ;;  %v1202_v48 = vmul.f32 %v6354_v53, %v4745_v33  ;;  %v6358_v11 = vld [vmem:[#allocation52_spill] sm:$0xff]  ;;  %v6359_v45 = vld [vmem:[#allocation53_spill] sm:$0xff] }
 0x15c   : > { %3208 = vpow2.f32 %v1959_v10  ;;  %v1120_v15 = vadd.f32 %v1112_v57, %v1102_v20  ;;  %v1220_v1 = vmul.f32 %v6355_v28, %v4751_v27  ;;  %v1238_v13 = vmul.f32 %v6356_v50, %v4755_v51  ;;  %v6360_v10 = vld [vmem:[#allocation54_spill] sm:$0xff]  ;;  %v6361_v20 = vld [vmem:[#allocation55_spill] sm:$0xff] }
 0x15d   : > { %3210 = vpow2.f32 %v1983_v44  ;;  %v994_v26 = vadd.f32 %v986_v37, %v976_v16  ;;  %v1264_v30 = vmul.f32 %v6357_v7, %v4679_v0  ;;  %v1274_v2 = vmul.f32 %v6358_v11, %v4696_v19  ;;  %v6362_v37 = vld [vmem:[#allocation56_spill] sm:$0xff]  ;;  %v6363_v16 = vld [vmem:[#allocation57_spill] sm:$0xff]  ;;  %v6365_v11 = vld [vmem:[#allocation59_spill] sm:$0xff] }
 0x15e   : > { %v1138_v52 = vadd.f32 %v1130_v42, %v1120_v15  ;;  %v1292_v53 = vmul.f32 %v6359_v45, %v4698_v29  ;;  %v1310_v57 = vmul.f32 %v6360_v10, %v4708_v3  ;;  %v1328_v28 = vmul.f32 %v6361_v20, %v4710_v60  ;;  %v6364_v42 = vld [vmem:[#allocation58_spill] sm:$0xff] }
 0x15f   : > { %v1012_v35 = vadd.f32 %v1004_v22, %v994_v26  ;;  %v1282_v50 = vadd.f32 %v1274_v2, %v1264_v30  ;;  %v1346_v44 = vmul.f32 %v6362_v37, %v4735_v39  ;;  %v1364_v7 = vmul.f32 %v6363_v16, %v4737_v12  ;;  %v6368_v2 = vld [vmem:[#allocation61_spill] sm:$0xff]  ;;  %v6369_v37 = vld [vmem:[#allocation62_spill] sm:$0xff] }
 0x160   : > { %v4801_v5 = vpop.eup %3204  ;;  %v1156_v15 = vadd.f32 %v1148_v36, %v1138_v52  ;;  %v1382_v45 = vmul.f32 %v6364_v42, %v4745_v33  ;;  %v1400_v10 = vmul.f32 %v6365_v11, %v4751_v27  ;;  %v4809_v20 = vmul.f32 %v6366_v63, %v4755_v51 }
 0x161   : > { %v4811_v22 = vpop.eup %3206  ;;  %v1030_v26 = vadd.f32 %v1022_v56, %v1012_v35  ;;  %v1300_v30 = vadd.f32 %v1292_v53, %v1282_v50  ;;  %v1444_v16 = vmul.f32 %v6368_v2, %v4679_v0  ;;  %v1454_v52 = vmul.f32 %v6369_v37, %v4696_v19 }
 0x162   : > { %6367 = vst [vmem:[#allocation66_spill] sm:$0xff] %v4811_v22  ;;  %v4817_v36 = vpop.eup %3208  ;;  %v1997_v11 = vadd.f32 %v4811_v22, %v4801_v5  ;;  %v1174_v42 = vadd.f32 %v1166_v34, %v1156_v15  ;;  %v1472_v63 = vmul.f32 %v4282_v49, %v4698_v29  ;;  %v1490_v35 = vmul.f32 %v6371_v54, %v4708_v3  ;;  %v4835_v15 = vld [vmem:[%s3959_s20 + $0x20] sm:$0xff] }
 0x163   : > { %6370 = vst [vmem:[#allocation69_spill] sm:$0xff] %v4817_v36  ;;  %v4825_v56 = vpop.eup %3210  ;;  %v1048_v0 = vadd.f32 %v1040_v40, %v1030_v26  ;;  %v1318_v53 = vadd.f32 %v1310_v57, %v1300_v30  ;;  %v1462_v50 = vadd.f32 %v1454_v52, %v1444_v16  ;;  %v1508_v19 = vmul.f32 %v4292_v43, %v4710_v60  ;;  %v4840_v57 = vld [vmem:[%s3959_s20 + $0x60] sm:$0xff] }
 0x164   : > { %6372 = vst [vmem:[#allocation73_spill] sm:$0xff] %v4825_v56  ;;  %v2005_v37 = vadd.f32 %v4817_v36, %v1997_v11  ;;  %v1192_v2 = vadd.f32 %v1184_v62, %v1174_v42  ;;  %v1526_v34 = vmul.f32 %v4296_v14, %v4735_v39  ;;  %v1544_v29 = vmul.f32 %v4302_v46, %v4737_v12 }
 0x165   : > { %v1066_v3 = vadd.f32 %v1058_v9, %v1048_v0  ;;  %v1336_v22 = vadd.f32 %v1328_v28, %v1318_v53  ;;  %v1480_v54 = vadd.f32 %v1472_v63, %v1462_v50  ;;  %v1562_v40 = vmul.f32 %v4306_v4, %v4745_v33 }
 0x166   : > { %v2013_v60 = vadd.f32 %v4825_v56, %v2005_v37  ;;  %v1210_v11 = vadd.f32 %v1202_v48, %v1192_v2  ;;  %v1580_v62 = vmul.f32 %v4312_v25, %v4751_v27  ;;  %v1598_v39 = vmul.f32 %v4316_v59, %v4755_v51  ;;  %v6374_v56 = vld [vmem:[#allocation19_spill] sm:$0xff] }
 0x167   : > { %v1074_v12 = vmax.f32 %v1066_v3, 0.0  ;;  %v1354_v16 = vadd.f32 %v1346_v44, %v1336_v22  ;;  %v1498_v42 = vadd.f32 %v1490_v35, %v1480_v54  ;;  %v545_v63 = vmul.f32 %v6255_v18, %v4835_v15 }
 0x168   : > { %3212 = vrcp.f32 %v2013_v60  ;;  %v1228_v9 = vadd.f32 %v1220_v1, %v1210_v11  ;;  %v555_v33 = vmul.f32 %v4840_v57, %v6256_v17  ;;  %v581_v28 = vmul.f32 %v6257_v31, %v4835_v15 }
 0x169   : > { %v1372_v48 = vadd.f32 %v1364_v7, %v1354_v16  ;;  %v1516_v37 = vadd.f32 %v1508_v19, %v1498_v42  ;;  %v1624_v27 = vmul.f32 %v4322_v61, %v1074_v12  ;;  %v1688_v51 = vmul.f32 %v4344_v23, %v1074_v12  ;;  %v6373_v16 = vld [vmem:[#allocation76_spill] sm:$0xff] }
 0x16a   : > { %v1246_v26 = vadd.f32 %v1238_v13, %v1228_v9  ;;  %v1752_v54 = vmul.f32 %v6254_v55, %v1074_v12  ;;  %v1816_v44 = vmul.f32 %v4382_v47, %v1074_v12  ;;  %v563_v22 = vadd.f32 %v555_v33, %v545_v63 }
 0x16b   : > { %v1390_v30 = vadd.f32 %v1382_v45, %v1372_v48  ;;  %v1534_v1 = vadd.f32 %v1526_v34, %v1516_v37  ;;  %v591_v2 = vmul.f32 %v4840_v57, %v6258_v8  ;;  %v617_v52 = vmul.f32 %v6260_v41, %v4835_v15 }
 0x16c   : > { %v1254_v7 = vmax.f32 %v1246_v26, 0.0  ;;  %v4861_v35 = vmax.f32 %v563_v22, 0.0  ;;  %v627_v0 = vmul.f32 %v4840_v57, %v6262_v21  ;;  %v653_v13 = vmul.f32 %v6264_v38, %v4835_v15 }
 0x16d   : > { %v1408_v53 = vadd.f32 %v1400_v10, %v1390_v30  ;;  %v1552_v50 = vadd.f32 %v1544_v29, %v1534_v1  ;;  %v599_v19 = vadd.f32 %v591_v2, %v581_v28  ;;  %v663_v45 = vmul.f32 %v4840_v57, %v6265_v24  ;;  %v6375_v24 = vld [vmem:[#allocation20_spill] sm:$0xff] }
 0x16e   : > { %v3213_v34 = vpop.eup %3212  ;;  %v1634_v3 = vmul.f32 %v6315_v58, %v1254_v7  ;;  %v1698_v11 = vmul.f32 %v6316_v6, %v1254_v7  ;;  %v1762_v12 = vmul.f32 %v6317_v32, %v1254_v7  ;;  %v1826_v42 = vmul.f32 %v6373_v16, %v1254_v7 }
 0x16f   : > { %v2029_v63 = vmul.f32 %v3213_v34, %v2013_v60  ;;  %v1426_v9 = vadd.f32 %v4809_v20, %v1408_v53  ;;  %v1570_v33 = vadd.f32 %v1562_v40, %v1552_v50  ;;  %v4874_v48 = vmax.f32 %v599_v19, 0.0  ;;  %v6376_v20 = vld [vmem:[#allocation21_spill] sm:$0xff] }
 0x170   : > { %v1642_v10 = vadd.f32 %v1634_v3, %v1624_v27  ;;  %v1706_v29 = vadd.f32 %v1698_v11, %v1688_v51  ;;  %v1770_v28 = vadd.f32 %v1762_v12, %v1752_v54  ;;  %v1834_v37 = vadd.f32 %v1826_v42, %v1816_v44  ;;  %v6378_v51 = vld [vmem:[#allocation67_spill] sm:$0xff]  ;;  %v6379_v44 = vld [vmem:[#allocation70_spill] sm:$0xff] }
 0x171   : > { %v2037_v26 = vsub.f32 2.0, %v2029_v63  ;;  %v1434_v22 = vmax.f32 %v1426_v9, 0.0  ;;  %v1588_v30 = vadd.f32 %v1580_v62, %v1570_v33  ;;  %v635_v1 = vadd.f32 %v627_v0, %v617_v52  ;;  %v6380_v62 = vld [vmem:[#allocation74_spill] sm:$0xff]  ;;  %v6381_v0 = vld [vmem:[#allocation77_spill] sm:$0xff]  ;;  %v6383_v33 = vld [vmem:[#allocation68_spill] sm:$0xff] }
 0x172   : > { %v671_v2 = vadd.f32 %v663_v45, %v653_v13  ;;  %v689_v36 = vmul.f32 %v6374_v56, %v4835_v15  ;;  %v699_v60 = vmul.f32 %v4840_v57, %v6375_v24  ;;  %v725_v40 = vmul.f32 %v6376_v20, %v4835_v15  ;;  %v6382_v63 = vld [vmem:[#allocation22_spill] sm:$0xff]  ;;  %v6424_v24 = vld [vmem:[#allocation60_spill] sm:$0xff] }
 0x173   : > { %v4882_v7 = vmul.f32 %v3213_v34, %v2037_v26  ;;  %v1606_v27 = vadd.f32 %v1598_v39, %v1588_v30  ;;  %v1652_v54 = vmul.f32 %v6378_v51, %v1434_v22  ;;  %v1716_v53 = vmul.f32 %v6379_v44, %v1434_v22  ;;  %v6429_v56 = vld [vmem:[#allocation64_spill] sm:$0xff] }
 0x174   : > { %v1780_v52 = vmul.f32 %v6380_v62, %v1434_v22  ;;  %v1844_v13 = vmul.f32 %v6381_v0, %v1434_v22  ;;  %v4888_v50 = vmax.f32 %v635_v1, 0.0  ;;  %v4890_v19 = vmax.f32 %v671_v2, 0.0  ;;  %v6384_v22 = vld [vmem:[#allocation71_spill] sm:$0xff]  ;;  %v6386_v0 = vld [vmem:[#allocation78_spill] sm:$0xff] }
 0x175   : > { %6377 = vst [vmem:[#allocation76_spill] sm:$0xff] %v4882_v7  ;;  %v2053_v45 = vmul.f32 %v4801_v5, %v4882_v7  ;;  %v1614_v3 = vmax.f32 %v1606_v27, 0.0  ;;  %v1660_v34 = vadd.f32 %v1652_v54, %v1642_v10  ;;  %v1724_v11 = vadd.f32 %v1716_v53, %v1706_v29  ;;  %v6385_v1 = vld [vmem:[#allocation75_spill] sm:$0xff] }
 0x176   : > { %v1788_v12 = vadd.f32 %v1780_v52, %v1770_v28  ;;  %v1852_v39 = vadd.f32 %v1844_v13, %v1834_v37  ;;  %v707_v42 = vadd.f32 %v699_v60, %v689_v36  ;;  %v735_v9 = vmul.f32 %v4840_v57, %v6382_v63  ;;  %v6387_v10 = vld [vmem:[#allocation23_spill] sm:$0xff]  ;;  %v6388_v28 = vld [vmem:[#allocation24_spill] sm:$0xff]  ;;  %v6389_v13 = vld [vmem:[#allocation25_spill] sm:$0xff] }
 0x177   : > { %2061 = vst [vmem:[%s4579_s15 + $0x10] sm:$0xff] %v2053_v45  ;;  %v1670_v26 = vmul.f32 %v6383_v33, %v1614_v3  ;;  %v1734_v30 = vmul.f32 %v6384_v22, %v1614_v3  ;;  %v1798_v2 = vmul.f32 %v6385_v1, %v1614_v3  ;;  %v1862_v62 = vmul.f32 %v6386_v0, %v1614_v3  ;;  %v6390_v3 = vld [vmem:[#allocation26_spill] sm:$0xff]  ;;  %v6407_v63 = vld [vmem:[#allocation43_spill] sm:$0xff] }
 0x178   : > { %v4901_v44 = vmax.f32 %v707_v42, 0.0  ;;  %v743_v5 = vadd.f32 %v735_v9, %v725_v40  ;;  %v761_v29 = vmul.f32 %v6387_v10, %v4835_v15  ;;  %v771_v36 = vmul.f32 %v4840_v57, %v6388_v28  ;;  %v6391_v9 = vld [vmem:[#allocation27_spill] sm:$0xff]  ;;  %v6392_v10 = vld [vmem:[#allocation28_spill] sm:$0xff]  ;;  %v6406_v22 = vld [vmem:[#allocation42_spill] sm:$0xff] }
 0x179   : > { %v1678_v37 = vadd.f32 %v1670_v26, %v1660_v34  ;;  %v1742_v60 = vadd.f32 %v1734_v30, %v1724_v11  ;;  %v1806_v27 = vadd.f32 %v1798_v2, %v1788_v12  ;;  %v1870_v54 = vadd.f32 %v1862_v62, %v1852_v39  ;;  %v6393_v34 = vld [vmem:[#allocation29_spill] sm:$0xff]  ;;  %v6394_v39 = vld [vmem:[#allocation30_spill] sm:$0xff]  ;;  %v6395_v30 = vld [vmem:[#allocation31_spill] sm:$0xff] }
 0x17a   : > { %v4907_v53 = vmax.f32 %v743_v5, 0.0  ;;  %v779_v52 = vadd.f32 %v771_v36, %v761_v29  ;;  %v797_v45 = vmul.f32 %v6389_v13, %v4835_v15  ;;  %v807_v42 = vmul.f32 %v4840_v57, %v6390_v3  ;;  %v6396_v36 = vld [vmem:[#allocation32_spill] sm:$0xff]  ;;  %v6397_v3 = vld [vmem:[#allocation33_spill] sm:$0xff] }
 0x17b   : > { %v1878_v40 = vmax.f32 %v1678_v37, %v1742_v60  ;;  %v833_v7 = vmul.f32 %v6391_v9, %v4835_v15  ;;  %v843_v28 = vmul.f32 %v4840_v57, %v6392_v10  ;;  %v869_v11 = vmul.f32 %v6393_v34, %v4835_v15 }
 0x17c   : > { %v4919_v62 = vmax.f32 %v779_v52, 0.0  ;;  %v815_v12 = vadd.f32 %v807_v42, %v797_v45  ;;  %v879_v26 = vmul.f32 %v4840_v57, %v6394_v39  ;;  %v905_v2 = vmul.f32 %v6395_v30, %v4861_v35  ;;  %v6398_v52 = vld [vmem:[#allocation34_spill] sm:$0xff]  ;;  %v6399_v42 = vld [vmem:[#allocation35_spill] sm:$0xff] }
 0x17d   : > { %v1886_v5 = vmax.f32 %v1878_v40, %v1806_v27  ;;  %v851_v29 = vadd.f32 %v843_v28, %v833_v7  ;;  %v915_v9 = vmul.f32 %v6396_v36, %v4874_v48  ;;  %v933_v10 = vmul.f32 %v6397_v3, %v4888_v50  ;;  %v6400_v7 = vld [vmem:[#allocation36_spill] sm:$0xff]  ;;  %v6401_v3 = vld [vmem:[#allocation37_spill] sm:$0xff] }
 0x17e   : > { %v4929_v13 = vmax.f32 %v815_v12, 0.0  ;;  %v887_v15 = vadd.f32 %v879_v26, %v869_v11  ;;  %v951_v45 = vmul.f32 %v6398_v52, %v4890_v19  ;;  %v969_v57 = vmul.f32 %v6399_v42, %v4901_v44  ;;  %v6402_v11 = vld [vmem:[#allocation38_spill] sm:$0xff]  ;;  %v6403_v52 = vld [vmem:[#allocation41_spill] sm:$0xff] }
 0x17f   : > { %v1894_v39 = vmax.f32 %v1886_v5, %v1870_v54  ;;  %v4935_v34 = vmax.f32 %v851_v29, 0.0  ;;  %v923_v40 = vadd.f32 %v915_v9, %v905_v2  ;;  %v987_v28 = vmul.f32 %v6400_v7, %v4907_v53  ;;  %v6404_v9 = vld [vmem:[#allocation39_spill] sm:$0xff] }
 0x180   : > { %v4939_v36 = vmax.f32 %v887_v15, 0.0  ;;  %v1005_v12 = vmul.f32 %v6401_v3, %v4919_v62  ;;  %v1023_v26 = vmul.f32 %v6402_v11, %v4929_v13  ;;  %v1085_v30 = vmul.f32 %v6403_v52, %v4861_v35  ;;  %v6405_v15 = vld [vmem:[#allocation40_spill] sm:$0xff] }
 0x181   : > { %v1902_v0 = vsub.f32 %v1678_v37, %v1894_v39  ;;  %v1926_v42 = vsub.f32 %v1742_v60, %v1894_v39  ;;  %v1950_v5 = vsub.f32 %v1806_v27, %v1894_v39  ;;  %v1974_v29 = vsub.f32 %v1870_v54, %v1894_v39  ;;  %v6409_v39 = vld [vmem:[#allocation45_spill] sm:$0xff] }
 0x182   : > { %v941_v1 = vadd.f32 %v933_v10, %v923_v40  ;;  %v1041_v2 = vmul.f32 %v6404_v9, %v4935_v34  ;;  %v1059_v7 = vmul.f32 %v6405_v15, %v4939_v36  ;;  %v1095_v3 = vmul.f32 %v6406_v22, %v4874_v48  ;;  %v6408_v10 = vld [vmem:[#allocation44_spill] sm:$0xff]  ;;  %v6410_v15 = vld [vmem:[#allocation46_spill] sm:$0xff] }
 0x183   : > { %v1913_v33 = vmul.f32 1.442695, %v1902_v0  ;;  %v1937_v51 = vmul.f32 1.442695, %v1926_v42  ;;  %v1961_v11 = vmul.f32 1.442695, %v1950_v5  ;;  %v1113_v52 = vmul.f32 %v6407_v63, %v4888_v50 }
 0x184   : > { %v1985_v37 = vmul.f32 1.442695, %v1974_v29  ;;  %v959_v60 = vadd.f32 %v951_v45, %v941_v1  ;;  %v1103_v27 = vadd.f32 %v1095_v3, %v1085_v30  ;;  %v1131_v54 = vmul.f32 %v6408_v10, %v4890_v19  ;;  %v6411_v0 = vld [vmem:[#allocation47_spill] sm:$0xff]  ;;  %v6412_v29 = vld [vmem:[#allocation48_spill] sm:$0xff]  ;;  %v6413_v3 = vld [vmem:[#allocation49_spill] sm:$0xff] }
 0x185   : > { %3214 = vpow2.f32 %v1913_v33  ;;  %v1149_v40 = vmul.f32 %v6409_v39, %v4901_v44  ;;  %v1167_v9 = vmul.f32 %v6410_v15, %v4907_v53  ;;  %v1185_v42 = vmul.f32 %v6411_v0, %v4919_v62  ;;  %v6414_v33 = vld [vmem:[#allocation50_spill] sm:$0xff]  ;;  %v6415_v39 = vld [vmem:[#allocation51_spill] sm:$0xff] }
 0x186   : > { %3216 = vpow2.f32 %v1937_v51  ;;  %v977_v5 = vadd.f32 %v969_v57, %v959_v60  ;;  %v1121_v22 = vadd.f32 %v1113_v52, %v1103_v27  ;;  %v1203_v1 = vmul.f32 %v6412_v29, %v4929_v13  ;;  %v6416_v51 = vld [vmem:[#allocation52_spill] sm:$0xff]  ;;  %v6417_v52 = vld [vmem:[#allocation53_spill] sm:$0xff] }
 0x187   : > { %3218 = vpow2.f32 %v1961_v11  ;;  %v1221_v30 = vmul.f32 %v6413_v3, %v4935_v34  ;;  %v1239_v45 = vmul.f32 %v6414_v33, %v4939_v36  ;;  %v1265_v10 = vmul.f32 %v6415_v39, %v4861_v35  ;;  %v6418_v11 = vld [vmem:[#allocation54_spill] sm:$0xff]  ;;  %v6419_v3 = vld [vmem:[#allocation55_spill] sm:$0xff]  ;;  %v6420_v33 = vld [vmem:[#allocation56_spill] sm:$0xff] }
 0x188   : > { %3220 = vpow2.f32 %v1985_v37  ;;  %v995_v15 = vadd.f32 %v987_v28, %v977_v5  ;;  %v1139_v63 = vadd.f32 %v1131_v54, %v1121_v22  ;;  %v1275_v57 = vmul.f32 %v6416_v51, %v4874_v48  ;;  %v6421_v22 = vld [vmem:[#allocation57_spill] sm:$0xff]  ;;  %v6422_v5 = vld [vmem:[#allocation58_spill] sm:$0xff]  ;;  %v6423_v51 = vld [vmem:[#allocation59_spill] sm:$0xff] }
 0x189   : > { %v1293_v60 = vmul.f32 %v6417_v52, %v4888_v50  ;;  %v1311_v27 = vmul.f32 %v6418_v11, %v4890_v19  ;;  %v1329_v29 = vmul.f32 %v6419_v3, %v4901_v44  ;;  %v1347_v0 = vmul.f32 %v6420_v33, %v4907_v53  ;;  %v6425_v33 = vld [vmem:[#allocation61_spill] sm:$0xff] }
 0x18a   : > { %v1013_v20 = vadd.f32 %v1005_v12, %v995_v15  ;;  %v1157_v39 = vadd.f32 %v1149_v40, %v1139_v63  ;;  %v1283_v37 = vadd.f32 %v1275_v57, %v1265_v10  ;;  %v1365_v28 = vmul.f32 %v6421_v22, %v4919_v62  ;;  %v6427_v57 = vld [vmem:[#allocation62_spill] sm:$0xff] }
 0x18b   : > { %v4983_v54 = vpop.eup %3214  ;;  %v1383_v52 = vmul.f32 %v6422_v5, %v4929_v13  ;;  %v1401_v11 = vmul.f32 %v6423_v51, %v4935_v34  ;;  %v4991_v3 = vmul.f32 %v6424_v24, %v4939_v36  ;;  %v1445_v12 = vmul.f32 %v6425_v33, %v4861_v35 }
 0x18c   : > { %v4995_v63 = vpop.eup %3216  ;;  %v1031_v15 = vadd.f32 %v1023_v26, %v1013_v20  ;;  %v1175_v10 = vadd.f32 %v1167_v9, %v1157_v39  ;;  %v1301_v40 = vadd.f32 %v1293_v60, %v1283_v37  ;;  %v1455_v22 = vmul.f32 %v6427_v57, %v4874_v48  ;;  %v5012_v37 = vld [vmem:[%s3959_s20 + $0x28] sm:$0xff] }
 0x18d   : > { %6426 = vst [vmem:[#allocation79_spill] sm:$0xff] %v4995_v63  ;;  %v4999_v5 = vpop.eup %3218  ;;  %v1998_v51 = vadd.f32 %v4995_v63, %v4983_v54  ;;  %v1473_v24 = vmul.f32 %v4282_v49, %v4888_v50  ;;  %v1491_v35 = vmul.f32 %v6429_v56, %v4890_v19  ;;  %v1509_v20 = vmul.f32 %v4292_v43, %v4901_v44 }
 0x18e   : > { %6428 = vst [vmem:[#allocation80_spill] sm:$0xff] %v4999_v5  ;;  %v5009_v26 = vpop.eup %3220  ;;  %v1049_v9 = vadd.f32 %v1041_v2, %v1031_v15  ;;  %v1193_v39 = vadd.f32 %v1185_v42, %v1175_v10  ;;  %v1319_v48 = vadd.f32 %v1311_v27, %v1301_v40  ;;  %v1463_v60 = vadd.f32 %v1455_v22, %v1445_v12  ;;  %v5022_v42 = vld [vmem:[%s3959_s20 + $0x68] sm:$0xff] }
 0x18f   : > { %6430 = vst [vmem:[#allocation81_spill] sm:$0xff] %v5009_v26  ;;  %v2006_v63 = vadd.f32 %v4999_v5, %v1998_v51  ;;  %v1527_v50 = vmul.f32 %v4296_v14, %v4907_v53  ;;  %v1545_v19 = vmul.f32 %v4302_v46, %v4919_v62  ;;  %v1563_v56 = vmul.f32 %v4306_v4, %v4929_v13 }
 0x190   : > { %v1067_v44 = vadd.f32 %v1059_v7, %v1049_v9  ;;  %v1211_v43 = vadd.f32 %v1203_v1, %v1193_v39  ;;  %v1337_v49 = vadd.f32 %v1329_v29, %v1319_v48  ;;  %v1481_v2 = vadd.f32 %v1473_v24, %v1463_v60 }
 0x191   : > { %v2014_v27 = vadd.f32 %v5009_v26, %v2006_v63  ;;  %v1581_v51 = vmul.f32 %v4312_v25, %v4935_v34  ;;  %v1599_v53 = vmul.f32 %v4316_v59, %v4939_v36  ;;  %v546_v62 = vmul.f32 %v6255_v18, %v5012_v37 }
 0x192   : > { %v1075_v22 = vmax.f32 %v1067_v44, 0.0  ;;  %v1229_v12 = vadd.f32 %v1221_v30, %v1211_v43  ;;  %v1355_v13 = vadd.f32 %v1347_v0, %v1337_v49  ;;  %v1499_v7 = vadd.f32 %v1491_v35, %v1481_v2 }
 0x193   : > { %3222 = vrcp.f32 %v2014_v27  ;;  %v556_v24 = vmul.f32 %v5022_v42, %v6256_v17  ;;  %v582_v29 = vmul.f32 %v6257_v31, %v5012_v37  ;;  %v592_v34 = vmul.f32 %v5022_v42, %v6258_v8 }
 0x194   : > { %v1247_v1 = vadd.f32 %v1239_v45, %v1229_v12  ;;  %v1373_v63 = vadd.f32 %v1365_v28, %v1355_v13  ;;  %v1517_v36 = vadd.f32 %v1509_v20, %v1499_v7  ;;  %v1625_v15 = vmul.f32 %v4322_v61, %v1075_v22 }
 0x195   : > { %v1689_v10 = vmul.f32 %v4344_v23, %v1075_v22  ;;  %v1753_v49 = vmul.f32 %v6254_v55, %v1075_v22  ;;  %v1817_v43 = vmul.f32 %v4382_v47, %v1075_v22  ;;  %v564_v0 = vadd.f32 %v556_v24, %v546_v62 }
 0x196   : > { %v1255_v30 = vmax.f32 %v1247_v1, 0.0  ;;  %v1391_v40 = vadd.f32 %v1383_v52, %v1373_v63  ;;  %v1535_v35 = vadd.f32 %v1527_v50, %v1517_v36  ;;  %v600_v9 = vadd.f32 %v592_v34, %v582_v29 }
 0x197   : > { %v5041_v39 = vmax.f32 %v564_v0, 0.0  ;;  %v618_v45 = vmul.f32 %v6260_v41, %v5012_v37  ;;  %v628_v28 = vmul.f32 %v5022_v42, %v6262_v21  ;;  %v654_v20 = vmul.f32 %v6264_v38, %v5012_v37 }
 0x198   : > { %v1409_v48 = vadd.f32 %v1401_v11, %v1391_v40  ;;  %v1553_v60 = vadd.f32 %v1545_v19, %v1535_v35  ;;  %v1635_v44 = vmul.f32 %v6315_v58, %v1255_v30  ;;  %v1699_v2 = vmul.f32 %v6316_v6, %v1255_v30  ;;  %v6431_v40 = vld [vmem:[#allocation18_spill] sm:$0xff] }
 0x199   : > { %v3223_v52 = vpop.eup %3222  ;;  %v1763_v50 = vmul.f32 %v6317_v32, %v1255_v30  ;;  %v1827_v62 = vmul.f32 %v6373_v16, %v1255_v30  ;;  %v5053_v22 = vmax.f32 %v600_v9, 0.0  ;;  %v636_v12 = vadd.f32 %v628_v28, %v618_v45  ;;  %v6432_v30 = vld [vmem:[#allocation19_spill] sm:$0xff]  ;;  %v6433_v45 = vld [vmem:[#allocation20_spill] sm:$0xff] }
 0x19a   : > { %v2030_v13 = vmul.f32 %v3223_v52, %v2014_v27  ;;  %v1427_v7 = vadd.f32 %v4991_v3, %v1409_v48  ;;  %v1571_v24 = vadd.f32 %v1563_v56, %v1553_v60  ;;  %v1643_v29 = vadd.f32 %v1635_v44, %v1625_v15  ;;  %v6434_v56 = vld [vmem:[#allocation21_spill] sm:$0xff]  ;;  %v6435_v15 = vld [vmem:[#allocation22_spill] sm:$0xff] }
 0x19b   : > { %v1707_v34 = vadd.f32 %v1699_v2, %v1689_v10  ;;  %v1771_v11 = vadd.f32 %v1763_v50, %v1753_v49  ;;  %v1835_v19 = vadd.f32 %v1827_v62, %v1817_v43  ;;  %v5056_v1 = vmax.f32 %v636_v12, 0.0  ;;  %v6438_v48 = vld [vmem:[#allocation70_spill] sm:$0xff]  ;;  %v6440_v50 = vld [vmem:[#allocation77_spill] sm:$0xff] }
 0x19c   : > { %v2038_v63 = vsub.f32 2.0, %v2030_v13  ;;  %v1435_v36 = vmax.f32 %v1427_v7, 0.0  ;;  %v1589_v0 = vadd.f32 %v1581_v51, %v1571_v24  ;;  %v664_v35 = vmul.f32 %v5022_v42, %v6431_v40  ;;  %v6437_v51 = vld [vmem:[#allocation67_spill] sm:$0xff]  ;;  %v6439_v44 = vld [vmem:[#allocation74_spill] sm:$0xff] }
 0x19d   : > { %v690_v9 = vmul.f32 %v6432_v30, %v5012_v37  ;;  %v700_v27 = vmul.f32 %v5022_v42, %v6433_v45  ;;  %v726_v3 = vmul.f32 %v6434_v56, %v5012_v37  ;;  %v736_v10 = vmul.f32 %v5022_v42, %v6435_v15  ;;  %v6482_v45 = vld [vmem:[#allocation60_spill] sm:$0xff] }
 0x19e   : > { %v5068_v49 = vmul.f32 %v3223_v52, %v2038_v63  ;;  %v1607_v43 = vadd.f32 %v1599_v53, %v1589_v0  ;;  %v1653_v28 = vmul.f32 %v6437_v51, %v1435_v36  ;;  %v1717_v60 = vmul.f32 %v6438_v48, %v1435_v36  ;;  %v6441_v0 = vld [vmem:[#allocation68_spill] sm:$0xff] }
 0x19f   : > { %v1781_v2 = vmul.f32 %v6439_v44, %v1435_v36  ;;  %v1845_v62 = vmul.f32 %v6440_v50, %v1435_v36  ;;  %v672_v12 = vadd.f32 %v664_v35, %v654_v20  ;;  %v708_v13 = vadd.f32 %v700_v27, %v690_v9  ;;  %v6442_v44 = vld [vmem:[#allocation71_spill] sm:$0xff]  ;;  %v6444_v35 = vld [vmem:[#allocation78_spill] sm:$0xff] }
 0x1a0   : > { %6436 = vst [vmem:[#allocation18_spill] sm:$0xff] %v5068_v49  ;;  %v2054_v7 = vmul.f32 %v4983_v54, %v5068_v49  ;;  %v1615_v24 = vmax.f32 %v1607_v43, 0.0  ;;  %v1661_v26 = vadd.f32 %v1653_v28, %v1643_v29  ;;  %v1725_v5 = vadd.f32 %v1717_v60, %v1707_v34  ;;  %v6443_v36 = vld [vmem:[#allocation75_spill] sm:$0xff]  ;;  %v6446_v34 = vld [vmem:[#allocation24_spill] sm:$0xff] }
 0x1a1   : > { %v1789_v52 = vadd.f32 %v1781_v2, %v1771_v11  ;;  %v1853_v63 = vadd.f32 %v1845_v62, %v1835_v19  ;;  %v5076_v15 = vmax.f32 %v672_v12, 0.0  ;;  %v5078_v53 = vmax.f32 %v708_v13, 0.0  ;;  %v6445_v54 = vld [vmem:[#allocation23_spill] sm:$0xff]  ;;  %v6447_v19 = vld [vmem:[#allocation25_spill] sm:$0xff] }
 0x1a2   : > { %2062 = vst [vmem:[%s4579_s15 + $0x18] sm:$0xff] %v2054_v7  ;;  %v1671_v48 = vmul.f32 %v6441_v0, %v1615_v24  ;;  %v1735_v51 = vmul.f32 %v6442_v44, %v1615_v24  ;;  %v1799_v20 = vmul.f32 %v6443_v36, %v1615_v24  ;;  %v1863_v9 = vmul.f32 %v6444_v35, %v1615_v24  ;;  %v6448_v7 = vld [vmem:[#allocation26_spill] sm:$0xff]  ;;  %v6451_v35 = vld [vmem:[#allocation29_spill] sm:$0xff]  ;;  %v6465_v50 = vld [vmem:[#allocation43_spill] sm:$0xff] }
 0x1a3   : > { %v744_v27 = vadd.f32 %v736_v10, %v726_v3  ;;  %v762_v29 = vmul.f32 %v6445_v54, %v5012_v37  ;;  %v772_v11 = vmul.f32 %v5022_v42, %v6446_v34  ;;  %v798_v43 = vmul.f32 %v6447_v19, %v5012_v37  ;;  %v6449_v3 = vld [vmem:[#allocation27_spill] sm:$0xff]  ;;  %v6450_v54 = vld [vmem:[#allocation28_spill] sm:$0xff] }
 0x1a4   : > { %v1679_v28 = vadd.f32 %v1671_v48, %v1661_v26  ;;  %v1743_v60 = vadd.f32 %v1735_v51, %v1725_v5  ;;  %v1807_v2 = vadd.f32 %v1799_v20, %v1789_v52  ;;  %v1871_v62 = vadd.f32 %v1863_v9, %v1853_v63  ;;  %v6452_v26 = vld [vmem:[#allocation30_spill] sm:$0xff]  ;;  %v6453_v52 = vld [vmem:[#allocation31_spill] sm:$0xff]  ;;  %v6454_v20 = vld [vmem:[#allocation32_spill] sm:$0xff] }
 0x1a5   : > { %v5091_v12 = vmax.f32 %v744_v27, 0.0  ;;  %v780_v13 = vadd.f32 %v772_v11, %v762_v29  ;;  %v808_v24 = vmul.f32 %v5022_v42, %v6448_v7  ;;  %v834_v10 = vmul.f32 %v6449_v3, %v5012_v37 }
 0x1a6   : > { %v1879_v49 = vmax.f32 %v1679_v28, %v1743_v60  ;;  %v844_v34 = vmul.f32 %v5022_v42, %v6450_v54  ;;  %v870_v19 = vmul.f32 %v6451_v35, %v5012_v37  ;;  %v880_v5 = vmul.f32 %v5022_v42, %v6452_v26  ;;  %v6455_v54 = vld [vmem:[#allocation33_spill] sm:$0xff]  ;;  %v6456_v42 = vld [vmem:[#allocation34_spill] sm:$0xff] }
 0x1a7   : > { %v5103_v51 = vmax.f32 %v780_v13, 0.0  ;;  %v816_v48 = vadd.f32 %v808_v24, %v798_v43  ;;  %v906_v63 = vmul.f32 %v6453_v52, %v5041_v39  ;;  %v916_v9 = vmul.f32 %v6454_v20, %v5053_v22  ;;  %v6457_v43 = vld [vmem:[#allocation35_spill] sm:$0xff] }
 0x1a8   : > { %v1887_v27 = vmax.f32 %v1879_v49, %v1807_v2  ;;  %v852_v29 = vadd.f32 %v844_v34, %v834_v10  ;;  %v888_v11 = vadd.f32 %v880_v5, %v870_v19  ;;  %v934_v3 = vmul.f32 %v6455_v54, %v5056_v1  ;;  %v6458_v49 = vld [vmem:[#allocation36_spill] sm:$0xff]  ;;  %v6459_v10 = vld [vmem:[#allocation37_spill] sm:$0xff] }
 0x1a9   : > { %v5111_v7 = vmax.f32 %v816_v48, 0.0  ;;  %v924_v37 = vadd.f32 %v916_v9, %v906_v63  ;;  %v952_v13 = vmul.f32 %v6456_v42, %v5076_v15  ;;  %v970_v24 = vmul.f32 %v6457_v43, %v5078_v53  ;;  %v6460_v48 = vld [vmem:[#allocation38_spill] sm:$0xff]  ;;  %v6461_v9 = vld [vmem:[#allocation41_spill] sm:$0xff] }
 0x1aa   : > { %v1895_v26 = vmax.f32 %v1887_v27, %v1871_v62  ;;  %v5117_v52 = vmax.f32 %v852_v29, 0.0  ;;  %v5119_v35 = vmax.f32 %v888_v11, 0.0  ;;  %v988_v34 = vmul.f32 %v6458_v49, %v5091_v12  ;;  %v6462_v11 = vld [vmem:[#allocation39_spill] sm:$0xff]  ;;  %v6463_v49 = vld [vmem:[#allocation40_spill] sm:$0xff] }
 0x1ab   : > { %v942_v19 = vadd.f32 %v934_v3, %v924_v37  ;;  %v1006_v5 = vmul.f32 %v6459_v10, %v5103_v51  ;;  %v1024_v63 = vmul.f32 %v6460_v48, %v5111_v7  ;;  %v1086_v42 = vmul.f32 %v6461_v9, %v5041_v39  ;;  %v6464_v37 = vld [vmem:[#allocation42_spill] sm:$0xff] }
 0x1ac   : > { %v1903_v54 = vsub.f32 %v1679_v28, %v1895_v26  ;;  %v1927_v43 = vsub.f32 %v1743_v60, %v1895_v26  ;;  %v1951_v27 = vsub.f32 %v1807_v2, %v1895_v26  ;;  %v1975_v29 = vsub.f32 %v1871_v62, %v1895_v26  ;;  %v6466_v62 = vld [vmem:[#allocation44_spill] sm:$0xff] }
 0x1ad   : > { %v960_v20 = vadd.f32 %v952_v13, %v942_v19  ;;  %v1042_v36 = vmul.f32 %v6462_v11, %v5117_v52  ;;  %v1060_v3 = vmul.f32 %v6463_v49, %v5119_v35  ;;  %v1096_v10 = vmul.f32 %v6464_v37, %v5053_v22  ;;  %v6467_v13 = vld [vmem:[#allocation45_spill] sm:$0xff]  ;;  %v6468_v49 = vld [vmem:[#allocation46_spill] sm:$0xff] }
 0x1ae   : > { %v1915_v44 = vmul.f32 1.442695, %v1903_v54  ;;  %v1939_v0 = vmul.f32 1.442695, %v1927_v43  ;;  %v1963_v48 = vmul.f32 1.442695, %v1951_v27  ;;  %v1114_v9 = vmul.f32 %v6465_v50, %v5056_v1 }
 0x1af   : > { %v1987_v28 = vmul.f32 1.442695, %v1975_v29  ;;  %v978_v60 = vadd.f32 %v970_v24, %v960_v20  ;;  %v1104_v2 = vadd.f32 %v1096_v10, %v1086_v42  ;;  %v1132_v26 = vmul.f32 %v6466_v62, %v5076_v15  ;;  %v6469_v54 = vld [vmem:[#allocation47_spill] sm:$0xff]  ;;  %v6470_v29 = vld [vmem:[#allocation48_spill] sm:$0xff]  ;;  %v6471_v42 = vld [vmem:[#allocation49_spill] sm:$0xff] }
 0x1b0   : > { %3224 = vpow2.f32 %v1915_v44  ;;  %v1150_v19 = vmul.f32 %v6467_v13, %v5078_v53  ;;  %v1168_v11 = vmul.f32 %v6468_v49, %v5091_v12  ;;  %v1186_v43 = vmul.f32 %v6469_v54, %v5103_v51  ;;  %v6472_v44 = vld [vmem:[#allocation50_spill] sm:$0xff]  ;;  %v6473_v13 = vld [vmem:[#allocation51_spill] sm:$0xff] }
 0x1b1   : > { %3226 = vpow2.f32 %v1939_v0  ;;  %v996_v27 = vadd.f32 %v988_v34, %v978_v60  ;;  %v1122_v37 = vadd.f32 %v1114_v9, %v1104_v2  ;;  %v1204_v20 = vmul.f32 %v6470_v29, %v5111_v7  ;;  %v6474_v0 = vld [vmem:[#allocation52_spill] sm:$0xff]  ;;  %v6475_v9 = vld [vmem:[#allocation53_spill] sm:$0xff] }
 0x1b2   : > { %3228 = vpow2.f32 %v1963_v48  ;;  %v1222_v24 = vmul.f32 %v6471_v42, %v5117_v52  ;;  %v1240_v10 = vmul.f32 %v6472_v44, %v5119_v35  ;;  %v1266_v62 = vmul.f32 %v6473_v13, %v5041_v39  ;;  %v6476_v48 = vld [vmem:[#allocation54_spill] sm:$0xff]  ;;  %v6477_v42 = vld [vmem:[#allocation55_spill] sm:$0xff]  ;;  %v6478_v44 = vld [vmem:[#allocation56_spill] sm:$0xff] }
 0x1b3   : > { %3230 = vpow2.f32 %v1987_v28  ;;  %v1014_v49 = vadd.f32 %v1006_v5, %v996_v27  ;;  %v1140_v50 = vadd.f32 %v1132_v26, %v1122_v37  ;;  %v1276_v34 = vmul.f32 %v6474_v0, %v5053_v22  ;;  %v6479_v5 = vld [vmem:[#allocation57_spill] sm:$0xff]  ;;  %v6480_v27 = vld [vmem:[#allocation58_spill] sm:$0xff]  ;;  %v6481_v0 = vld [vmem:[#allocation59_spill] sm:$0xff] }
 0x1b4   : > { %v1294_v60 = vmul.f32 %v6475_v9, %v5056_v1  ;;  %v1312_v2 = vmul.f32 %v6476_v48, %v5076_v15  ;;  %v1330_v29 = vmul.f32 %v6477_v42, %v5078_v53  ;;  %v1348_v54 = vmul.f32 %v6478_v44, %v5091_v12  ;;  %v6486_v44 = vld [vmem:[#allocation64_spill] sm:$0xff] }
 0x1b5   : > { %v1032_v56 = vadd.f32 %v1024_v63, %v1014_v49  ;;  %v1158_v13 = vadd.f32 %v1150_v19, %v1140_v50  ;;  %v1284_v28 = vadd.f32 %v1276_v34, %v1266_v62  ;;  %v1366_v37 = vmul.f32 %v6479_v5, %v5103_v51 }
 0x1b6   : > { %v5165_v26 = vpop.eup %3224  ;;  %v1384_v9 = vmul.f32 %v6480_v27, %v5111_v7  ;;  %v1402_v48 = vmul.f32 %v6481_v0, %v5117_v52  ;;  %v5173_v42 = vmul.f32 %v6482_v45, %v5119_v35  ;;  %v1446_v49 = vmul.f32 %v6425_v33, %v5041_v39  ;;  %v6485_v45 = vld [vmem:[#allocation63_spill] sm:$0xff]  ;;  %v6487_v33 = vld [vmem:[#allocation65_spill] sm:$0xff] }
 0x1b7   : > { %v5177_v50 = vpop.eup %3226  ;;  %v1050_v63 = vadd.f32 %v1042_v36, %v1032_v56  ;;  %v1176_v62 = vadd.f32 %v1168_v11, %v1158_v13  ;;  %v1302_v19 = vadd.f32 %v1294_v60, %v1284_v28  ;;  %v1456_v34 = vmul.f32 %v6427_v57, %v5053_v22  ;;  %v5194_v60 = vld [vmem:[%s3959_s20 + $0x30] sm:$0xff] }
 0x1b8   : > { %6483 = vst [vmem:[#allocation82_spill] sm:$0xff] %v5177_v50  ;;  %v5181_v27 = vpop.eup %3228  ;;  %v1999_v0 = vadd.f32 %v5177_v50, %v5165_v26  ;;  %v1474_v5 = vmul.f32 %v6485_v45, %v5056_v1  ;;  %v1492_v39 = vmul.f32 %v6486_v44, %v5076_v15  ;;  %v1510_v30 = vmul.f32 %v6487_v33, %v5078_v53 }
 0x1b9   : > { %6484 = vst [vmem:[#allocation83_spill] sm:$0xff] %v5181_v27  ;;  %v5191_v56 = vpop.eup %3230  ;;  %v1068_v36 = vadd.f32 %v1060_v3, %v1050_v63  ;;  %v1194_v11 = vadd.f32 %v1186_v43, %v1176_v62  ;;  %v1320_v22 = vadd.f32 %v1312_v2, %v1302_v19  ;;  %v1464_v13 = vadd.f32 %v1456_v34, %v1446_v49  ;;  %v5209_v49 = vld [vmem:[%s3959_s20 + $0x70] sm:$0xff] }
 0x1ba   : > { %6488 = vst [vmem:[#allocation64_spill] sm:$0xff] %v5191_v56  ;;  %v2007_v28 = vadd.f32 %v5181_v27, %v1999_v0  ;;  %v1528_v1 = vmul.f32 %v4296_v14, %v5091_v12  ;;  %v1546_v15 = vmul.f32 %v4302_v46, %v5103_v51  ;;  %v1564_v53 = vmul.f32 %v4306_v4, %v5111_v7  ;;  %v6490_v27 = vld [vmem:[#allocation20_spill] sm:$0xff] }
 0x1bb   : > { %v1076_v50 = vmax.f32 %v1068_v36, 0.0  ;;  %v1212_v33 = vadd.f32 %v1204_v20, %v1194_v11  ;;  %v1338_v3 = vadd.f32 %v1330_v29, %v1320_v22  ;;  %v1482_v63 = vadd.f32 %v1474_v5, %v1464_v13 }
 0x1bc   : > { %v2015_v43 = vadd.f32 %v5191_v56, %v2007_v28  ;;  %v1582_v2 = vmul.f32 %v4312_v25, %v5117_v52  ;;  %v1600_v0 = vmul.f32 %v4316_v59, %v5119_v35  ;;  %v547_v12 = vmul.f32 %v6255_v18, %v5194_v60 }
 0x1bd   : > { %v1230_v51 = vadd.f32 %v1222_v24, %v1212_v33  ;;  %v1356_v62 = vadd.f32 %v1348_v54, %v1338_v3  ;;  %v1500_v7 = vadd.f32 %v1492_v39, %v1482_v63  ;;  %v1626_v20 = vmul.f32 %v4322_v61, %v1076_v50 }
 0x1be   : > { %3232 = vrcp.f32 %v2015_v43  ;;  %v1690_v29 = vmul.f32 %v4344_v23, %v1076_v50  ;;  %v1754_v5 = vmul.f32 %v6254_v55, %v1076_v50  ;;  %v1818_v52 = vmul.f32 %v4382_v47, %v1076_v50 }
 0x1bf   : > { %v1248_v19 = vadd.f32 %v1240_v10, %v1230_v51  ;;  %v1374_v34 = vadd.f32 %v1366_v37, %v1356_v62  ;;  %v1518_v35 = vadd.f32 %v1510_v30, %v1500_v7  ;;  %v557_v36 = vmul.f32 %v5209_v49, %v6256_v17 }
 0x1c0   : > { %v583_v33 = vmul.f32 %v6257_v31, %v5194_v60  ;;  %v593_v54 = vmul.f32 %v5209_v49, %v6258_v8  ;;  %v619_v24 = vmul.f32 %v6260_v41, %v5194_v60  ;;  %v629_v39 = vmul.f32 %v5209_v49, %v6262_v21 }
 0x1c1   : > { %v1256_v11 = vmax.f32 %v1248_v19, 0.0  ;;  %v1392_v50 = vadd.f32 %v1384_v9, %v1374_v34  ;;  %v1536_v10 = vadd.f32 %v1528_v1, %v1518_v35  ;;  %v565_v37 = vadd.f32 %v557_v36, %v547_v12 }
 0x1c2   : > { %v601_v30 = vadd.f32 %v593_v54, %v583_v33  ;;  %v637_v22 = vadd.f32 %v629_v39, %v619_v24  ;;  %v655_v13 = vmul.f32 %v6264_v38, %v5194_v60  ;;  %v665_v28 = vmul.f32 %v5209_v49, %v6431_v40 }
 0x1c3   : > { %v1410_v3 = vadd.f32 %v1402_v48, %v1392_v50  ;;  %v1554_v63 = vadd.f32 %v1546_v15, %v1536_v10  ;;  %v1636_v51 = vmul.f32 %v6315_v58, %v1256_v11  ;;  %v1700_v62 = vmul.f32 %v6316_v6, %v1256_v11 }
 0x1c4   : > { %v3233_v7 = vpop.eup %3232  ;;  %v1764_v19 = vmul.f32 %v6317_v32, %v1256_v11  ;;  %v1828_v9 = vmul.f32 %v6373_v16, %v1256_v11  ;;  %v5235_v1 = vmax.f32 %v565_v37, 0.0  ;;  %v5237_v12 = vmax.f32 %v601_v30, 0.0  ;;  %v6489_v11 = vld [vmem:[#allocation19_spill] sm:$0xff] }
 0x1c5   : > { %v2031_v34 = vmul.f32 %v3233_v7, %v2015_v43  ;;  %v1428_v35 = vadd.f32 %v5173_v42, %v1410_v3  ;;  %v1572_v36 = vadd.f32 %v1564_v53, %v1554_v63  ;;  %v1644_v33 = vadd.f32 %v1636_v51, %v1626_v20  ;;  %v6491_v43 = vld [vmem:[#allocation21_spill] sm:$0xff]  ;;  %v6492_v53 = vld [vmem:[#allocation22_spill] sm:$0xff] }
 0x1c6   : > { %v1708_v48 = vadd.f32 %v1700_v62, %v1690_v29  ;;  %v1772_v15 = vadd.f32 %v1764_v19, %v1754_v5  ;;  %v1836_v54 = vadd.f32 %v1828_v9, %v1818_v52  ;;  %v5240_v24 = vmax.f32 %v637_v22, 0.0  ;;  %v6494_v52 = vld [vmem:[#allocation67_spill] sm:$0xff]  ;;  %v6497_v63 = vld [vmem:[#allocation77_spill] sm:$0xff] }
 0x1c7   : > { %v2039_v39 = vsub.f32 2.0, %v2031_v34  ;;  %v1436_v50 = vmax.f32 %v1428_v35, 0.0  ;;  %v1590_v10 = vadd.f32 %v1582_v2, %v1572_v36  ;;  %v673_v56 = vadd.f32 %v665_v28, %v655_v13  ;;  %v6495_v2 = vld [vmem:[#allocation70_spill] sm:$0xff] }
 0x1c8   : > { %v691_v37 = vmul.f32 %v6489_v11, %v5194_v60  ;;  %v701_v30 = vmul.f32 %v5209_v49, %v6490_v27  ;;  %v727_v42 = vmul.f32 %v6491_v43, %v5194_v60  ;;  %v737_v20 = vmul.f32 %v5209_v49, %v6492_v53  ;;  %v6496_v28 = vld [vmem:[#allocation74_spill] sm:$0xff]  ;;  %v6498_v53 = vld [vmem:[#allocation68_spill] sm:$0xff]  ;;  %v6499_v27 = vld [vmem:[#allocation71_spill] sm:$0xff] }
 0x1c9   : > { %v5250_v29 = vmul.f32 %v3233_v7, %v2039_v39  ;;  %v1608_v5 = vadd.f32 %v1600_v0, %v1590_v10  ;;  %v1654_v22 = vmul.f32 %v6494_v52, %v1436_v50  ;;  %v1718_v13 = vmul.f32 %v6495_v2, %v1436_v50 }
 0x1ca   : > { %v1782_v3 = vmul.f32 %v6496_v28, %v1436_v50  ;;  %v1846_v51 = vmul.f32 %v6497_v63, %v1436_v50  ;;  %v5256_v62 = vmax.f32 %v673_v56, 0.0  ;;  %v709_v19 = vadd.f32 %v701_v30, %v691_v37  ;;  %v6500_v50 = vld [vmem:[#allocation75_spill] sm:$0xff]  ;;  %v6501_v63 = vld [vmem:[#allocation78_spill] sm:$0xff] }
 0x1cb   : > { %6493 = vst [vmem:[#allocation19_spill] sm:$0xff] %v5250_v29  ;;  %v2055_v9 = vmul.f32 %v5165_v26, %v5250_v29  ;;  %v1616_v34 = vmax.f32 %v1608_v5, 0.0  ;;  %v1662_v35 = vadd.f32 %v1654_v22, %v1644_v33  ;;  %v1726_v7 = vadd.f32 %v1718_v13, %v1708_v48  ;;  %v6502_v26 = vld [vmem:[#allocation23_spill] sm:$0xff]  ;;  %v6503_v48 = vld [vmem:[#allocation24_spill] sm:$0xff] }
 0x1cc   : > { %v1790_v36 = vadd.f32 %v1782_v3, %v1772_v15  ;;  %v1854_v39 = vadd.f32 %v1846_v51, %v1836_v54  ;;  %v5260_v0 = vmax.f32 %v709_v19, 0.0  ;;  %v745_v10 = vadd.f32 %v737_v20, %v727_v42  ;;  %v6504_v54 = vld [vmem:[#allocation25_spill] sm:$0xff]  ;;  %v6505_v51 = vld [vmem:[#allocation26_spill] sm:$0xff] }
 0x1cd   : > { %2063 = vst [vmem:[%s4579_s15 + $0x20] sm:$0xff] %v2055_v9  ;;  %v1672_v43 = vmul.f32 %v6498_v53, %v1616_v34  ;;  %v1736_v28 = vmul.f32 %v6499_v27, %v1616_v34  ;;  %v1800_v56 = vmul.f32 %v6500_v50, %v1616_v34  ;;  %v1864_v37 = vmul.f32 %v6501_v63, %v1616_v34  ;;  %v6506_v9 = vld [vmem:[#allocation27_spill] sm:$0xff]  ;;  %v6508_v50 = vld [vmem:[#allocation29_spill] sm:$0xff]  ;;  %v6509_v53 = vld [vmem:[#allocation30_spill] sm:$0xff] }
 0x1ce   : > { %v5267_v30 = vmax.f32 %v745_v10, 0.0  ;;  %v763_v33 = vmul.f32 %v6502_v26, %v5194_v60  ;;  %v773_v15 = vmul.f32 %v5209_v49, %v6503_v48  ;;  %v799_v42 = vmul.f32 %v6504_v54, %v5194_v60  ;;  %v6507_v10 = vld [vmem:[#allocation28_spill] sm:$0xff]  ;;  %v6521_v26 = vld [vmem:[#allocation39_spill] sm:$0xff] }
 0x1cf   : > { %v1680_v20 = vadd.f32 %v1672_v43, %v1662_v35  ;;  %v1744_v5 = vadd.f32 %v1736_v28, %v1726_v7  ;;  %v1808_v22 = vadd.f32 %v1800_v56, %v1790_v36  ;;  %v1872_v13 = vadd.f32 %v1864_v37, %v1854_v39  ;;  %v6510_v28 = vld [vmem:[#allocation31_spill] sm:$0xff]  ;;  %v6511_v56 = vld [vmem:[#allocation32_spill] sm:$0xff] }
 0x1d0   : > { %v781_v3 = vadd.f32 %v773_v15, %v763_v33  ;;  %v809_v19 = vmul.f32 %v5209_v49, %v6505_v51  ;;  %v835_v34 = vmul.f32 %v6506_v9, %v5194_v60  ;;  %v845_v29 = vmul.f32 %v5209_v49, %v6507_v10  ;;  %v6512_v10 = vld [vmem:[#allocation33_spill] sm:$0xff] }
 0x1d1   : > { %v1880_v63 = vmax.f32 %v1680_v20, %v1744_v5  ;;  %v871_v27 = vmul.f32 %v6508_v50, %v5194_v60  ;;  %v881_v43 = vmul.f32 %v5209_v49, %v6509_v53  ;;  %v907_v35 = vmul.f32 %v6510_v28, %v5235_v1  ;;  %v6513_v49 = vld [vmem:[#allocation34_spill] sm:$0xff] }
 0x1d2   : > { %v5287_v7 = vmax.f32 %v781_v3, 0.0  ;;  %v817_v36 = vadd.f32 %v809_v19, %v799_v42  ;;  %v853_v39 = vadd.f32 %v845_v29, %v835_v34  ;;  %v917_v37 = vmul.f32 %v6511_v56, %v5237_v12  ;;  %v6514_v29 = vld [vmem:[#allocation35_spill] sm:$0xff]  ;;  %v6516_v34 = vld [vmem:[#allocation37_spill] sm:$0xff] }
 0x1d3   : > { %v1888_v33 = vmax.f32 %v1880_v63, %v1808_v22  ;;  %v889_v15 = vadd.f32 %v881_v43, %v871_v27  ;;  %v935_v9 = vmul.f32 %v6512_v10, %v5240_v24  ;;  %v953_v53 = vmul.f32 %v6513_v49, %v5256_v62  ;;  %v6515_v27 = vld [vmem:[#allocation36_spill] sm:$0xff] }
 0x1d4   : > { %v5293_v51 = vmax.f32 %v817_v36, 0.0  ;;  %v925_v60 = vadd.f32 %v917_v37, %v907_v35  ;;  %v5297_v28 = vmax.f32 %v853_v39, 0.0  ;;  %v971_v42 = vmul.f32 %v6514_v29, %v5260_v0  ;;  %v6517_v35 = vld [vmem:[#allocation41_spill] sm:$0xff]  ;;  %v6519_v29 = vld [vmem:[#allocation42_spill] sm:$0xff] }
 0x1d5   : > { %v1896_v50 = vmax.f32 %v1888_v33, %v1872_v13  ;;  %v5299_v3 = vmax.f32 %v889_v15, 0.0  ;;  %v989_v63 = vmul.f32 %v6515_v27, %v5267_v30  ;;  %v1007_v43 = vmul.f32 %v6516_v34, %v5287_v7  ;;  %v6518_v15 = vld [vmem:[#allocation38_spill] sm:$0xff] }
 0x1d6   : > { %v943_v19 = vadd.f32 %v935_v9, %v925_v60  ;;  %v1087_v36 = vmul.f32 %v6517_v35, %v5235_v1  ;;  %v1025_v56 = vmul.f32 %v6518_v15, %v5293_v51  ;;  %v1097_v9 = vmul.f32 %v6519_v29, %v5237_v12  ;;  %v6520_v60 = vld [vmem:[#allocation43_spill] sm:$0xff]  ;;  %v6524_v15 = vld [vmem:[#allocation45_spill] sm:$0xff] }
 0x1d7   : > { %v1904_v37 = vsub.f32 %v1680_v20, %v1896_v50  ;;  %v1928_v49 = vsub.f32 %v1744_v5, %v1896_v50  ;;  %v1952_v33 = vsub.f32 %v1808_v22, %v1896_v50  ;;  %v1976_v39 = vsub.f32 %v1872_v13, %v1896_v50  ;;  %v6523_v13 = vld [vmem:[#allocation40_spill] sm:$0xff] }
 0x1d8   : > { %v961_v10 = vadd.f32 %v953_v53, %v943_v19  ;;  %v1115_v27 = vmul.f32 %v6520_v60, %v5240_v24  ;;  %v1043_v35 = vmul.f32 %v6521_v26, %v5297_v28  ;;  %v1105_v22 = vadd.f32 %v1097_v9, %v1087_v36  ;;  %v6522_v53 = vld [vmem:[#allocation44_spill] sm:$0xff] }
 0x1d9   : > { %v1917_v54 = vmul.f32 1.442695, %v1904_v37  ;;  %v1941_v48 = vmul.f32 1.442695, %v1928_v49  ;;  %v1965_v34 = vmul.f32 1.442695, %v1952_v33  ;;  %v1133_v50 = vmul.f32 %v6522_v53, %v5256_v62 }
 0x1da   : > { %v1989_v20 = vmul.f32 1.442695, %v1976_v39  ;;  %v979_v5 = vadd.f32 %v971_v42, %v961_v10  ;;  %v1061_v19 = vmul.f32 %v6523_v13, %v5299_v3  ;;  %v1151_v29 = vmul.f32 %v6524_v15, %v5260_v0  ;;  %v6525_v37 = vld [vmem:[#allocation46_spill] sm:$0xff]  ;;  %v6526_v39 = vld [vmem:[#allocation47_spill] sm:$0xff]  ;;  %v6527_v42 = vld [vmem:[#allocation48_spill] sm:$0xff] }
 0x1db   : > { %3234 = vpow2.f32 %v1917_v54  ;;  %v1169_v49 = vmul.f32 %v6525_v37, %v5267_v30  ;;  %v1123_v60 = vadd.f32 %v1115_v27, %v1105_v22  ;;  %v1187_v10 = vmul.f32 %v6526_v39, %v5287_v7  ;;  %v6528_v54 = vld [vmem:[#allocation51_spill] sm:$0xff]  ;;  %v6529_v13 = vld [vmem:[#allocation52_spill] sm:$0xff]  ;;  %v6531_v27 = vld [vmem:[#allocation49_spill] sm:$0xff] }
 0x1dc   : > { %3236 = vpow2.f32 %v1941_v48  ;;  %v997_v33 = vadd.f32 %v989_v63, %v979_v5  ;;  %v1205_v36 = vmul.f32 %v6527_v42, %v5293_v51  ;;  %v1267_v9 = vmul.f32 %v6528_v54, %v5235_v1  ;;  %v6530_v48 = vld [vmem:[#allocation53_spill] sm:$0xff]  ;;  %v6533_v42 = vld [vmem:[#allocation54_spill] sm:$0xff] }
 0x1dd   : > { %3238 = vpow2.f32 %v1965_v34  ;;  %v1277_v26 = vmul.f32 %v6529_v13, %v5237_v12  ;;  %v1141_v53 = vadd.f32 %v1133_v50, %v1123_v60  ;;  %v1295_v63 = vmul.f32 %v6530_v48, %v5240_v24  ;;  %v6532_v34 = vld [vmem:[#allocation50_spill] sm:$0xff]  ;;  %v6534_v13 = vld [vmem:[#allocation55_spill] sm:$0xff] }
 0x1de   : > { %3240 = vpow2.f32 %v1989_v20  ;;  %v1015_v15 = vadd.f32 %v1007_v43, %v997_v33  ;;  %v1223_v5 = vmul.f32 %v6531_v27, %v5297_v28  ;;  %v1241_v22 = vmul.f32 %v6532_v34, %v5299_v3  ;;  %v6535_v43 = vld [vmem:[#allocation56_spill] sm:$0xff]  ;;  %v6536_v27 = vld [vmem:[#allocation57_spill] sm:$0xff]  ;;  %v6537_v34 = vld [vmem:[#allocation58_spill] sm:$0xff] }
 0x1df   : > { %v1285_v39 = vadd.f32 %v1277_v26, %v1267_v9  ;;  %v1313_v37 = vmul.f32 %v6533_v42, %v5256_v62  ;;  %v1159_v2 = vadd.f32 %v1151_v29, %v1141_v53  ;;  %v1331_v20 = vmul.f32 %v6534_v13, %v5260_v0  ;;  %v6538_v9 = vld [vmem:[#allocation61_spill] sm:$0xff] }
 0x1e0   : > { %v1033_v54 = vadd.f32 %v1025_v56, %v1015_v15  ;;  %v1349_v60 = vmul.f32 %v6535_v43, %v5267_v30  ;;  %v1367_v48 = vmul.f32 %v6536_v27, %v5287_v7  ;;  %v1385_v26 = vmul.f32 %v6537_v34, %v5293_v51  ;;  %v6540_v43 = vld [vmem:[#allocation59_spill] sm:$0xff] }
 0x1e1   : > { %v5345_v50 = vpop.eup %3234  ;;  %v1303_v33 = vadd.f32 %v1295_v63, %v1285_v39  ;;  %v1447_v42 = vmul.f32 %v6538_v9, %v5235_v1  ;;  %v1177_v15 = vadd.f32 %v1169_v49, %v1159_v2  ;;  %v1457_v53 = vmul.f32 %v6427_v57, %v5237_v12  ;;  %v6541_v9 = vld [vmem:[#allocation60_spill] sm:$0xff] }
 0x1e2   : > { %v5353_v56 = vpop.eup %3236  ;;  %v1051_v29 = vadd.f32 %v1043_v35, %v1033_v54  ;;  %v1475_v39 = vmul.f32 %v6485_v45, %v5240_v24  ;;  %v1403_v1 = vmul.f32 %v6540_v43, %v5297_v28  ;;  %v1421_v35 = vmul.f32 %v6541_v9, %v5299_v3  ;;  %v5377_v43 = vld [vmem:[%s3959_s20 + $0x38] sm:$0xff] }
 0x1e3   : > { %6539 = vst [vmem:[#allocation67_spill] sm:$0xff] %v5353_v56  ;;  %v5359_v63 = vpop.eup %3238  ;;  %v2000_v27 = vadd.f32 %v5353_v56, %v5345_v50  ;;  %v1321_v34 = vadd.f32 %v1313_v37, %v1303_v33  ;;  %v1195_v12 = vadd.f32 %v1187_v10, %v1177_v15  ;;  %v1465_v54 = vadd.f32 %v1457_v53, %v1447_v42  ;;  %v6542_v37 = vld [vmem:[#allocation65_spill] sm:$0xff] }
 0x1e4   : > { %v5367_v2 = vpop.eup %3240  ;;  %v1069_v49 = vadd.f32 %v1061_v19, %v1051_v29  ;;  %v1493_v24 = vmul.f32 %v6486_v44, %v5256_v62  ;;  %v1511_v33 = vmul.f32 %v6542_v37, %v5260_v0  ;;  %v1529_v56 = vmul.f32 %v4296_v14, %v5267_v30 }
 0x1e5   : > { %v2008_v45 = vadd.f32 %v5359_v63, %v2000_v27  ;;  %v1339_v57 = vadd.f32 %v1331_v20, %v1321_v34  ;;  %v1213_v13 = vadd.f32 %v1205_v36, %v1195_v12  ;;  %v1483_v19 = vadd.f32 %v1475_v39, %v1465_v54  ;;  %v5387_v34 = vld [vmem:[%s3959_s20 + $0x78] sm:$0xff]  ;;  %s2862_s20 = sshll.u32 (%p3666_p5), %s3647_s18, 6 }
 0x1e6   : > { %v1077_v9 = vmax.f32 %v1069_v49, 0.0  ;;  %v1547_v10 = vmul.f32 %v4302_v46, %v5287_v7  ;;  %v1565_v27 = vmul.f32 %v4306_v4, %v5293_v51  ;;  %v1583_v0 = vmul.f32 %v4312_v25, %v5297_v28  ;;  %s5659_s14 = scalar_lea.vmem (%p3666_p5), %s5999_s4, %s2862_s20  }
 0x1e7   : > { %v2016_v42 = vadd.f32 %v5367_v2, %v2008_v45  ;;  %v1357_v62 = vadd.f32 %v1349_v60, %v1339_v57  ;;  %v1231_v30 = vadd.f32 %v1223_v5, %v1213_v13  ;;  %v1501_v20 = vadd.f32 %v1493_v24, %v1483_v19 }
 0x1e8   : > { %v1601_v36 = vmul.f32 %v4316_v59, %v5299_v3  ;;  %v548_v29 = vmul.f32 %v6255_v18, %v5377_v43  ;;  %v1627_v57 = vmul.f32 %v4322_v61, %v1077_v9  ;;  %v1691_v45 = vmul.f32 %v4344_v23, %v1077_v9 }
 0x1e9   : > { %3242 = vrcp.f32 %v2016_v42  ;;  %v1375_v7 = vadd.f32 %v1367_v48, %v1357_v62  ;;  %v1249_v51 = vadd.f32 %v1241_v22, %v1231_v30  ;;  %v1519_v60 = vadd.f32 %v1511_v33, %v1501_v20 }
 0x1ea   : > { %v558_v28 = vmul.f32 %v5387_v34, %v6256_v17  ;;  %v584_v13 = vmul.f32 %v6257_v31, %v5377_v43  ;;  %v594_v3 = vmul.f32 %v5387_v34, %v6258_v8  ;;  %v620_v18 = vmul.f32 %v6260_v41, %v5377_v43 }
 0x1eb   : > { %v1393_v5 = vadd.f32 %v1385_v26, %v1375_v7  ;;  %v630_v48 = vmul.f32 %v5387_v34, %v6262_v21  ;;  %v1257_v15 = vmax.f32 %v1249_v51, 0.0  ;;  %v1537_v53 = vadd.f32 %v1529_v56, %v1519_v60 }
 0x1ec   : > { %v1755_v22 = vmul.f32 %v6254_v55, %v1077_v9  ;;  %v566_v39 = vadd.f32 %v558_v28, %v548_v29  ;;  %v1819_v17 = vmul.f32 %v4382_v47, %v1077_v9  ;;  %v602_v12 = vadd.f32 %v594_v3, %v584_v13  ;;  %v6543_v13 = vld [vmem:[#allocation70_spill] sm:$0xff] }
 0x1ed   : > { %v1411_v49 = vadd.f32 %v1403_v1, %v1393_v5  ;;  %v656_v31 = vmul.f32 %v6264_v38, %v5377_v43  ;;  %v1555_v26 = vadd.f32 %v1547_v10, %v1537_v53  ;;  %v1637_v8 = vmul.f32 %v6315_v58, %v1257_v15 }
 0x1ee   : > { %v1701_v41 = vmul.f32 %v6316_v6, %v1257_v15  ;;  %v1765_v54 = vmul.f32 %v6317_v32, %v1257_v15  ;;  %v1829_v56 = vmul.f32 %v6373_v16, %v1257_v15  ;;  %v638_v33 = vadd.f32 %v630_v48, %v620_v18  ;;  %v6546_v48 = vld [vmem:[#allocation20_spill] sm:$0xff] }
 0x1ef   : > { %v3243_v21 = vpop.eup %3242  ;;  %v1429_v24 = vadd.f32 %v1421_v35, %v1411_v49  ;;  %v666_v1 = vmul.f32 %v5387_v34, %v6431_v40  ;;  %v1573_v19 = vadd.f32 %v1565_v27, %v1555_v26  ;;  %v1645_v62 = vadd.f32 %v1637_v8, %v1627_v57  ;;  %v6545_v57 = vld [vmem:[#allocation77_spill] sm:$0xff]  ;;  %v6548_v8 = vld [vmem:[#allocation22_spill] sm:$0xff] }
 0x1f0   : > { %v2032_v9 = vmul.f32 %v3243_v21, %v2016_v42  ;;  %v5415_v30 = vmax.f32 %v566_v39, 0.0  ;;  %v1709_v10 = vadd.f32 %v1701_v41, %v1691_v45  ;;  %v1773_v20 = vadd.f32 %v1765_v54, %v1755_v22  ;;  %v6544_v42 = vld [vmem:[#allocation74_spill] sm:$0xff]  ;;  %v6550_v54 = vld [vmem:[#allocation24_spill] sm:$0xff] }
 0x1f1   : > { %v1437_v38 = vmax.f32 %v1429_v24, 0.0  ;;  %v1837_v29 = vadd.f32 %v1829_v56, %v1819_v17  ;;  %v1591_v51 = vadd.f32 %v1583_v0, %v1573_v19  ;;  %v5417_v60 = vmax.f32 %v602_v12, 0.0  ;;  %v6547_v12 = vld [vmem:[#allocation21_spill] sm:$0xff] }
 0x1f2   : > { %v2040_v7 = vsub.f32 2.0, %v2032_v9  ;;  %v692_v35 = vmul.f32 %v6489_v11, %v5377_v43  ;;  %v674_v18 = vadd.f32 %v666_v1, %v656_v31  ;;  %v702_v0 = vmul.f32 %v5387_v34, %v6546_v48  ;;  %v6551_v24 = vld [vmem:[#allocation25_spill] sm:$0xff]  ;;  %v6552_v1 = vld [vmem:[#allocation68_spill] sm:$0xff]  ;;  %v6553_v9 = vld [vmem:[#allocation71_spill] sm:$0xff] }
 0x1f3   : > { %v1655_v28 = vmul.f32 %v6494_v52, %v1437_v38  ;;  %v1719_v40 = vmul.f32 %v6543_v13, %v1437_v38  ;;  %v1783_v27 = vmul.f32 %v6544_v42, %v1437_v38  ;;  %v1847_v5 = vmul.f32 %v6545_v57, %v1437_v38 }
 0x1f4   : > { %v5425_v3 = vmul.f32 %v3243_v21, %v2040_v7  ;;  %v1609_v45 = vadd.f32 %v1601_v36, %v1591_v51  ;;  %v710_v17 = vadd.f32 %v702_v0, %v692_v35  ;;  %v728_v26 = vmul.f32 %v6547_v12, %v5377_v43  ;;  %v6549_v36 = vld [vmem:[#allocation23_spill] sm:$0xff]  ;;  %v6556_v35 = vld [vmem:[#allocation26_spill] sm:$0xff] }
 0x1f5   : > { %v1663_v15 = vadd.f32 %v1655_v28, %v1645_v62  ;;  %v1727_v53 = vadd.f32 %v1719_v40, %v1709_v10  ;;  %v1791_v22 = vadd.f32 %v1783_v27, %v1773_v20  ;;  %v1855_v11 = vadd.f32 %v1847_v5, %v1837_v29  ;;  %v6554_v62 = vld [vmem:[#allocation75_spill] sm:$0xff]  ;;  %v6555_v10 = vld [vmem:[#allocation78_spill] sm:$0xff] }
 0x1f6   : > { %v2056_v39 = vmul.f32 %v5345_v50, %v5425_v3  ;;  %v1617_v49 = vmax.f32 %v1609_v45, 0.0  ;;  %v738_v41 = vmul.f32 %v5387_v34, %v6548_v8  ;;  %v764_v31 = vmul.f32 %v6549_v36, %v5377_v43  ;;  %v6557_v12 = vld [vmem:[#allocation27_spill] sm:$0xff] }
 0x1f7   : > { %v774_v21 = vmul.f32 %v5387_v34, %v6550_v54  ;;  %v800_v56 = vmul.f32 %v6551_v24, %v5377_v43  ;;  %v5446_v29 = vmax.f32 %v638_v33, 0.0  ;;  %v5448_v7 = vmax.f32 %v674_v18, 0.0  ;;  %v6558_v33 = vld [vmem:[#allocation28_spill] sm:$0xff]  ;;  %v6560_v54 = vld [vmem:[#allocation30_spill] sm:$0xff] }
 0x1f8   : > { %2064 = vst [vmem:[%s4579_s15 + $0x28] sm:$0xff] %v2056_v39  ;;  %v1673_v50 = vmul.f32 %v6552_v1, %v1617_v49  ;;  %v1737_v19 = vmul.f32 %v6553_v9, %v1617_v49  ;;  %v1801_v38 = vmul.f32 %v6554_v62, %v1617_v49  ;;  %v1865_v20 = vmul.f32 %v6555_v10, %v1617_v49 }
 0x1f9   : > { %v5450_v51 = vmax.f32 %v710_v17, 0.0  ;;  %v810_v28 = vmul.f32 %v5387_v34, %v6556_v35  ;;  %v746_v45 = vadd.f32 %v738_v41, %v728_v26  ;;  %v782_v0 = vadd.f32 %v774_v21, %v764_v31  ;;  %v6559_v17 = vld [vmem:[#allocation29_spill] sm:$0xff] }
 0x1fa   : > { %v1681_v40 = vadd.f32 %v1673_v50, %v1663_v15  ;;  %v1745_v27 = vadd.f32 %v1737_v19, %v1727_v53  ;;  %v1809_v5 = vadd.f32 %v1801_v38, %v1791_v22  ;;  %v1873_v48 = vadd.f32 %v1865_v20, %v1855_v11  ;;  %v6561_v15 = vld [vmem:[#allocation31_spill] sm:$0xff]  ;;  %v6562_v22 = vld [vmem:[#allocation32_spill] sm:$0xff]  ;;  %v6563_v26 = vld [vmem:[#allocation33_spill] sm:$0xff] }
 0x1fb   : > { %v818_v39 = vadd.f32 %v810_v28, %v800_v56  ;;  %v836_v8 = vmul.f32 %v6557_v12, %v5377_v43  ;;  %v846_v18 = vmul.f32 %v5387_v34, %v6558_v33  ;;  %v872_v36 = vmul.f32 %v6559_v17, %v5377_v43  ;;  %v6565_v12 = vld [vmem:[#allocation35_spill] sm:$0xff] }
 0x1fc   : > { %v1881_v49 = vmax.f32 %v1681_v40, %v1745_v27  ;;  %v882_v24 = vmul.f32 %v5387_v34, %v6560_v54  ;;  %v908_v53 = vmul.f32 %v6561_v15, %v5415_v30  ;;  %v918_v11 = vmul.f32 %v6562_v22, %v5417_v60  ;;  %v6564_v34 = vld [vmem:[#allocation34_spill] sm:$0xff] }
 0x1fd   : > { %v936_v41 = vmul.f32 %v6563_v26, %v5446_v29  ;;  %v5468_v21 = vmax.f32 %v746_v45, 0.0  ;;  %v854_v56 = vadd.f32 %v846_v18, %v836_v8  ;;  %v5470_v50 = vmax.f32 %v782_v0, 0.0  ;;  %v6566_v45 = vld [vmem:[#allocation41_spill] sm:$0xff]  ;;  %v6567_v0 = vld [vmem:[#allocation42_spill] sm:$0xff] }
 0x1fe   : > { %v1889_v31 = vmax.f32 %v1881_v49, %v1809_v5  ;;  %v5472_v19 = vmax.f32 %v818_v39, 0.0  ;;  %v926_v43 = vadd.f32 %v918_v11, %v908_v53  ;;  %v954_v38 = vmul.f32 %v6564_v34, %v5448_v7  ;;  %v6568_v39 = vld [vmem:[#allocation43_spill] sm:$0xff]  ;;  %v6570_v26 = vld [vmem:[#allocation37_spill] sm:$0xff] }
 0x1ff   : > { %v5476_v35 = vmax.f32 %v854_v56, 0.0  ;;  %v890_v28 = vadd.f32 %v882_v24, %v872_v36  ;;  %v972_v33 = vmul.f32 %v6565_v12, %v5450_v51  ;;  %v1088_v49 = vmul.f32 %v6566_v45, %v5415_v30  ;;  %v6569_v36 = vld [vmem:[#allocation36_spill] sm:$0xff] }
 0x200   : > { %v1897_v20 = vmax.f32 %v1889_v31, %v1873_v48  ;;  %v944_v17 = vadd.f32 %v936_v41, %v926_v43  ;;  %v1098_v8 = vmul.f32 %v6567_v0, %v5417_v60  ;;  %v1116_v18 = vmul.f32 %v6568_v39, %v5446_v29  ;;  %v6571_v12 = vld [vmem:[#allocation44_spill] sm:$0xff] }
 0x201   : > { %v990_v24 = vmul.f32 %v6569_v36, %v5468_v21  ;;  %v1008_v41 = vmul.f32 %v6570_v26, %v5470_v50  ;;  %v1134_v45 = vmul.f32 %v6571_v12, %v5448_v7  ;;  %v6580_v12 = vld [vmem:[#allocation54_spill] sm:$0xff] }
 0x202   : > { %v1905_v54 = vsub.f32 %v1681_v40, %v1897_v20  ;;  %v1929_v15 = vsub.f32 %v1745_v27, %v1897_v20  ;;  %v1953_v53 = vsub.f32 %v1809_v5, %v1897_v20  ;;  %v1977_v22 = vsub.f32 %v1873_v48, %v1897_v20  ;;  %v6572_v27 = vld [vmem:[#allocation45_spill] sm:$0xff] }
 0x203   : > { %v962_v11 = vadd.f32 %v954_v38, %v944_v17  ;;  %v1106_v31 = vadd.f32 %v1098_v8, %v1088_v49  ;;  %v1152_v5 = vmul.f32 %v6572_v27, %v5450_v51  ;;  %v5494_v48 = vmax.f32 %v890_v28, 0.0  ;;  %v6573_v38 = vld [vmem:[#allocation38_spill] sm:$0xff]  ;;  %v6574_v17 = vld [vmem:[#allocation39_spill] sm:$0xff] }
 0x204   : > { %v1919_v56 = vmul.f32 1.442695, %v1905_v54  ;;  %v1943_v43 = vmul.f32 1.442695, %v1929_v15  ;;  %v1967_v34 = vmul.f32 1.442695, %v1953_v53  ;;  %v1026_v20 = vmul.f32 %v6573_v38, %v5472_v19 }
 0x205   : > { %v1991_v0 = vmul.f32 1.442695, %v1977_v22  ;;  %v980_v39 = vadd.f32 %v972_v33, %v962_v11  ;;  %v1124_v40 = vadd.f32 %v1116_v18, %v1106_v31  ;;  %v1044_v49 = vmul.f32 %v6574_v17, %v5476_v35  ;;  %v6575_v15 = vld [vmem:[#allocation46_spill] sm:$0xff]  ;;  %v6576_v33 = vld [vmem:[#allocation47_spill] sm:$0xff]  ;;  %v6578_v11 = vld [vmem:[#allocation52_spill] sm:$0xff] }
 0x206   : > { %3244 = vpow2.f32 %v1919_v56  ;;  %v1170_v53 = vmul.f32 %v6575_v15, %v5468_v21  ;;  %v1188_v18 = vmul.f32 %v6576_v33, %v5470_v50  ;;  %v6577_v22 = vld [vmem:[#allocation51_spill] sm:$0xff]  ;;  %v1278_v36 = vmul.f32 %v6578_v11, %v5417_v60  ;;  %v6579_v56 = vld [vmem:[#allocation53_spill] sm:$0xff]  ;;  %v6582_v38 = vld [vmem:[#allocation48_spill] sm:$0xff] }
 0x207   : > { %3246 = vpow2.f32 %v1943_v43  ;;  %v998_v8 = vadd.f32 %v990_v24, %v980_v39  ;;  %v1142_v54 = vadd.f32 %v1134_v45, %v1124_v40  ;;  %v1268_v28 = vmul.f32 %v6577_v22, %v5415_v30  ;;  %v6581_v39 = vld [vmem:[#allocation40_spill] sm:$0xff]  ;;  %v6585_v33 = vld [vmem:[#allocation61_spill] sm:$0xff] }
 0x208   : > { %3248 = vpow2.f32 %v1967_v34  ;;  %v1296_v24 = vmul.f32 %v6579_v56, %v5446_v29  ;;  %v1314_v45 = vmul.f32 %v6580_v12, %v5448_v7  ;;  %v1062_v40 = vmul.f32 %v6581_v39, %v5494_v48 }
 0x209   : > { %3250 = vpow2.f32 %v1991_v0  ;;  %v1016_v26 = vadd.f32 %v1008_v41, %v998_v8  ;;  %v1160_v31 = vadd.f32 %v1152_v5, %v1142_v54  ;;  %v1286_v43 = vadd.f32 %v1278_v36, %v1268_v28  ;;  %v6583_v41 = vld [vmem:[#allocation49_spill] sm:$0xff]  ;;  %v6584_v8 = vld [vmem:[#allocation55_spill] sm:$0xff] }
 0x20a   : > { %v1206_v17 = vmul.f32 %v6582_v38, %v5472_v19  ;;  %v1224_v0 = vmul.f32 %v6583_v41, %v5476_v35  ;;  %v1332_v54 = vmul.f32 %v6584_v8, %v5450_v51  ;;  %v1448_v22 = vmul.f32 %v6585_v33, %v5415_v30  ;;  %v6589_v30 = vld [vmem:[#allocation56_spill] sm:$0xff]  ;;  %v6590_v8 = vld [vmem:[#allocation57_spill] sm:$0xff] }
 0x20b   : > { %v1034_v34 = vadd.f32 %v1026_v20, %v1016_v26  ;;  %v1178_v27 = vadd.f32 %v1170_v53, %v1160_v31  ;;  %v1304_v5 = vadd.f32 %v1296_v24, %v1286_v43  ;;  %v6586_v53 = vld [vmem:[#allocation62_spill] sm:$0xff]  ;;  %v6587_v26 = vld [vmem:[#allocation63_spill] sm:$0xff]  ;;  %v1350_v38 = vmul.f32 %v6589_v30, %v5468_v21 }
 0x20c   : > { %v5516_v15 = vpop.eup %3244  ;;  %v1458_v36 = vmul.f32 %v6586_v53, %v5417_v60  ;;  %v1476_v31 = vmul.f32 %v6587_v26, %v5446_v29  ;;  %v6588_v43 = vld [vmem:[#allocation50_spill] sm:$0xff]  ;;  %v1494_v29 = vmul.f32 %v6486_v44, %v5448_v7  ;;  %v1368_v33 = vmul.f32 %v6590_v8, %v5470_v50 }
 0x20d   : > { %v5524_v20 = vpop.eup %3246  ;;  %v1052_v28 = vadd.f32 %v1044_v49, %v1034_v34  ;;  %v1196_v11 = vadd.f32 %v1188_v18, %v1178_v27  ;;  %v1242_v12 = vmul.f32 %v6588_v43, %v5494_v48  ;;  %v1322_v39 = vadd.f32 %v1314_v45, %v1304_v5 }
 0x20e   : > { %v5530_v56 = vpop.eup %3248  ;;  %v2001_v24 = vadd.f32 %v5524_v20, %v5516_v15  ;;  %v1466_v60 = vadd.f32 %v1458_v36, %v1448_v22  ;;  %v1512_v45 = vmul.f32 %v6542_v37, %v5450_v51  ;;  %v1530_v7 = vmul.f32 %v4296_v14, %v5468_v21 }
 0x20f   : > { %v5538_v49 = vpop.eup %3250  ;;  %v1070_v18 = vadd.f32 %v1062_v40, %v1052_v28  ;;  %v1214_v34 = vadd.f32 %v1206_v17, %v1196_v11  ;;  %v1340_v41 = vadd.f32 %v1332_v54, %v1322_v39  ;;  %v6591_v40 = vld [vmem:[#allocation58_spill] sm:$0xff]  ;;  %v1548_v37 = vmul.f32 %v4302_v46, %v5470_v50 }
 0x210   : > { %v2009_v27 = vadd.f32 %v5530_v56, %v2001_v24  ;;  %v1484_v26 = vadd.f32 %v1476_v31, %v1466_v60  ;;  %v1386_v17 = vmul.f32 %v6591_v40, %v5472_v19  ;;  %v6593_v24 = vld [vmem:[#allocation60_spill] sm:$0xff]  ;;  %v1584_v14 = vmul.f32 %v4312_v25, %v5476_v35 }
 0x211   : > { %v1232_v53 = vadd.f32 %v1224_v0, %v1214_v34  ;;  %v1358_v43 = vadd.f32 %v1350_v38, %v1340_v41  ;;  %v1078_v22 = vmax.f32 %v1070_v18, 0.0  ;;  %v6592_v0 = vld [vmem:[#allocation59_spill] sm:$0xff]  ;;  %v1422_v39 = vmul.f32 %v6593_v24, %v5494_v48 }
 0x212   : > { %v2017_v5 = vadd.f32 %v5538_v49, %v2009_v27  ;;  %v1502_v44 = vadd.f32 %v1494_v29, %v1484_v26  ;;  %v1404_v11 = vmul.f32 %v6592_v0, %v5476_v35 }
 0x213   : > { %v1250_v28 = vadd.f32 %v1242_v12, %v1232_v53  ;;  %v1376_v54 = vadd.f32 %v1368_v33, %v1358_v43  ;;  %v1566_v12 = vmul.f32 %v4306_v4, %v5472_v19  ;;  %v1628_v21 = vmul.f32 %v4322_v61, %v1078_v22 }
 0x214   : > { %3252 = vrcp.f32 %v2017_v5  ;;  %v1520_v31 = vadd.f32 %v1512_v45, %v1502_v44  ;;  %v1692_v38 = vmul.f32 %v4344_v23, %v1078_v22  ;;  %v1756_v50 = vmul.f32 %v6254_v55, %v1078_v22 }
 0x215   : > { %v1258_v36 = vmax.f32 %v1250_v28, 0.0  ;;  %v1394_v51 = vadd.f32 %v1386_v17, %v1376_v54  ;;  %v1820_v4 = vmul.f32 %v4382_v47, %v1078_v22  ;;  %v1602_v23 = vmul.f32 %v4316_v59, %v5494_v48 }
 0x216   : > { %v1538_v30 = vadd.f32 %v1530_v7, %v1520_v31  ;;  %v6595_v31 = vld [vmem:[#allocation72_spill] sm:$0xff] }
 0x217   : > { %v1412_v18 = vadd.f32 %v1404_v11, %v1394_v51  ;;  %v1638_v34 = vmul.f32 %v6315_v58, %v1258_v36  ;;  %v1702_v46 = vmul.f32 %v6316_v6, %v1258_v36  ;;  %v1766_v29 = vmul.f32 %v6317_v32, %v1258_v36  ;;  %v6596_v51 = vld [vmem:[#allocation17_spill] sm:$0xff] }
 0x218   : > { %v1556_v60 = vadd.f32 %v1548_v37, %v1538_v30  ;;  %v1830_v19 = vmul.f32 %v6373_v16, %v1258_v36  ;;  %v6594_v36 = vld [vmem:[#allocation13_spill] sm:$0xff] }
 0x219   : > { %v1430_v25 = vadd.f32 %v1422_v39, %v1412_v18  ;;  %v1646_v58 = vadd.f32 %v1638_v34, %v1628_v21  ;;  %v1710_v8 = vadd.f32 %v1702_v46, %v1692_v38  ;;  %v1774_v33 = vadd.f32 %v1766_v29, %v1756_v50  ;;  %v6599_v39 = vld [vmem:[#allocation66_spill] sm:$0xff]  ;;  %v6601_v38 = vld [vmem:[#allocation79_spill] sm:$0xff] }
 0x21a   : > { %v3253_v27 = vpop.eup %3252  ;;  %v1574_v61 = vadd.f32 %v1566_v12, %v1556_v60  ;;  %v1838_v53 = vadd.f32 %v1830_v19, %v1820_v4  ;;  %v2067_v37 = vmul.f32 %v6595_v31, %v6594_v36  ;;  %v6600_v21 = vld [vmem:[#allocation18_spill] sm:$0xff]  ;;  %v6602_v60 = vld [vmem:[#allocation19_spill] sm:$0xff] }
 0x21b   : > { %v2033_v35 = vmul.f32 %v3253_v27, %v2017_v5  ;;  %v1438_v41 = vmax.f32 %v1430_v25, 0.0  ;;  %v2070_v18 = vmul.f32 %v6601_v38, %v6600_v21  ;;  %v6603_v29 = vld [vmem:[#allocation82_spill] sm:$0xff] }
 0x21c   : > { %v1592_v55 = vadd.f32 %v1584_v14, %v1574_v61  ;;  %2802 = vst [vmem:[%s4579_s15 + $0x40] sm:$0xff] %v2067_v37  ;;  %v2071_v4 = vmul.f32 %v6603_v29, %v6602_v60  ;;  %v6605_v61 = vld [vmem:[#allocation11_spill] sm:$0xff] }
 0x21d   : > { %v2041_v6 = vsub.f32 2.0, %v2033_v35  ;;  %v1656_v32 = vmul.f32 %v6494_v52, %v1438_v41  ;;  %v1720_v47 = vmul.f32 %v6543_v13, %v1438_v41  ;;  %v1784_v16 = vmul.f32 %v6544_v42, %v1438_v41  ;;  %2805 = vst [vmem:[%s4579_s15 + $0x58] sm:$0xff] %v2070_v18 }
 0x21e   : > { %v1848_v26 = vmul.f32 %v6545_v57, %v1438_v41  ;;  %v1610_v5 = vadd.f32 %v1602_v23, %v1592_v55  ;;  %v2084_v23 = vmul.f32 %v6605_v61, %v6594_v36  ;;  %2806 = vst [vmem:[%s4579_s15 + $0x60] sm:$0xff] %v2071_v4  ;;  %v6606_v41 = vld [vmem:[#allocation15_spill] sm:$0xff] }
 0x21f   : > { %v5576_v45 = vmul.f32 %v3253_v27, %v2041_v6  ;;  %v1664_v59 = vadd.f32 %v1656_v32, %v1646_v58  ;;  %v1728_v40 = vadd.f32 %v1720_v47, %v1710_v8  ;;  %v1792_v17 = vadd.f32 %v1784_v16, %v1774_v33  ;;  %v6604_v27 = vld [vmem:[#allocation67_spill] sm:$0xff]  ;;  %v6607_v8 = vld [vmem:[#allocation69_spill] sm:$0xff] }
 0x220   : > { %v1618_v43 = vmax.f32 %v1610_v5, 0.0  ;;  %v1856_v22 = vadd.f32 %v1848_v26, %v1838_v53  ;;  %v2072_v25 = vmul.f32 %v6604_v27, %v5425_v3  ;;  %v2085_v58 = vmul.f32 %v6606_v41, %v6596_v51  ;;  %2810 = vst [vmem:[%s4579_s15 + $0x80] sm:$0xff] %v2084_v23  ;;  %v6609_v33 = vld [vmem:[#allocation83_spill] sm:$0xff] }
 0x221   : > { %v2057_v48 = vmul.f32 %v5516_v15, %v5576_v45  ;;  %v2073_v35 = vmul.f32 %v5524_v20, %v5576_v45  ;;  %v6608_v20 = vld [vmem:[#allocation80_spill] sm:$0xff]  ;;  %v2088_v53 = vmul.f32 %v6609_v33, %v6602_v60  ;;  %v2089_v47 = vmul.f32 %v5359_v63, %v5425_v3 }
 0x222   : > { %v1674_v52 = vmul.f32 %v6552_v1, %v1618_v43  ;;  %v1738_v13 = vmul.f32 %v6553_v9, %v1618_v43  ;;  %v1802_v42 = vmul.f32 %v6554_v62, %v1618_v43  ;;  %v1866_v57 = vmul.f32 %v6555_v10, %v1618_v43  ;;  %v6597_v1 = vld [vmem:[#allocation14_spill] sm:$0xff]  ;;  %v6598_v9 = vld [vmem:[#allocation76_spill] sm:$0xff]  ;;  %2807 = vst [vmem:[%s4579_s15 + $0x68] sm:$0xff] %v2072_v25 }
 0x223   : > { %2065 = vst [vmem:[%s4579_s15 + $0x30] sm:$0xff] %v2057_v48  ;;  %v2068_v24 = vmul.f32 %v6597_v1, %v6596_v51  ;;  %v2069_v62 = vmul.f32 %v6599_v39, %v6598_v9  ;;  %v2086_v6 = vmul.f32 %v6607_v8, %v6598_v9  ;;  %v2087_v55 = vmul.f32 %v6608_v20, %v6600_v21  ;;  %v6610_v48 = vld [vmem:[#allocation12_spill] sm:$0xff] }
 0x224   : > { %v1682_v28 = vadd.f32 %v1674_v52, %v1664_v59  ;;  %v1746_v44 = vadd.f32 %v1738_v13, %v1728_v40  ;;  %v1810_v7 = vadd.f32 %v1802_v42, %v1792_v17  ;;  %v1874_v54 = vadd.f32 %v1866_v57, %v1856_v22  ;;  %2808 = vst [vmem:[%s4579_s15 + $0x70] sm:$0xff] %v2073_v35  ;;  %v6611_v17 = vld [vmem:[#allocation16_spill] sm:$0xff]  ;;  %v6613_v13 = vld [vmem:[#allocation81_spill] sm:$0xff] }
 0x225   : > { %2803 = vst [vmem:[%s4579_s15 + $0x48] sm:$0xff] %v2068_v24  ;;  %v2090_v26 = vmul.f32 %v5530_v56, %v5576_v45  ;;  %v2101_v43 = vmul.f32 %v6610_v48, %v6594_v36  ;;  %v2102_v63 = vmul.f32 %v6611_v17, %v6596_v51  ;;  %v6612_v56 = vld [vmem:[#allocation73_spill] sm:$0xff]  ;;  %v2104_v42 = vmul.f32 %v6613_v13, %v6600_v21 }
 0x226   : > { %v1882_v0 = vmax.f32 %v1682_v28, %v1746_v44  ;;  %2804 = vst [vmem:[%s4579_s15 + $0x50] sm:$0xff] %v2069_v62  ;;  %v2103_v52 = vmul.f32 %v6612_v56, %v6598_v9 }
 0x227   : > { %2811 = vst [vmem:[%s4579_s15 + $0x88] sm:$0xff] %v2085_v58 }
 0x228   : > { %v1890_v15 = vmax.f32 %v1882_v0, %v1810_v7  ;;  %2812 = vst [vmem:[%s4579_s15 + $0x90] sm:$0xff] %v2086_v6 }
 0x229   : > { %2813 = vst [vmem:[%s4579_s15 + $0x98] sm:$0xff] %v2087_v55 }
 0x22a   : > { %v1898_v11 = vmax.f32 %v1890_v15, %v1874_v54  ;;  %2814 = vst [vmem:[%s4579_s15 + $0xa0] sm:$0xff] %v2088_v53 }
 0x22b   : > { %2815 = vst [vmem:[%s4579_s15 + $0xa8] sm:$0xff] %v2089_v47 }
 0x22c   : > { %v1906_v12 = vsub.f32 %v1682_v28, %v1898_v11  ;;  %v1930_v10 = vsub.f32 %v1746_v44, %v1898_v11  ;;  %v1954_v30 = vsub.f32 %v1810_v7, %v1898_v11  ;;  %v1978_v14 = vsub.f32 %v1874_v54, %v1898_v11  ;;  %2816 = vst [vmem:[%s4579_s15 + $0xb0] sm:$0xff] %v2090_v26  ;;  %v6614_v28 = vld [vmem:[#allocation64_spill] sm:$0xff] }
 0x22d   : > { %2818 = vst [vmem:[%s4579_s15 + $0xc0] sm:$0xff] %v2101_v43  ;;  %v2105_v44 = vmul.f32 %v6614_v28, %v6602_v60  ;;  %v2106_v7 = vmul.f32 %v5367_v2, %v5425_v3  ;;  %v2107_v54 = vmul.f32 %v5538_v49, %v5576_v45 }
 0x22e   : > { %v1921_v34 = vmul.f32 1.442695, %v1906_v12  ;;  %v1945_v46 = vmul.f32 1.442695, %v1930_v10  ;;  %v1969_v50 = vmul.f32 1.442695, %v1954_v30 }
 0x22f   : > { %v1993_v19 = vmul.f32 1.442695, %v1978_v14  ;;  %2819 = vst [vmem:[%s4579_s15 + $0xc8] sm:$0xff] %v2102_v63 }
 0x230   : > { %3254 = vpow2.f32 %v1921_v34  ;;  %2820 = vst [vmem:[%s4579_s15 + $0xd0] sm:$0xff] %v2103_v52 }
 0x231   : > { %3256 = vpow2.f32 %v1945_v46  ;;  %2821 = vst [vmem:[%s4579_s15 + $0xd8] sm:$0xff] %v2104_v42 }
 0x232   : > { %3258 = vpow2.f32 %v1969_v50  ;;  %2822 = vst [vmem:[%s4579_s15 + $0xe0] sm:$0xff] %v2105_v44 }
 0x233   : > { %3260 = vpow2.f32 %v1993_v19  ;;  %2823 = vst [vmem:[%s4579_s15 + $0xe8] sm:$0xff] %v2106_v7 }
 0x234   : > { %2824 = vst [vmem:[%s4579_s15 + $0xf0] sm:$0xff] %v2107_v54 }
 0x236   : > { %v3255_v32 = vpop.eup %3254 }
 0x237   : > { %v3257_v16 = vpop.eup %3256 }
 0x238   : > { %v3259_v5 = vpop.eup %3258  ;;  %v2002_v59 = vadd.f32 %v3257_v16, %v3255_v32 }
 0x239   : > { %v3261_v40 = vpop.eup %3260 }
 0x23a   : > { %v2010_v22 = vadd.f32 %v3259_v5, %v2002_v59 }
 0x23c   : > { %v2018_v57 = vadd.f32 %v3261_v40, %v2010_v22 }
 0x23e   : > { %3262 = vrcp.f32 %v2018_v57 }
 0x244   : > { %v3263_v0 = vpop.eup %3262 }
 0x245   : > { %v2034_v15 = vmul.f32 %v3263_v0, %v2018_v57 }
 0x247   : > { %v2042_v11 = vsub.f32 2.0, %v2034_v15 }
 0x249   : > { %v2050_v36 = vmul.f32 %v3263_v0, %v2042_v11 }
 0x24b   : > { %v2058_v31 = vmul.f32 %v3255_v32, %v2050_v36  ;;  %v2074_v37 = vmul.f32 %v3257_v16, %v2050_v36  ;;  %v2091_v2 = vmul.f32 %v3259_v5, %v2050_v36  ;;  %v2108_v3 = vmul.f32 %v3261_v40, %v2050_v36 }
 0x24c   : > { %2124 = sbr.rel (!%p3666_p5) target bundleno = 747 (0x2eb), region = 118 }
 0x24d   : > { %2066 = vst [vmem:[%s4579_s15 + $0x38] sm:$0xff] %v2058_v31 }
 0x24e   : > { %2809 = vst [vmem:[%s4579_s15 + $0x78] sm:$0xff] %v2074_v37 }
 0x24f   : > { %2817 = vst [vmem:[%s4579_s15 + $0xb8] sm:$0xff] %v2091_v2 }
 0x250   : > { %2825 = vst [vmem:[%s4579_s15 + $0xf8] sm:$0xff] %v2108_v3 }
 0x251   : > { %s6644_s12 = smov (!%p2127_p8, %s2126_s12), 8 }
 0x252   : > { %s2828_s10 = sshll.u32 %s6644_s12, 5  ;;  %s5661_s21 = sshll.u32 %s6644_s12, 3 }
 0x253   : > { %p2832_p9 = scmp.eq.s32.totalorder %s2828_s10, 0 }
 0x254   : > { %p2137_p7 = scmp.lt.u32.totalorder (!%p2832_p9), %s5661_s21, 8 }
 0x255   : > { %2136 = sbr.rel (%p2832_p9) target bundleno = 747 (0x2eb), region = 122 }
 0x25a   : > { %2140 = sbr.rel (%p2137_p7) target bundleno = 735 (0x2df), region = 126  ;;  %s5665_s24 = sand.u32 (!%p2137_p7), 7, %s5661_s21  }
 0x25b   : > { %p2163_p5 = scmp.eq.s32.totalorder (!%p2137_p7), %s5665_s24, 0  ;;  %p2833_p10 = scmp.ne.s32.totalorder (!%p2137_p7), %s5665_s24, 0 }
 0x25f   : > { %2166 = sbr.rel (%p2833_p10) target bundleno = 667 (0x29b), region = 141  ;;  %s2167_s18 = sshrl.u32 (!%p2833_p10), %s5661_s21, 3 }
 0x260   : > { %s5672_s26 = sshrl.u32 (!%p2833_p10), %s2167_s18, 3 }
 0x261   : > { %p2834_p11 = scmp.le.s32.totalorder (!%p2833_p10), %s5672_s26, 0 }
 0x264   : > { %2581 = sbr.rel (%p2834_p11) target bundleno = 650 (0x28a), region = 294  ;;  %s6615_s27 = smov (!%p2834_p11), %s5659_s14 }
 0x265   : > { %s6616_s28 = smov (!%p2834_p11), %s4579_s15  ;;  %s5681_s8 = smov (!%p2834_p11), 0  }
 0x266   : > { %s5683_s17 = smov (!%p2834_p11), 0  }
 0x269 LB: >> { %v2178_v49 = vld [vmem:[%s3539_s28] sm:$0xff]  ;;  %v2180_v45 = vld [vmem:[%s3539_s28 + $0x8] sm:$0xff]  ;;  %v2182_v51 = vld [vmem:[%s3539_s28 + $0x10] sm:$0xff]  ;;  %s2242_s9 = sadd.s32 1, %s3543_s8  ;;  %s2172_s17 = sadd.s32 1, %s3547_s17   ;;  %s3547_s17 = sphi %s5683_s17, %s2172_s17   ;;  %s3543_s8 = sphi %s5681_s8, %s6619_s8   ;;  %s3539_s28 = sphi %s6616_s28, %s6618_s28   ;;  %s3535_s27 = sphi %s6615_s27, %s6617_s27  }
 0x26a   : >> { %2179 = vst [vmem:[%s3535_s27] sm:$0xff] %v2178_v49  ;;  %v2184_v1 = vld [vmem:[%s3539_s28 + $0x18] sm:$0xff]  ;;  %p2243_p12 = scmp.ge.s32.totalorder %s2242_s9, %s5672_s26  ;;  %v2186_v24 = vld [vmem:[%s3539_s28 + $0x20] sm:$0xff]  ;;  %v2188_v9 = vld [vmem:[%s3539_s28 + $0x28] sm:$0xff]  ;;  %p2171_p13 = scmp.ge.s32.totalorder %s2172_s17, %s5672_s26 }
 0x26b   : >> { %2181 = vst [vmem:[%s3535_s27 + $0x8] sm:$0xff] %v2180_v45  ;;  %v2190_v39 = vld [vmem:[%s3539_s28 + $0x30] sm:$0xff]  ;;  %v2192_v62 = vld [vmem:[%s3539_s28 + $0x38] sm:$0xff]  ;;  %v2194_v12 = vld [vmem:[%s3539_s28 + $0x40] sm:$0xff] }
 0x26c   : >> { %2183 = vst [vmem:[%s3535_s27 + $0x10] sm:$0xff] %v2182_v51  ;;  %s6646_s9 = smov (%p2243_p12, %s2242_s9), 0  ;;  %v2196_v10 = vld [vmem:[%s3539_s28 + $0x48] sm:$0xff]  ;;  %v2198_v30 = vld [vmem:[%s3539_s28 + $0x50] sm:$0xff]  ;;  %v2200_v14 = vld [vmem:[%s3539_s28 + $0x58] sm:$0xff] }
 0x26d   : >> { %2185 = vst [vmem:[%s3535_s27 + $0x18] sm:$0xff] %v2184_v1  ;;  %s2835_s11 = sshll.u32 %s6646_s9, 6  ;;  %v2202_v21 = vld [vmem:[%s3539_s28 + $0x60] sm:$0xff]  ;;  %v2204_v38 = vld [vmem:[%s3539_s28 + $0x68] sm:$0xff]  ;;  %v2206_v18 = vld [vmem:[%s3539_s28 + $0x70] sm:$0xff]  ;;  %s6619_s8 = smov %s6646_s9 }
 0x26e   : >> { %2187 = vst [vmem:[%s3535_s27 + $0x20] sm:$0xff] %v2186_v24  ;;  %s5715_s25 = scalar_lea.vmem %s4579_s15, %s2835_s11 [#allocation8]   ;;  %s5718_s30 = scalar_lea.vmem %s5659_s14, %s2835_s11   ;;  %v2208_v34 = vld [vmem:[%s3539_s28 + $0x78] sm:$0xff]  ;;  %v2210_v46 = vld [vmem:[%s3539_s28 + $0x80] sm:$0xff]  ;;  %v2212_v50 = vld [vmem:[%s3539_s28 + $0x88] sm:$0xff] }
 0x26f   : >> { %2189 = vst [vmem:[%s3535_s27 + $0x28] sm:$0xff] %v2188_v9  ;;  %v2214_v60 = vld [vmem:[%s3539_s28 + $0x90] sm:$0xff]  ;;  %v2216_v29 = vld [vmem:[%s3539_s28 + $0x98] sm:$0xff]  ;;  %v2218_v4 = vld [vmem:[%s3539_s28 + $0xa0] sm:$0xff] }
 0x270   : >> { %2191 = vst [vmem:[%s3535_s27 + $0x30] sm:$0xff] %v2190_v39  ;;  %v2220_v19 = vld [vmem:[%s3539_s28 + $0xa8] sm:$0xff]  ;;  %v2222_v27 = vld [vmem:[%s3539_s28 + $0xb0] sm:$0xff]  ;;  %v2224_v25 = vld [vmem:[%s3539_s28 + $0xb8] sm:$0xff] }
 0x271   : >> { %2193 = vst [vmem:[%s3535_s27 + $0x38] sm:$0xff] %v2192_v62  ;;  %v2226_v35 = vld [vmem:[%s3539_s28 + $0xc0] sm:$0xff]  ;;  %v2228_v61 = vld [vmem:[%s3539_s28 + $0xc8] sm:$0xff]  ;;  %v2230_v23 = vld [vmem:[%s3539_s28 + $0xd0] sm:$0xff] }
 0x272   : >> { %2195 = vst [vmem:[%s3535_s27 + $0x48] sm:$0xff] %v2194_v12  ;;  %v2232_v41 = vld [vmem:[%s3539_s28 + $0xd8] sm:$0xff]  ;;  %v2234_v58 = vld [vmem:[%s3539_s28 + $0xe0] sm:$0xff]  ;;  %v2236_v8 = vld [vmem:[%s3539_s28 + $0xe8] sm:$0xff] }
 0x273   : >> { %2197 = vst [vmem:[%s3535_s27 + $0x50] sm:$0xff] %v2196_v10  ;;  %v2238_v6 = vld [vmem:[%s3539_s28 + $0xf0] sm:$0xff]  ;;  %v2240_v20 = vld [vmem:[%s3539_s28 + $0xf8] sm:$0xff]  ;;  %s6618_s28 = smov %s5715_s25 }
 0x274   : >> { %2199 = vst [vmem:[%s3535_s27 + $0x58] sm:$0xff] %v2198_v30 }
 0x275   : >> { %2201 = vst [vmem:[%s3535_s27 + $0x60] sm:$0xff] %v2200_v14 }
 0x276   : >> { %2203 = vst [vmem:[%s3535_s27 + $0x68] sm:$0xff] %v2202_v21 }
 0x277   : >> { %2205 = vst [vmem:[%s3535_s27 + $0x70] sm:$0xff] %v2204_v38 }
 0x278   : >> { %2207 = vst [vmem:[%s3535_s27 + $0x78] sm:$0xff] %v2206_v18 }
 0x279   : >> { %2209 = vst [vmem:[%s3535_s27 + $0x80] sm:$0xff] %v2208_v34 }
 0x27a   : >> { %2211 = vst [vmem:[%s3535_s27 + $0x90] sm:$0xff] %v2210_v46 }
 0x27b   : >> { %2213 = vst [vmem:[%s3535_s27 + $0x98] sm:$0xff] %v2212_v50 }
 0x27c   : >> { %2215 = vst [vmem:[%s3535_s27 + $0xa0] sm:$0xff] %v2214_v60 }
 0x27d   : >> { %2217 = vst [vmem:[%s3535_s27 + $0xa8] sm:$0xff] %v2216_v29 }
 0x27e   : >> { %2219 = vst [vmem:[%s3535_s27 + $0xb0] sm:$0xff] %v2218_v4 }
 0x27f   : >> { %2221 = vst [vmem:[%s3535_s27 + $0xb8] sm:$0xff] %v2220_v19 }
 0x280   : >> { %2223 = vst [vmem:[%s3535_s27 + $0xc0] sm:$0xff] %v2222_v27 }
 0x281   : >> { %2225 = vst [vmem:[%s3535_s27 + $0xc8] sm:$0xff] %v2224_v25 }
 0x282   : >> { %2227 = vst [vmem:[%s3535_s27 + $0xd8] sm:$0xff] %v2226_v35 }
 0x283   : >> { %2229 = vst [vmem:[%s3535_s27 + $0xe0] sm:$0xff] %v2228_v61 }
 0x284   : >> { %2231 = vst [vmem:[%s3535_s27 + $0xe8] sm:$0xff] %v2230_v23 }
 0x285   : >> { %2233 = vst [vmem:[%s3535_s27 + $0xf0] sm:$0xff] %v2232_v41  ;;  %2174 = sbr.rel (!%p2171_p13) target bundleno = 617 (0x269), region = 300 }
 0x286   : >> { %2235 = vst [vmem:[%s3535_s27 + $0xf8] sm:$0xff] %v2234_v58 }
 0x287   : >> { %2237 = vst [vmem:[%s3535_s27 + $0x100] sm:$0xff] %v2236_v8 }
 0x288   : >> { %2239 = vst [vmem:[%s3535_s27 + $0x108] sm:$0xff] %v2238_v6 }
 0x289   : >> { %2241 = vst [vmem:[%s3535_s27 + $0x110] sm:$0xff] %v2240_v20  ;;  %s6617_s27 = smov %s5718_s30 }
 0x28a PF: > { %s5784_s6 = sand.u32 7, %s2167_s18   ;;  %s2863_s23 = sshll.u32 %s5672_s26, 6 }
 0x28b   : > { %s5788_s13 = scalar_lea.vmem %s4579_s15, %s2863_s23 [#allocation8]   ;;  %s5791_s7 = scalar_lea.vmem %s5659_s14, %s2863_s23  }
 0x28c   : > { %p2840_p0 = scmp.le.s32.totalorder %s5784_s6, 0 }
 0x28d   : > { %s6620_s20 = smov (!%p2840_p0), %s5791_s7  ;;  %s6621_s12 = smov (!%p2840_p0), %s5788_s13 }
 0x28e   : > { %2595 = sbr.rel (%p2840_p0) target bundleno = 667 (0x29b), region = 305  ;;  %s5800_s5 = smov (!%p2840_p0), 0  }
 0x28f   : > { %s3561_s29 = smov (!%p2840_p0), 0  }
 0x293 LB: >> { %v2265_v55 = vld [vmem:[%s3555_s12] sm:$0xff]  ;;  %s2273_s10 = sadd.s32 1, %s3559_s5  ;;  %s2259_s29 = sadd.s32 1, %s3563_s29   ;;  %s3563_s29 = sphi %s3561_s29, %s2259_s29   ;;  %s3559_s5 = sphi %s5800_s5, %s6622_s5   ;;  %s3555_s12 = sphi %s6621_s12, %s2278_s12   ;;  %s3551_s20 = sphi %s6620_s20, %s2279_s20  }
 0x294   : >> { %v2267_v33 = vld [vmem:[%s3555_s12 + $0x40] sm:$0xff]  ;;  %2266 = vst [vmem:[%s3551_s20] sm:$0xff] %v2265_v55  ;;  %p2274_p1 = scmp.ge.s32.totalorder %s2273_s10, %s5784_s6  ;;  %p2258_p2 = scmp.ge.s32.totalorder %s2259_s29, %s5784_s6 }
 0x295   : >> { %v2269_v53 = vld [vmem:[%s3555_s12 + $0x80] sm:$0xff]  ;;  %2268 = vst [vmem:[%s3551_s20 + $0x48] sm:$0xff] %v2267_v33 }
 0x296   : >> { %v2271_v32 = vld [vmem:[%s3555_s12 + $0xc0] sm:$0xff]  ;;  %2270 = vst [vmem:[%s3551_s20 + $0x90] sm:$0xff] %v2269_v53  ;;  %s6648_s10 = smov (%p2274_p1, %s2273_s10), 0  ;;  %2261 = sbr.rel (!%p2258_p2) target bundleno = 659 (0x293), region = 311 }
 0x297   : >> { %2272 = vst [vmem:[%s3551_s20 + $0xd8] sm:$0xff] %v2271_v32  ;;  %s2841_s18 = sshll.u32 %s6648_s10, 3  ;;  %s6622_s5 = smov %s6648_s10 }
 0x298   : >> { %s2278_s12 = scalar_lea.vmem %s5788_s13, %s2841_s18 [#allocation8]   ;;  %s2279_s20 = scalar_lea.vmem %s5791_s7, %s2841_s18  }
 0x29b PF: > { %2282 = sbr.rel (%p2163_p5) target bundleno = 735 (0x2df), region = 159  ;;  %s2284_s26 = ssub.s32 (!%p2163_p5), %s5661_s21, %s5665_s24 }
 0x29c   : > { %s2288_s27 = sshrl.u32 (!%p2163_p5), %s5661_s21, 3  ;;  %s5821_s28 = scalar_lea.vmem (!%p2163_p5), %s4579_s15, %s2284_s26 [#allocation8] }
 0x29d   : > { %s5824_s8 = scalar_lea.vmem (!%p2163_p5), %s5659_s14, %s2284_s26  ;;  %s5828_s17 = sshrl.u32 (!%p2163_p5), %s2288_s27, 3 }
 0x29e   : > { %p2843_p3 = scmp.le.s32.totalorder (!%p2163_p5), %s5828_s17, 0 }
 0x2a0   : > { %2609 = sbr.rel (%p2843_p3) target bundleno = 710 (0x2c6), region = 316  ;;  %s6623_s9 = smov (!%p2843_p3), %s5659_s14 }
 0x2a1   : > { %s6624_s11 = smov (!%p2843_p3), %s4579_s15  ;;  %s5837_s25 = smov (!%p2843_p3), 0  }
 0x2a2   : > { %s5839_s30 = smov (!%p2843_p3), 0  }
 0x2a5 LB: >> { %v2299_v47 = vld [vmem:[%s3571_s11] sm:$0xff]  ;;  %v2301_v16 = vld [vmem:[%s3571_s11 + $0x8] sm:$0xff]  ;;  %v2303_v26 = vld [vmem:[%s3571_s11 + $0x10] sm:$0xff]  ;;  %s2363_s6 = sadd.s32 1, %s3575_s25  ;;  %s2293_s30 = sadd.s32 1, %s3579_s30   ;;  %s3579_s30 = sphi %s5839_s30, %s2293_s30   ;;  %s3575_s25 = sphi %s5837_s25, %s6627_s25   ;;  %s3571_s11 = sphi %s6624_s11, %s6626_s11   ;;  %s3567_s9 = sphi %s6623_s9, %s6625_s9  }
 0x2a6   : >> { %2300 = vst [vmem:[%s3567_s9] sm:$0xff] %v2299_v47  ;;  %v2305_v5 = vld [vmem:[%s3571_s11 + $0x18] sm:$0xff]  ;;  %p2364_p4 = scmp.ge.s32.totalorder %s2363_s6, %s5828_s17  ;;  %v2307_v59 = vld [vmem:[%s3571_s11 + $0x20] sm:$0xff]  ;;  %v2309_v48 = vld [vmem:[%s3571_s11 + $0x28] sm:$0xff]  ;;  %p2292_p6 = scmp.ge.s32.totalorder %s2293_s30, %s5828_s17 }
 0x2a7   : >> { %2302 = vst [vmem:[%s3567_s9 + $0x8] sm:$0xff] %v2301_v16  ;;  %v2311_v43 = vld [vmem:[%s3571_s11 + $0x30] sm:$0xff]  ;;  %v2313_v40 = vld [vmem:[%s3571_s11 + $0x38] sm:$0xff]  ;;  %v2315_v17 = vld [vmem:[%s3571_s11 + $0x40] sm:$0xff] }
 0x2a8   : >> { %2304 = vst [vmem:[%s3567_s9 + $0x10] sm:$0xff] %v2303_v26  ;;  %s6650_s6 = smov (%p2364_p4, %s2363_s6), 0  ;;  %v2317_v63 = vld [vmem:[%s3571_s11 + $0x48] sm:$0xff]  ;;  %v2319_v22 = vld [vmem:[%s3571_s11 + $0x50] sm:$0xff]  ;;  %v2321_v56 = vld [vmem:[%s3571_s11 + $0x58] sm:$0xff] }
 0x2a9   : >> { %2306 = vst [vmem:[%s3567_s9 + $0x18] sm:$0xff] %v2305_v5  ;;  %s2844_s23 = sshll.u32 %s6650_s6, 6  ;;  %v2323_v52 = vld [vmem:[%s3571_s11 + $0x60] sm:$0xff]  ;;  %v2325_v13 = vld [vmem:[%s3571_s11 + $0x68] sm:$0xff]  ;;  %v2327_v42 = vld [vmem:[%s3571_s11 + $0x70] sm:$0xff]  ;;  %s6627_s25 = smov %s6650_s6 }
 0x2aa   : >> { %2308 = vst [vmem:[%s3567_s9 + $0x20] sm:$0xff] %v2307_v59  ;;  %s5871_s13 = scalar_lea.vmem %s4579_s15, %s2844_s23 [#allocation8]   ;;  %s5874_s7 = scalar_lea.vmem %s5659_s14, %s2844_s23   ;;  %v2329_v57 = vld [vmem:[%s3571_s11 + $0x78] sm:$0xff]  ;;  %v2331_v28 = vld [vmem:[%s3571_s11 + $0x80] sm:$0xff]  ;;  %v2333_v44 = vld [vmem:[%s3571_s11 + $0x88] sm:$0xff] }
 0x2ab   : >> { %2310 = vst [vmem:[%s3567_s9 + $0x28] sm:$0xff] %v2309_v48  ;;  %v2335_v7 = vld [vmem:[%s3571_s11 + $0x90] sm:$0xff]  ;;  %v2337_v54 = vld [vmem:[%s3571_s11 + $0x98] sm:$0xff]  ;;  %v2339_v0 = vld [vmem:[%s3571_s11 + $0xa0] sm:$0xff] }
 0x2ac   : >> { %2312 = vst [vmem:[%s3567_s9 + $0x30] sm:$0xff] %v2311_v43  ;;  %v2341_v15 = vld [vmem:[%s3571_s11 + $0xa8] sm:$0xff]  ;;  %v2343_v11 = vld [vmem:[%s3571_s11 + $0xb0] sm:$0xff]  ;;  %v2345_v36 = vld [vmem:[%s3571_s11 + $0xb8] sm:$0xff] }
 0x2ad   : >> { %2314 = vst [vmem:[%s3567_s9 + $0x38] sm:$0xff] %v2313_v40  ;;  %v2347_v31 = vld [vmem:[%s3571_s11 + $0xc0] sm:$0xff]  ;;  %v2349_v37 = vld [vmem:[%s3571_s11 + $0xc8] sm:$0xff]  ;;  %v2351_v2 = vld [vmem:[%s3571_s11 + $0xd0] sm:$0xff] }
 0x2ae   : >> { %2316 = vst [vmem:[%s3567_s9 + $0x48] sm:$0xff] %v2315_v17  ;;  %v2353_v3 = vld [vmem:[%s3571_s11 + $0xd8] sm:$0xff]  ;;  %v2355_v49 = vld [vmem:[%s3571_s11 + $0xe0] sm:$0xff]  ;;  %v2357_v45 = vld [vmem:[%s3571_s11 + $0xe8] sm:$0xff] }
 0x2af   : >> { %2318 = vst [vmem:[%s3567_s9 + $0x50] sm:$0xff] %v2317_v63  ;;  %v2359_v51 = vld [vmem:[%s3571_s11 + $0xf0] sm:$0xff]  ;;  %v2361_v1 = vld [vmem:[%s3571_s11 + $0xf8] sm:$0xff]  ;;  %s6626_s11 = smov %s5871_s13 }
 0x2b0   : >> { %2320 = vst [vmem:[%s3567_s9 + $0x58] sm:$0xff] %v2319_v22 }
 0x2b1   : >> { %2322 = vst [vmem:[%s3567_s9 + $0x60] sm:$0xff] %v2321_v56 }
 0x2b2   : >> { %2324 = vst [vmem:[%s3567_s9 + $0x68] sm:$0xff] %v2323_v52 }
 0x2b3   : >> { %2326 = vst [vmem:[%s3567_s9 + $0x70] sm:$0xff] %v2325_v13 }
 0x2b4   : >> { %2328 = vst [vmem:[%s3567_s9 + $0x78] sm:$0xff] %v2327_v42 }
 0x2b5   : >> { %2330 = vst [vmem:[%s3567_s9 + $0x80] sm:$0xff] %v2329_v57 }
 0x2b6   : >> { %2332 = vst [vmem:[%s3567_s9 + $0x90] sm:$0xff] %v2331_v28 }
 0x2b7   : >> { %2334 = vst [vmem:[%s3567_s9 + $0x98] sm:$0xff] %v2333_v44 }
 0x2b8   : >> { %2336 = vst [vmem:[%s3567_s9 + $0xa0] sm:$0xff] %v2335_v7 }
 0x2b9   : >> { %2338 = vst [vmem:[%s3567_s9 + $0xa8] sm:$0xff] %v2337_v54 }
 0x2ba   : >> { %2340 = vst [vmem:[%s3567_s9 + $0xb0] sm:$0xff] %v2339_v0 }
 0x2bb   : >> { %2342 = vst [vmem:[%s3567_s9 + $0xb8] sm:$0xff] %v2341_v15 }
 0x2bc   : >> { %2344 = vst [vmem:[%s3567_s9 + $0xc0] sm:$0xff] %v2343_v11 }
 0x2bd   : >> { %2346 = vst [vmem:[%s3567_s9 + $0xc8] sm:$0xff] %v2345_v36 }
 0x2be   : >> { %2348 = vst [vmem:[%s3567_s9 + $0xd8] sm:$0xff] %v2347_v31 }
 0x2bf   : >> { %2350 = vst [vmem:[%s3567_s9 + $0xe0] sm:$0xff] %v2349_v37 }
 0x2c0   : >> { %2352 = vst [vmem:[%s3567_s9 + $0xe8] sm:$0xff] %v2351_v2 }
 0x2c1   : >> { %2354 = vst [vmem:[%s3567_s9 + $0xf0] sm:$0xff] %v2353_v3  ;;  %2295 = sbr.rel (!%p2292_p6) target bundleno = 677 (0x2a5), region = 322 }
 0x2c2   : >> { %2356 = vst [vmem:[%s3567_s9 + $0xf8] sm:$0xff] %v2355_v49 }
 0x2c3   : >> { %2358 = vst [vmem:[%s3567_s9 + $0x100] sm:$0xff] %v2357_v45 }
 0x2c4   : >> { %2360 = vst [vmem:[%s3567_s9 + $0x108] sm:$0xff] %v2359_v51 }
 0x2c5   : >> { %2362 = vst [vmem:[%s3567_s9 + $0x110] sm:$0xff] %v2361_v1  ;;  %s6625_s9 = smov %s5874_s7 }
 0x2c6 PF: > { %s5940_s20 = sand.u32 7, %s2288_s27   ;;  %s2865_s12 = sshll.u32 %s5828_s17, 6 }
 0x2c7   : > { %s5944_s5 = scalar_lea.vmem %s4579_s15, %s2865_s12 [#allocation8]   ;;  %s5947_s29 = scalar_lea.vmem %s5659_s14, %s2865_s12  }
 0x2c8   : > { %p2849_p8 = scmp.le.s32.totalorder %s5940_s20, 0 }
 0x2c9   : > { %s6628_s10 = smov (!%p2849_p8), %s5947_s29  ;;  %s6629_s18 = smov (!%p2849_p8), %s5944_s5 }
 0x2ca   : > { %2623 = sbr.rel (%p2849_p8) target bundleno = 727 (0x2d7), region = 327  ;;  %s3589_s26 = smov (!%p2849_p8), 0  }
 0x2cb   : > { %s3593_s9 = smov (!%p2849_p8), 0  }
 0x2cf LB: >> { %v2386_v24 = vld [vmem:[%s3587_s18] sm:$0xff]  ;;  %s2394_s27 = sadd.s32 1, %s3591_s26  ;;  %s2380_s9 = sadd.s32 1, %s3595_s9   ;;  %s3595_s9 = sphi %s3593_s9, %s2380_s9   ;;  %s3591_s26 = sphi %s3589_s26, %s3590_s26   ;;  %s3587_s18 = sphi %s6629_s18, %s2399_s18   ;;  %s3583_s10 = sphi %s6628_s10, %s2400_s10  }
 0x2d0   : >> { %v2388_v9 = vld [vmem:[%s3587_s18 + $0x40] sm:$0xff]  ;;  %2387 = vst [vmem:[%s3583_s10] sm:$0xff] %v2386_v24  ;;  %p2395_p9 = scmp.ge.s32.totalorder %s2394_s27, %s5940_s20  ;;  %p2379_p7 = scmp.ge.s32.totalorder %s2380_s9, %s5940_s20 }
 0x2d1   : >> { %v2390_v39 = vld [vmem:[%s3587_s18 + $0x80] sm:$0xff]  ;;  %2389 = vst [vmem:[%s3583_s10 + $0x48] sm:$0xff] %v2388_v9 }
 0x2d2   : >> { %v2392_v62 = vld [vmem:[%s3587_s18 + $0xc0] sm:$0xff]  ;;  %2391 = vst [vmem:[%s3583_s10 + $0x90] sm:$0xff] %v2390_v39  ;;  %s6652_s27 = smov (%p2395_p9, %s2394_s27), 0  ;;  %2382 = sbr.rel (!%p2379_p7) target bundleno = 719 (0x2cf), region = 333 }
 0x2d3   : >> { %2393 = vst [vmem:[%s3583_s10 + $0xd8] sm:$0xff] %v2392_v62  ;;  %s2850_s17 = sshll.u32 %s6652_s27, 3  ;;  %s3590_s26 = smov %s6652_s27  }
 0x2d4   : >> { %s2399_s18 = scalar_lea.vmem %s5944_s5, %s2850_s17 [#allocation8]   ;;  %s2400_s10 = scalar_lea.vmem %s5947_s29, %s2850_s17  }
 0x2d7 PF: > { %s3604_s11 = smov 1  }
 0x2d8   : > { %s2401_s25 = sshll.u32 %s3604_s11, %s5665_s24 }
 0x2d9   : > { %s2852_s30 = sadd.s32 4294967295, %s2401_s25 }
 0x2da   : > { %v2411_v12 = vld [vmem:[%s5821_s28] sm:%s2852_s30] }
 0x2db   : > { %v2413_v10 = vld [vmem:[%s5821_s28 + $0x40] sm:%s2852_s30]  ;;  %2412 = vst [vmem:[%s5824_s8] sm:%s2852_s30] %v2411_v12 }
 0x2dc   : > { %v2415_v30 = vld [vmem:[%s5821_s28 + $0x80] sm:%s2852_s30]  ;;  %2414 = vst [vmem:[%s5824_s8 + $0x48] sm:%s2852_s30] %v2413_v10 }
 0x2dd   : > { %v2417_v14 = vld [vmem:[%s5821_s28 + $0xc0] sm:%s2852_s30]  ;;  %2416 = vst [vmem:[%s5824_s8 + $0x90] sm:%s2852_s30] %v2415_v30 }
 0x2de   : > { %2418 = vst [vmem:[%s5824_s8 + $0xd8] sm:%s2852_s30] %v2417_v14 }
 0x2df PF: > { %p2853_p5 = scmp.ge.u32.totalorder %s5661_s21, 8 }
 0x2e0   : > { %s3605_s6 = smov (!%p2853_p5), 1  }
 0x2e1   : > { %2143 = sbr.rel (%p2853_p5) target bundleno = 747 (0x2eb), region = 130  ;;  %s2144_s24 = sshll.u32 (!%p2853_p5), %s3605_s6, %s5661_s21 }
 0x2e2   : > { %s2854_s23 = sadd.s32 (!%p2853_p5), 4294967295, %s2144_s24 }
 0x2e6   : > { %v2154_v21 = vld [vmem:[%s4579_s15] sm:%s2854_s23] }
 0x2e7   : > { %v2156_v38 = vld [vmem:[%s4579_s15 + $0x40] sm:%s2854_s23]  ;;  %2155 = vst [vmem:[%s5659_s14] sm:%s2854_s23] %v2154_v21 }
 0x2e8   : > { %v2158_v18 = vld [vmem:[%s4579_s15 + $0x80] sm:%s2854_s23]  ;;  %2157 = vst [vmem:[%s5659_s14 + $0x48] sm:%s2854_s23] %v2156_v38 }
 0x2e9   : > { %v2160_v34 = vld [vmem:[%s4579_s15 + $0xc0] sm:%s2854_s23]  ;;  %2159 = vst [vmem:[%s5659_s14 + $0x90] sm:%s2854_s23] %v2158_v18 }
 0x2ea   : > { %2161 = vst [vmem:[%s5659_s14 + $0xd8] sm:%s2854_s23] %v2160_v34 }
 0x2eb PF: > { %p13_p10 = scmp.ge.s32.totalorder %s3650_s19, 4   ;;  %s6630_s15 = smov %s3463_s16 }
 0x2ec   : > { %s6631_s16 = smov %s3660_s22  ;;  %s6632_s17 = smov %s3650_s19 }
 0x2ed   :  { %15 = sbr.rel (!%p13_p10) target bundleno = 3 (0x3), region = 344 }
 0x2f2   :  { %2432 = vsyncpa [#allocation4], 1 }
 0x2f3   :  { %2434 = vsyncpa [#allocation4 + $0x1], 1 }
 0x2f4   :  { %2435 = vsyncpa [#allocation6], 1 }

</bundles_post_ra>
